<compile_context>
chip_gen: v7x
topology: tpu7x:2x2x1
jax: 0.10.0
libtpu: 0.0.40
codegen_flags: <defaults>
</compile_context>

<pallas_src>
import functools

import jax
import jax.numpy as jnp
import numpy as np
from jax import lax
from jax.experimental import pallas as pl
from jax.experimental.pallas import tpu as pltpu

LN_EPS = 1e-5


def _layer_norm(x, gamma, beta):
    # x: (T, D) f32, gamma/beta: (1, D); biased variance like torch.nn.LayerNorm.
    mean = jnp.mean(x, axis=-1, keepdims=True)
    var = jnp.mean((x - mean) ** 2, axis=-1, keepdims=True)
    return (x - mean) * lax.rsqrt(var + LN_EPS) * gamma + beta


def _mha(q_in, kv_in, wq_ref, bq_ref, wk_ref, bk_ref, wv_ref, bv_ref,
         wo_ref, bo, gamma, beta, n_head):
    """Multi-head attention on one query tile.

    q_in:  (Tq, Dm) f32 (also the residual);  kv_in: (Sk, Dm) f32.
    Weight refs are head-major (bf16): wq/wk (H, Dm, d_k), wv (H, Dm, d_v),
    wo (H, d_v, Dm).  1/sqrt(d_k) is already folded into wq/bq.
    """
    tq, dm = q_in.shape
    q_bf = q_in.astype(jnp.bfloat16)
    kv_bf = kv_in.astype(jnp.bfloat16)

    acc = jnp.zeros((tq, dm), jnp.float32)
    attns = []
    for h in range(n_head):  # n_head is small & static -> unrolled
        qh = (jnp.dot(q_bf, wq_ref[h], preferred_element_type=jnp.float32)
              + bq_ref[h]).astype(jnp.bfloat16)
        kh = (jnp.dot(kv_bf, wk_ref[h], preferred_element_type=jnp.float32)
              + bk_ref[h]).astype(jnp.bfloat16)
        vh = (jnp.dot(kv_bf, wv_ref[h], preferred_element_type=jnp.float32)
              + bv_ref[h]).astype(jnp.bfloat16)
        # scores = qh @ kh^T without an explicit transpose (contract last dims).
        scores = lax.dot_general(qh, kh, (((1,), (1,)), ((), ())),
                                 preferred_element_type=jnp.float32)   # (Tq, Sk)
        m = jnp.max(scores, axis=-1, keepdims=True)
        p = jnp.exp(scores - m)
        attn = p * pl.reciprocal(jnp.sum(p, axis=-1, keepdims=True), approx=True)
        attns.append(attn)
        ctx = jnp.dot(attn.astype(jnp.bfloat16), vh,
                      preferred_element_type=jnp.float32)              # (Tq, d_v)
        # Accumulate the output projection per head -> no lane-axis concatenate.
        acc = acc + jnp.dot(ctx.astype(jnp.bfloat16), wo_ref[h],
                            preferred_element_type=jnp.float32)        # (Tq, Dm)

    out = _layer_norm(acc + bo + q_in, gamma, beta)
    attn_all = jnp.stack(attns, axis=0)                                # (H, Tq, Sk)
    return out, attn_all


def decoder_layer_kernel(
        dec_q_ref, dec_kv_ref, enc_ref,
        s_wq, s_bq, s_wk, s_bk, s_wv, s_bv, s_wo, s_bo, s_g, s_b,
        c_wq, c_bq, c_wk, c_bk, c_wv, c_bv, c_wo, c_bo, c_g, c_b,
        w1_ref, b1_ref, w2_ref, b2_ref, f_g, f_b,
        out_ref, self_attn_ref, cross_attn_ref,
        *, n_head):
    dec_q = dec_q_ref[0]     # (Tq, Dm)   query tile (+ residual)
    dec_kv = dec_kv_ref[0]   # (Sdec, Dm) full decoder input for self-attn K/V
    enc = enc_ref[0]         # (Senc, Dm) encoder output for cross-attn K/V

    # masked self-attention (mask=None here)
    x, self_attn = _mha(dec_q, dec_kv, s_wq, s_bq, s_wk, s_bk, s_wv, s_bv,
                        s_wo, s_bo[...], s_g[...], s_b[...], n_head)
    # decoder-encoder cross attention
    y, cross_attn = _mha(x, enc, c_wq, c_bq, c_wk, c_bk, c_wv, c_bv,
                         c_wo, c_bo[...], c_g[...], c_b[...], n_head)
    # position-wise FFN (Conv1d(k=1) == feature-last matmul, no transpose needed)
    h = jnp.dot(y.astype(jnp.bfloat16), w1_ref[...],
                preferred_element_type=jnp.float32) + b1_ref[...]
    h = jnp.maximum(h, 0.0)
    z = jnp.dot(h.astype(jnp.bfloat16), w2_ref[...],
                preferred_element_type=jnp.float32) + b2_ref[...]

    out_ref[0] = _layer_norm(z + y, f_g[...], f_b[...])
    self_attn_ref[0] = self_attn
    cross_attn_ref[0] = cross_attn


def _prep_mha_params(p, n_head, d_k, d_v, d_model):
    """Reshape weights head-major and fold the 1/sqrt(d_k) scale into Wq/bq."""
    scale = 1.0 / np.sqrt(d_k)
    wq = ((p["wq"] * scale).reshape(d_model, n_head, d_k)
          .transpose(1, 0, 2).astype(jnp.bfloat16))                  # (H, Dm, d_k)
    bq = (p["bq"] * scale).reshape(n_head, 1, d_k).astype(jnp.float32)
    wk = (p["wk"].reshape(d_model, n_head, d_k)
          .transpose(1, 0, 2).astype(jnp.bfloat16))
    bk = p["bk"].reshape(n_head, 1, d_k).astype(jnp.float32)
    wv = (p["wv"].reshape(d_model, n_head, d_v)
          .transpose(1, 0, 2).astype(jnp.bfloat16))
    bv = p["bv"].reshape(n_head, 1, d_v).astype(jnp.float32)
    wo = p["wo"].reshape(n_head, d_v, d_model).astype(jnp.bfloat16)  # (H, d_v, Dm)
    return (wq, bq, wk, bk, wv, bv, wo, p["bo"], p["ln_g"], p["ln_b"])


def decoder_layer(enc_outputs, dec_inputs, params, *, n_head, d_k, d_v, q_tile=128):
    B, Sdec, Dm = dec_inputs.shape
    Senc = enc_outputs.shape[1]
    d_inner = params["ffn"]["w1"].shape[1]

    tq = min(q_tile, Sdec)
    assert Sdec % tq == 0, "decoder seq length must be a multiple of the query tile"
    nq = Sdec // tq

    sp = _prep_mha_params(params["self_attn"], n_head, d_k, d_v, Dm)
    cp = _prep_mha_params(params["cross_attn"], n_head, d_k, d_v, Dm)
    fp = (params["ffn"]["w1"].astype(jnp.bfloat16), params["ffn"]["b1"],
          params["ffn"]["w2"].astype(jnp.bfloat16), params["ffn"]["b2"],
          params["ffn"]["ln_g"], params["ffn"]["ln_b"])

    def const_spec(*shape):
        # Weights/biases: same full block every grid step.
        # TODO(synk): on v7x, pipeline_mode=pl.Buffered(1) would halve their VMEM
        #             footprint (constant-index inputs need no double buffering).
        zeros = (0,) * len(shape)
        return pl.BlockSpec(shape, lambda b, qi: zeros)

    kernel = functools.partial(decoder_layer_kernel, n_head=n_head)

    out, self_attn, cross_attn = pl.pallas_call(
        kernel,
        out_shape=(
            jax.ShapeDtypeStruct((B, Sdec, Dm), jnp.float32),
            jax.ShapeDtypeStruct((B, n_head, Sdec, Sdec), jnp.float32),
            jax.ShapeDtypeStruct((B, n_head, Sdec, Senc), jnp.float32),
        ),
        grid=(B, nq),
        in_specs=[
            pl.BlockSpec((1, tq, Dm), lambda b, qi: (b, qi, 0)),    # query tile
            pl.BlockSpec((1, Sdec, Dm), lambda b, qi: (b, 0, 0)),   # self-attn K/V
            pl.BlockSpec((1, Senc, Dm), lambda b, qi: (b, 0, 0)),   # cross-attn K/V
            # self-attention params (head-major)
            const_spec(n_head, Dm, d_k), const_spec(n_head, 1, d_k),
            const_spec(n_head, Dm, d_k), const_spec(n_head, 1, d_k),
            const_spec(n_head, Dm, d_v), const_spec(n_head, 1, d_v),
            const_spec(n_head, d_v, Dm), const_spec(1, Dm),
            const_spec(1, Dm), const_spec(1, Dm),
            # cross-attention params (head-major)
            const_spec(n_head, Dm, d_k), const_spec(n_head, 1, d_k),
            const_spec(n_head, Dm, d_k), const_spec(n_head, 1, d_k),
            const_spec(n_head, Dm, d_v), const_spec(n_head, 1, d_v),
            const_spec(n_head, d_v, Dm), const_spec(1, Dm),
            const_spec(1, Dm), const_spec(1, Dm),
            # FFN params
            const_spec(Dm, d_inner), const_spec(1, d_inner),
            const_spec(d_inner, Dm), const_spec(1, Dm),
            const_spec(1, Dm), const_spec(1, Dm),
        ],
        out_specs=(
            pl.BlockSpec((1, tq, Dm), lambda b, qi: (b, qi, 0)),
            pl.BlockSpec((1, n_head, tq, Sdec), lambda b, qi: (b, 0, qi, 0)),
            pl.BlockSpec((1, n_head, tq, Senc), lambda b, qi: (b, 0, qi, 0)),
        ),
        compiler_params=pltpu.CompilerParams(
            dimension_semantics=("parallel", "parallel"),
            vmem_limit_bytes=32 * 1024 * 1024,
        ),
    )(dec_inputs, dec_inputs, enc_outputs, *sp, *cp, *fp)
    return out, self_attn, cross_attn


def init_params(key, n_head, d_k, d_v, d_model, d_inner):
    def mha_params(k):
        ks = jax.random.split(k, 4)
        s = 0.05
        return {
            "wq": s * jax.random.normal(ks[0], (d_model, n_head * d_k), jnp.float32),
            "bq": jnp.zeros((1, n_head * d_k), jnp.float32),
            "wk": s * jax.random.normal(ks[1], (d_model, n_head * d_k), jnp.float32),
            "bk": jnp.zeros((1, n_head * d_k), jnp.float32),
            "wv": s * jax.random.normal(ks[2], (d_model, n_head * d_v), jnp.float32),
            "bv": jnp.zeros((1, n_head * d_v), jnp.float32),
            "wo": s * jax.random.normal(ks[3], (n_head * d_v, d_model), jnp.float32),
            "bo": jnp.zeros((1, d_model), jnp.float32),
            "ln_g": jnp.ones((1, d_model), jnp.float32),
            "ln_b": jnp.zeros((1, d_model), jnp.float32),
        }

    k1, k2, k3, k4 = jax.random.split(key, 4)
    s = 0.05
    ffn = {
        "w1": s * jax.random.normal(k3, (d_model, d_inner), jnp.float32),
        "b1": jnp.zeros((1, d_inner), jnp.float32),
        "w2": s * jax.random.normal(k4, (d_inner, d_model), jnp.float32),
        "b2": jnp.zeros((1, d_model), jnp.float32),
        "ln_g": jnp.ones((1, d_model), jnp.float32),
        "ln_b": jnp.zeros((1, d_model), jnp.float32),
    }
    return {"self_attn": mha_params(k1), "cross_attn": mha_params(k2), "ffn": ffn}


# ------------------------- plain-JAX f32 reference ---------------------------

def _ref_layer_norm(x, gamma, beta):
    mean = jnp.mean(x, axis=-1, keepdims=True)
    var = jnp.mean((x - mean) ** 2, axis=-1, keepdims=True)
    return (x - mean) / jnp.sqrt(var + LN_EPS) * gamma + beta


def _ref_mha(Q, K, V, p, n_head, d_k, d_v):
    B, Sq, _ = Q.shape
    Sk = K.shape[1]
    Qs = (Q @ p["wq"] + p["bq"]).reshape(B, Sq, n_head, d_k)
    Ks = (K @ p["wk"] + p["bk"]).reshape(B, Sk, n_head, d_k)
    Vs = (V @ p["wv"] + p["bv"]).reshape(B, Sk, n_head, d_v)
    scores = jnp.einsum("bqhd,bkhd->bhqk", Qs, Ks) / np.sqrt(d_k)
    attn = jax.nn.softmax(scores, axis=-1)
    ctx = jnp.einsum("bhqk,bkhd->bqhd", attn, Vs).reshape(B, Sq, n_head * d_v)
    out = ctx @ p["wo"] + p["bo"]
    return _ref_layer_norm(out + Q, p["ln_g"], p["ln_b"]), attn


def _ref_decoder_layer(enc_outputs, dec_inputs, params, *, n_head, d_k, d_v):
    x, sa = _ref_mha(dec_inputs, dec_inputs, dec_inputs,
                     params["self_attn"], n_head, d_k, d_v)
    y, ca = _ref_mha(x, enc_outputs, enc_outputs,
                     params["cross_attn"], n_head, d_k, d_v)
    f = params["ffn"]
    h = jnp.maximum(y @ f["w1"] + f["b1"], 0.0)
    z = h @ f["w2"] + f["b2"]
    out = _ref_layer_norm(z + y, f["ln_g"], f["ln_b"])
    return out, sa, ca


if __name__ == "__main__":
    B, S_dec, S_enc = 2, 8, 16
    n_head, d_k, d_v, d_model, d_inner = 4, 8, 8, 32, 64

    key = jax.random.PRNGKey(0)
    k_enc, k_dec, k_par = jax.random.split(key, 3)
    enc_outputs = jax.random.normal(k_enc, (B, S_enc, d_model), jnp.float32)
    dec_inputs = jax.random.normal(k_dec, (B, S_dec, d_model), jnp.float32)
    params = init_params(k_par, n_head, d_k, d_v, d_model, d_inner)

    out, self_attns, dec_enc_attns = decoder_layer(
        enc_outputs, dec_inputs, params, n_head=n_head, d_k=d_k, d_v=d_v)
    jax.block_until_ready((out, self_attns, dec_enc_attns))

    assert out.shape == (B, S_dec, d_model)
    assert self_attns.shape == (B, n_head, S_dec, S_dec)
    assert dec_enc_attns.shape == (B, n_head, S_dec, S_enc)

    # Loose numerical sanity check vs a plain-JAX f32 reference (kernel uses bf16
    # MXU matmuls and an approximate reciprocal in the softmax).
    ref_out, ref_sa, ref_ca = _ref_decoder_layer(
        enc_outputs, dec_inputs, params, n_head=n_head, d_k=d_k, d_v=d_v)
    np.testing.assert_allclose(np.asarray(out), np.asarray(ref_out), atol=1e-1, rtol=0)
    np.testing.assert_allclose(np.asarray(self_attns), np.asarray(ref_sa), atol=3e-2, rtol=0)
    np.testing.assert_allclose(np.asarray(dec_enc_attns), np.asarray(ref_ca), atol=3e-2, rtol=0)

    print("KERNEL_OK")
</pallas_src>

<mosaic_0001>
module attributes {stable_mosaic.version = 11 : i64} {
  func.func @decoder_layer_kernel(%arg0: i32, %arg1: i32, %arg2: memref<1x8x32xf32, #tpu.memory_space<vmem>>, %arg3: memref<1x8x32xf32, #tpu.memory_space<vmem>>, %arg4: memref<1x16x32xf32, #tpu.memory_space<vmem>>, %arg5: memref<4x32x8xbf16, #tpu.memory_space<vmem>>, %arg6: memref<4x1x8xf32, #tpu.memory_space<vmem>>, %arg7: memref<4x32x8xbf16, #tpu.memory_space<vmem>>, %arg8: memref<4x1x8xf32, #tpu.memory_space<vmem>>, %arg9: memref<4x32x8xbf16, #tpu.memory_space<vmem>>, %arg10: memref<4x1x8xf32, #tpu.memory_space<vmem>>, %arg11: memref<4x8x32xbf16, #tpu.memory_space<vmem>>, %arg12: memref<1x32xf32, #tpu.memory_space<vmem>>, %arg13: memref<1x32xf32, #tpu.memory_space<vmem>>, %arg14: memref<1x32xf32, #tpu.memory_space<vmem>>, %arg15: memref<4x32x8xbf16, #tpu.memory_space<vmem>>, %arg16: memref<4x1x8xf32, #tpu.memory_space<vmem>>, %arg17: memref<4x32x8xbf16, #tpu.memory_space<vmem>>, %arg18: memref<4x1x8xf32, #tpu.memory_space<vmem>>, %arg19: memref<4x32x8xbf16, #tpu.memory_space<vmem>>, %arg20: memref<4x1x8xf32, #tpu.memory_space<vmem>>, %arg21: memref<4x8x32xbf16, #tpu.memory_space<vmem>>, %arg22: memref<1x32xf32, #tpu.memory_space<vmem>>, %arg23: memref<1x32xf32, #tpu.memory_space<vmem>>, %arg24: memref<1x32xf32, #tpu.memory_space<vmem>>, %arg25: memref<32x64xbf16, #tpu.memory_space<vmem>>, %arg26: memref<1x64xf32, #tpu.memory_space<vmem>>, %arg27: memref<64x32xbf16, #tpu.memory_space<vmem>>, %arg28: memref<1x32xf32, #tpu.memory_space<vmem>>, %arg29: memref<1x32xf32, #tpu.memory_space<vmem>>, %arg30: memref<1x32xf32, #tpu.memory_space<vmem>>, %arg31: memref<1x8x32xf32, #tpu.memory_space<vmem>>, %arg32: memref<1x4x8x8xf32, #tpu.memory_space<vmem>>, %arg33: memref<1x4x8x16xf32, #tpu.memory_space<vmem>>) attributes {dimension_semantics = [#tpu.dimension_semantics<parallel>, #tpu.dimension_semantics<parallel>], iteration_bounds = array<i64: 2, 1>, scalar_prefetch = 0 : i64, scratch_operands = 0 : i64, tpu.core_type = #tpu.core_type<tc>, window_params = [{transform_indices = @transform_0, window_bounds = array<i64: 1, 8, 32>}, {transform_indices = @transform_1, window_bounds = array<i64: 1, 8, 32>}, {transform_indices = @transform_2, window_bounds = array<i64: 1, 16, 32>}, {pipeline_mode = #tpu.pipeline_mode<synchronous>, transform_indices = @transform_3, window_bounds = array<i64: 4, 32, 8>}, {pipeline_mode = #tpu.pipeline_mode<synchronous>, transform_indices = @transform_4, window_bounds = array<i64: 4, 1, 8>}, {pipeline_mode = #tpu.pipeline_mode<synchronous>, transform_indices = @transform_5, window_bounds = array<i64: 4, 32, 8>}, {pipeline_mode = #tpu.pipeline_mode<synchronous>, transform_indices = @transform_6, window_bounds = array<i64: 4, 1, 8>}, {pipeline_mode = #tpu.pipeline_mode<synchronous>, transform_indices = @transform_7, window_bounds = array<i64: 4, 32, 8>}, {pipeline_mode = #tpu.pipeline_mode<synchronous>, transform_indices = @transform_8, window_bounds = array<i64: 4, 1, 8>}, {pipeline_mode = #tpu.pipeline_mode<synchronous>, transform_indices = @transform_9, window_bounds = array<i64: 4, 8, 32>}, {pipeline_mode = #tpu.pipeline_mode<synchronous>, transform_indices = @transform_10, window_bounds = array<i64: 1, 32>}, {pipeline_mode = #tpu.pipeline_mode<synchronous>, transform_indices = @transform_11, window_bounds = array<i64: 1, 32>}, {pipeline_mode = #tpu.pipeline_mode<synchronous>, transform_indices = @transform_12, window_bounds = array<i64: 1, 32>}, {pipeline_mode = #tpu.pipeline_mode<synchronous>, transform_indices = @transform_13, window_bounds = array<i64: 4, 32, 8>}, {pipeline_mode = #tpu.pipeline_mode<synchronous>, transform_indices = @transform_14, window_bounds = array<i64: 4, 1, 8>}, {pipeline_mode = #tpu.pipeline_mode<synchronous>, transform_indices = @transform_15, window_bounds = array<i64: 4, 32, 8>}, {pipeline_mode = #tpu.pipeline_mode<synchronous>, transform_indices = @transform_16, window_bounds = array<i64: 4, 1, 8>}, {pipeline_mode = #tpu.pipeline_mode<synchronous>, transform_indices = @transform_17, window_bounds = array<i64: 4, 32, 8>}, {pipeline_mode = #tpu.pipeline_mode<synchronous>, transform_indices = @transform_18, window_bounds = array<i64: 4, 1, 8>}, {pipeline_mode = #tpu.pipeline_mode<synchronous>, transform_indices = @transform_19, window_bounds = array<i64: 4, 8, 32>}, {pipeline_mode = #tpu.pipeline_mode<synchronous>, transform_indices = @transform_20, window_bounds = array<i64: 1, 32>}, {pipeline_mode = #tpu.pipeline_mode<synchronous>, transform_indices = @transform_21, window_bounds = array<i64: 1, 32>}, {pipeline_mode = #tpu.pipeline_mode<synchronous>, transform_indices = @transform_22, window_bounds = array<i64: 1, 32>}, {pipeline_mode = #tpu.pipeline_mode<synchronous>, transform_indices = @transform_23, window_bounds = array<i64: 32, 64>}, {pipeline_mode = #tpu.pipeline_mode<synchronous>, transform_indices = @transform_24, window_bounds = array<i64: 1, 64>}, {pipeline_mode = #tpu.pipeline_mode<synchronous>, transform_indices = @transform_25, window_bounds = array<i64: 64, 32>}, {pipeline_mode = #tpu.pipeline_mode<synchronous>, transform_indices = @transform_26, window_bounds = array<i64: 1, 32>}, {pipeline_mode = #tpu.pipeline_mode<synchronous>, transform_indices = @transform_27, window_bounds = array<i64: 1, 32>}, {pipeline_mode = #tpu.pipeline_mode<synchronous>, transform_indices = @transform_28, window_bounds = array<i64: 1, 32>}, {transform_indices = @transform_29, window_bounds = array<i64: 1, 8, 32>}, {transform_indices = @transform_30, window_bounds = array<i64: 1, 4, 8, 8>}, {transform_indices = @transform_31, window_bounds = array<i64: 1, 4, 8, 16>}]} {
    %c0 = arith.constant 0 : index
    %c0_0 = arith.constant 0 : index
    %c0_1 = arith.constant 0 : index
    %0 = vector.load %arg2[%c0, %c0_0, %c0_1] : memref<1x8x32xf32, #tpu.memory_space<vmem>>, vector<1x8x32xf32>
    %1 = vector.shape_cast %0 : vector<1x8x32xf32> to vector<8x32xf32>
    %c0_2 = arith.constant 0 : index
    %c0_3 = arith.constant 0 : index
    %c0_4 = arith.constant 0 : index
    %2 = vector.load %arg3[%c0_2, %c0_3, %c0_4] : memref<1x8x32xf32, #tpu.memory_space<vmem>>, vector<1x8x32xf32>
    %3 = vector.shape_cast %2 : vector<1x8x32xf32> to vector<8x32xf32>
    %c0_5 = arith.constant 0 : index
    %c0_6 = arith.constant 0 : index
    %c0_7 = arith.constant 0 : index
    %4 = vector.load %arg4[%c0_5, %c0_6, %c0_7] : memref<1x16x32xf32, #tpu.memory_space<vmem>>, vector<1x16x32xf32>
    %5 = vector.shape_cast %4 : vector<1x16x32xf32> to vector<16x32xf32>
    %c0_8 = arith.constant 0 : index
    %c0_9 = arith.constant 0 : index
    %6 = vector.load %arg12[%c0_8, %c0_9] : memref<1x32xf32, #tpu.memory_space<vmem>>, vector<1x32xf32>
    %c0_10 = arith.constant 0 : index
    %c0_11 = arith.constant 0 : index
    %7 = vector.load %arg13[%c0_10, %c0_11] : memref<1x32xf32, #tpu.memory_space<vmem>>, vector<1x32xf32>
    %c0_12 = arith.constant 0 : index
    %c0_13 = arith.constant 0 : index
    %8 = vector.load %arg14[%c0_12, %c0_13] : memref<1x32xf32, #tpu.memory_space<vmem>>, vector<1x32xf32>
    %9 = arith.truncf %1 : vector<8x32xf32> to vector<8x32xbf16>
    %10 = arith.truncf %3 : vector<8x32xf32> to vector<8x32xbf16>
    %cst = arith.constant 0.000000e+00 : f32
    %11 = vector.broadcast %cst : f32 to vector<8x32xf32>
    %c0_14 = arith.constant 0 : index
    %c0_15 = arith.constant 0 : index
    %c0_16 = arith.constant 0 : index
    %12 = vector.load %arg5[%c0_14, %c0_15, %c0_16] : memref<4x32x8xbf16, #tpu.memory_space<vmem>>, vector<1x32x8xbf16>
    %13 = vector.shape_cast %12 : vector<1x32x8xbf16> to vector<32x8xbf16>
    %cst_17 = arith.constant dense<0.000000e+00> : vector<8x8xf32>
    %14 = tpu.matmul %9, %13, %cst_17 {dimension_numbers = #tpu.dot_dimension_numbers<[1], [0], [0], [1], [0, 0, 1, 1], [], []>} : vector<8x32xbf16>, vector<32x8xbf16>, vector<8x8xf32> -> vector<8x8xf32>
    %c0_18 = arith.constant 0 : index
    %c0_19 = arith.constant 0 : index
    %c0_20 = arith.constant 0 : index
    %15 = vector.load %arg6[%c0_18, %c0_19, %c0_20] : memref<4x1x8xf32, #tpu.memory_space<vmem>>, vector<1x1x8xf32>
    %16 = vector.shape_cast %15 : vector<1x1x8xf32> to vector<1x8xf32>
    %17 = vector.broadcast %16 : vector<1x8xf32> to vector<8x8xf32>
    %18 = arith.addf %14, %17 : vector<8x8xf32>
    %19 = arith.truncf %18 : vector<8x8xf32> to vector<8x8xbf16>
    %c0_21 = arith.constant 0 : index
    %c0_22 = arith.constant 0 : index
    %c0_23 = arith.constant 0 : index
    %20 = vector.load %arg7[%c0_21, %c0_22, %c0_23] : memref<4x32x8xbf16, #tpu.memory_space<vmem>>, vector<1x32x8xbf16>
    %21 = vector.shape_cast %20 : vector<1x32x8xbf16> to vector<32x8xbf16>
    %cst_24 = arith.constant dense<0.000000e+00> : vector<8x8xf32>
    %22 = tpu.matmul %10, %21, %cst_24 {dimension_numbers = #tpu.dot_dimension_numbers<[1], [0], [0], [1], [0, 0, 1, 1], [], []>} : vector<8x32xbf16>, vector<32x8xbf16>, vector<8x8xf32> -> vector<8x8xf32>
    %c0_25 = arith.constant 0 : index
    %c0_26 = arith.constant 0 : index
    %c0_27 = arith.constant 0 : index
    %23 = vector.load %arg8[%c0_25, %c0_26, %c0_27] : memref<4x1x8xf32, #tpu.memory_space<vmem>>, vector<1x1x8xf32>
    %24 = vector.shape_cast %23 : vector<1x1x8xf32> to vector<1x8xf32>
    %25 = vector.broadcast %24 : vector<1x8xf32> to vector<8x8xf32>
    %26 = arith.addf %22, %25 : vector<8x8xf32>
    %27 = arith.truncf %26 : vector<8x8xf32> to vector<8x8xbf16>
    %c0_28 = arith.constant 0 : index
    %c0_29 = arith.constant 0 : index
    %c0_30 = arith.constant 0 : index
    %28 = vector.load %arg9[%c0_28, %c0_29, %c0_30] : memref<4x32x8xbf16, #tpu.memory_space<vmem>>, vector<1x32x8xbf16>
    %29 = vector.shape_cast %28 : vector<1x32x8xbf16> to vector<32x8xbf16>
    %cst_31 = arith.constant dense<0.000000e+00> : vector<8x8xf32>
    %30 = tpu.matmul %10, %29, %cst_31 {dimension_numbers = #tpu.dot_dimension_numbers<[1], [0], [0], [1], [0, 0, 1, 1], [], []>} : vector<8x32xbf16>, vector<32x8xbf16>, vector<8x8xf32> -> vector<8x8xf32>
    %c0_32 = arith.constant 0 : index
    %c0_33 = arith.constant 0 : index
    %c0_34 = arith.constant 0 : index
    %31 = vector.load %arg10[%c0_32, %c0_33, %c0_34] : memref<4x1x8xf32, #tpu.memory_space<vmem>>, vector<1x1x8xf32>
    %32 = vector.shape_cast %31 : vector<1x1x8xf32> to vector<1x8xf32>
    %33 = vector.broadcast %32 : vector<1x8xf32> to vector<8x8xf32>
    %34 = arith.addf %30, %33 : vector<8x8xf32>
    %35 = arith.truncf %34 : vector<8x8xf32> to vector<8x8xbf16>
    %cst_35 = arith.constant dense<0.000000e+00> : vector<8x8xf32>
    %36 = tpu.matmul %19, %27, %cst_35 {dimension_numbers = #tpu.dot_dimension_numbers<[1], [1], [0], [0], [0, 0, 1, 0], [], []>} : vector<8x8xbf16>, vector<8x8xbf16>, vector<8x8xf32> -> vector<8x8xf32>
    %cst_36 = arith.constant dense<0xFF800000> : vector<8xf32>
    %37 = vector.multi_reduction <maximumf>, %36, %cst_36 [1] : vector<8x8xf32> to vector<8xf32>
    %38 = vector.shape_cast %37 : vector<8xf32> to vector<8x1xf32>
    %39 = vector.broadcast %38 : vector<8x1xf32> to vector<8x8xf32>
    %40 = arith.subf %36, %39 : vector<8x8xf32>
    %41 = math.exp %40 : vector<8x8xf32>
    %cst_37 = arith.constant dense<0.000000e+00> : vector<8xf32>
    %42 = vector.multi_reduction <add>, %41, %cst_37 [1] : vector<8x8xf32> to vector<8xf32>
    %43 = vector.shape_cast %42 : vector<8xf32> to vector<8x1xf32>
    %44 = tpu.reciprocal %43 {approx = true} : vector<8x1xf32> -> vector<8x1xf32>
    %45 = vector.broadcast %44 : vector<8x1xf32> to vector<8x8xf32>
    %46 = arith.mulf %41, %45 : vector<8x8xf32>
    %47 = arith.truncf %46 : vector<8x8xf32> to vector<8x8xbf16>
    %cst_38 = arith.constant dense<0.000000e+00> : vector<8x8xf32>
    %48 = tpu.matmul %47, %35, %cst_38 {dimension_numbers = #tpu.dot_dimension_numbers<[1], [0], [0], [1], [0, 0, 1, 1], [], []>} : vector<8x8xbf16>, vector<8x8xbf16>, vector<8x8xf32> -> vector<8x8xf32>
    %49 = arith.truncf %48 : vector<8x8xf32> to vector<8x8xbf16>
    %c0_39 = arith.constant 0 : index
    %c0_40 = arith.constant 0 : index
    %c0_41 = arith.constant 0 : index
    %50 = vector.load %arg11[%c0_39, %c0_40, %c0_41] : memref<4x8x32xbf16, #tpu.memory_space<vmem>>, vector<1x8x32xbf16>
    %51 = vector.shape_cast %50 : vector<1x8x32xbf16> to vector<8x32xbf16>
    %cst_42 = arith.constant dense<0.000000e+00> : vector<8x32xf32>
    %52 = tpu.matmul %49, %51, %cst_42 {dimension_numbers = #tpu.dot_dimension_numbers<[1], [0], [0], [1], [0, 0, 1, 1], [], []>} : vector<8x8xbf16>, vector<8x32xbf16>, vector<8x32xf32> -> vector<8x32xf32>
    %53 = arith.addf %11, %52 : vector<8x32xf32>
    %c1 = arith.constant 1 : index
    %c0_43 = arith.constant 0 : index
    %c0_44 = arith.constant 0 : index
    %54 = vector.load %arg5[%c1, %c0_43, %c0_44] : memref<4x32x8xbf16, #tpu.memory_space<vmem>>, vector<1x32x8xbf16>
    %55 = vector.shape_cast %54 : vector<1x32x8xbf16> to vector<32x8xbf16>
    %cst_45 = arith.constant dense<0.000000e+00> : vector<8x8xf32>
    %56 = tpu.matmul %9, %55, %cst_45 {dimension_numbers = #tpu.dot_dimension_numbers<[1], [0], [0], [1], [0, 0, 1, 1], [], []>} : vector<8x32xbf16>, vector<32x8xbf16>, vector<8x8xf32> -> vector<8x8xf32>
    %c1_46 = arith.constant 1 : index
    %c0_47 = arith.constant 0 : index
    %c0_48 = arith.constant 0 : index
    %57 = vector.load %arg6[%c1_46, %c0_47, %c0_48] : memref<4x1x8xf32, #tpu.memory_space<vmem>>, vector<1x1x8xf32>
    %58 = vector.shape_cast %57 : vector<1x1x8xf32> to vector<1x8xf32>
    %59 = vector.broadcast %58 : vector<1x8xf32> to vector<8x8xf32>
    %60 = arith.addf %56, %59 : vector<8x8xf32>
    %61 = arith.truncf %60 : vector<8x8xf32> to vector<8x8xbf16>
    %c1_49 = arith.constant 1 : index
    %c0_50 = arith.constant 0 : index
    %c0_51 = arith.constant 0 : index
    %62 = vector.load %arg7[%c1_49, %c0_50, %c0_51] : memref<4x32x8xbf16, #tpu.memory_space<vmem>>, vector<1x32x8xbf16>
    %63 = vector.shape_cast %62 : vector<1x32x8xbf16> to vector<32x8xbf16>
    %cst_52 = arith.constant dense<0.000000e+00> : vector<8x8xf32>
    %64 = tpu.matmul %10, %63, %cst_52 {dimension_numbers = #tpu.dot_dimension_numbers<[1], [0], [0], [1], [0, 0, 1, 1], [], []>} : vector<8x32xbf16>, vector<32x8xbf16>, vector<8x8xf32> -> vector<8x8xf32>
    %c1_53 = arith.constant 1 : index
    %c0_54 = arith.constant 0 : index
    %c0_55 = arith.constant 0 : index
    %65 = vector.load %arg8[%c1_53, %c0_54, %c0_55] : memref<4x1x8xf32, #tpu.memory_space<vmem>>, vector<1x1x8xf32>
    %66 = vector.shape_cast %65 : vector<1x1x8xf32> to vector<1x8xf32>
    %67 = vector.broadcast %66 : vector<1x8xf32> to vector<8x8xf32>
    %68 = arith.addf %64, %67 : vector<8x8xf32>
    %69 = arith.truncf %68 : vector<8x8xf32> to vector<8x8xbf16>
    %c1_56 = arith.constant 1 : index
    %c0_57 = arith.constant 0 : index
    %c0_58 = arith.constant 0 : index
    %70 = vector.load %arg9[%c1_56, %c0_57, %c0_58] : memref<4x32x8xbf16, #tpu.memory_space<vmem>>, vector<1x32x8xbf16>
    %71 = vector.shape_cast %70 : vector<1x32x8xbf16> to vector<32x8xbf16>
    %cst_59 = arith.constant dense<0.000000e+00> : vector<8x8xf32>
    %72 = tpu.matmul %10, %71, %cst_59 {dimension_numbers = #tpu.dot_dimension_numbers<[1], [0], [0], [1], [0, 0, 1, 1], [], []>} : vector<8x32xbf16>, vector<32x8xbf16>, vector<8x8xf32> -> vector<8x8xf32>
    %c1_60 = arith.constant 1 : index
    %c0_61 = arith.constant 0 : index
    %c0_62 = arith.constant 0 : index
    %73 = vector.load %arg10[%c1_60, %c0_61, %c0_62] : memref<4x1x8xf32, #tpu.memory_space<vmem>>, vector<1x1x8xf32>
    %74 = vector.shape_cast %73 : vector<1x1x8xf32> to vector<1x8xf32>
    %75 = vector.broadcast %74 : vector<1x8xf32> to vector<8x8xf32>
    %76 = arith.addf %72, %75 : vector<8x8xf32>
    %77 = arith.truncf %76 : vector<8x8xf32> to vector<8x8xbf16>
    %cst_63 = arith.constant dense<0.000000e+00> : vector<8x8xf32>
    %78 = tpu.matmul %61, %69, %cst_63 {dimension_numbers = #tpu.dot_dimension_numbers<[1], [1], [0], [0], [0, 0, 1, 0], [], []>} : vector<8x8xbf16>, vector<8x8xbf16>, vector<8x8xf32> -> vector<8x8xf32>
    %cst_64 = arith.constant dense<0xFF800000> : vector<8xf32>
    %79 = vector.multi_reduction <maximumf>, %78, %cst_64 [1] : vector<8x8xf32> to vector<8xf32>
    %80 = vector.shape_cast %79 : vector<8xf32> to vector<8x1xf32>
    %81 = vector.broadcast %80 : vector<8x1xf32> to vector<8x8xf32>
    %82 = arith.subf %78, %81 : vector<8x8xf32>
    %83 = math.exp %82 : vector<8x8xf32>
    %cst_65 = arith.constant dense<0.000000e+00> : vector<8xf32>
    %84 = vector.multi_reduction <add>, %83, %cst_65 [1] : vector<8x8xf32> to vector<8xf32>
    %85 = vector.shape_cast %84 : vector<8xf32> to vector<8x1xf32>
    %86 = tpu.reciprocal %85 {approx = true} : vector<8x1xf32> -> vector<8x1xf32>
    %87 = vector.broadcast %86 : vector<8x1xf32> to vector<8x8xf32>
    %88 = arith.mulf %83, %87 : vector<8x8xf32>
    %89 = arith.truncf %88 : vector<8x8xf32> to vector<8x8xbf16>
    %cst_66 = arith.constant dense<0.000000e+00> : vector<8x8xf32>
    %90 = tpu.matmul %89, %77, %cst_66 {dimension_numbers = #tpu.dot_dimension_numbers<[1], [0], [0], [1], [0, 0, 1, 1], [], []>} : vector<8x8xbf16>, vector<8x8xbf16>, vector<8x8xf32> -> vector<8x8xf32>
    %91 = arith.truncf %90 : vector<8x8xf32> to vector<8x8xbf16>
    %c1_67 = arith.constant 1 : index
    %c0_68 = arith.constant 0 : index
    %c0_69 = arith.constant 0 : index
    %92 = vector.load %arg11[%c1_67, %c0_68, %c0_69] : memref<4x8x32xbf16, #tpu.memory_space<vmem>>, vector<1x8x32xbf16>
    %93 = vector.shape_cast %92 : vector<1x8x32xbf16> to vector<8x32xbf16>
    %cst_70 = arith.constant dense<0.000000e+00> : vector<8x32xf32>
    %94 = tpu.matmul %91, %93, %cst_70 {dimension_numbers = #tpu.dot_dimension_numbers<[1], [0], [0], [1], [0, 0, 1, 1], [], []>} : vector<8x8xbf16>, vector<8x32xbf16>, vector<8x32xf32> -> vector<8x32xf32>
    %95 = arith.addf %53, %94 : vector<8x32xf32>
    %c2 = arith.constant 2 : index
    %c0_71 = arith.constant 0 : index
    %c0_72 = arith.constant 0 : index
    %96 = vector.load %arg5[%c2, %c0_71, %c0_72] : memref<4x32x8xbf16, #tpu.memory_space<vmem>>, vector<1x32x8xbf16>
    %97 = vector.shape_cast %96 : vector<1x32x8xbf16> to vector<32x8xbf16>
    %cst_73 = arith.constant dense<0.000000e+00> : vector<8x8xf32>
    %98 = tpu.matmul %9, %97, %cst_73 {dimension_numbers = #tpu.dot_dimension_numbers<[1], [0], [0], [1], [0, 0, 1, 1], [], []>} : vector<8x32xbf16>, vector<32x8xbf16>, vector<8x8xf32> -> vector<8x8xf32>
    %c2_74 = arith.constant 2 : index
    %c0_75 = arith.constant 0 : index
    %c0_76 = arith.constant 0 : index
    %99 = vector.load %arg6[%c2_74, %c0_75, %c0_76] : memref<4x1x8xf32, #tpu.memory_space<vmem>>, vector<1x1x8xf32>
    %100 = vector.shape_cast %99 : vector<1x1x8xf32> to vector<1x8xf32>
    %101 = vector.broadcast %100 : vector<1x8xf32> to vector<8x8xf32>
    %102 = arith.addf %98, %101 : vector<8x8xf32>
    %103 = arith.truncf %102 : vector<8x8xf32> to vector<8x8xbf16>
    %c2_77 = arith.constant 2 : index
    %c0_78 = arith.constant 0 : index
    %c0_79 = arith.constant 0 : index
    %104 = vector.load %arg7[%c2_77, %c0_78, %c0_79] : memref<4x32x8xbf16, #tpu.memory_space<vmem>>, vector<1x32x8xbf16>
    %105 = vector.shape_cast %104 : vector<1x32x8xbf16> to vector<32x8xbf16>
    %cst_80 = arith.constant dense<0.000000e+00> : vector<8x8xf32>
    %106 = tpu.matmul %10, %105, %cst_80 {dimension_numbers = #tpu.dot_dimension_numbers<[1], [0], [0], [1], [0, 0, 1, 1], [], []>} : vector<8x32xbf16>, vector<32x8xbf16>, vector<8x8xf32> -> vector<8x8xf32>
    %c2_81 = arith.constant 2 : index
    %c0_82 = arith.constant 0 : index
    %c0_83 = arith.constant 0 : index
    %107 = vector.load %arg8[%c2_81, %c0_82, %c0_83] : memref<4x1x8xf32, #tpu.memory_space<vmem>>, vector<1x1x8xf32>
    %108 = vector.shape_cast %107 : vector<1x1x8xf32> to vector<1x8xf32>
    %109 = vector.broadcast %108 : vector<1x8xf32> to vector<8x8xf32>
    %110 = arith.addf %106, %109 : vector<8x8xf32>
    %111 = arith.truncf %110 : vector<8x8xf32> to vector<8x8xbf16>
    %c2_84 = arith.constant 2 : index
    %c0_85 = arith.constant 0 : index
    %c0_86 = arith.constant 0 : index
    %112 = vector.load %arg9[%c2_84, %c0_85, %c0_86] : memref<4x32x8xbf16, #tpu.memory_space<vmem>>, vector<1x32x8xbf16>
    %113 = vector.shape_cast %112 : vector<1x32x8xbf16> to vector<32x8xbf16>
    %cst_87 = arith.constant dense<0.000000e+00> : vector<8x8xf32>
    %114 = tpu.matmul %10, %113, %cst_87 {dimension_numbers = #tpu.dot_dimension_numbers<[1], [0], [0], [1], [0, 0, 1, 1], [], []>} : vector<8x32xbf16>, vector<32x8xbf16>, vector<8x8xf32> -> vector<8x8xf32>
    %c2_88 = arith.constant 2 : index
    %c0_89 = arith.constant 0 : index
    %c0_90 = arith.constant 0 : index
    %115 = vector.load %arg10[%c2_88, %c0_89, %c0_90] : memref<4x1x8xf32, #tpu.memory_space<vmem>>, vector<1x1x8xf32>
    %116 = vector.shape_cast %115 : vector<1x1x8xf32> to vector<1x8xf32>
    %117 = vector.broadcast %116 : vector<1x8xf32> to vector<8x8xf32>
    %118 = arith.addf %114, %117 : vector<8x8xf32>
    %119 = arith.truncf %118 : vector<8x8xf32> to vector<8x8xbf16>
    %cst_91 = arith.constant dense<0.000000e+00> : vector<8x8xf32>
    %120 = tpu.matmul %103, %111, %cst_91 {dimension_numbers = #tpu.dot_dimension_numbers<[1], [1], [0], [0], [0, 0, 1, 0], [], []>} : vector<8x8xbf16>, vector<8x8xbf16>, vector<8x8xf32> -> vector<8x8xf32>
    %cst_92 = arith.constant dense<0xFF800000> : vector<8xf32>
    %121 = vector.multi_reduction <maximumf>, %120, %cst_92 [1] : vector<8x8xf32> to vector<8xf32>
    %122 = vector.shape_cast %121 : vector<8xf32> to vector<8x1xf32>
    %123 = vector.broadcast %122 : vector<8x1xf32> to vector<8x8xf32>
    %124 = arith.subf %120, %123 : vector<8x8xf32>
    %125 = math.exp %124 : vector<8x8xf32>
    %cst_93 = arith.constant dense<0.000000e+00> : vector<8xf32>
    %126 = vector.multi_reduction <add>, %125, %cst_93 [1] : vector<8x8xf32> to vector<8xf32>
    %127 = vector.shape_cast %126 : vector<8xf32> to vector<8x1xf32>
    %128 = tpu.reciprocal %127 {approx = true} : vector<8x1xf32> -> vector<8x1xf32>
    %129 = vector.broadcast %128 : vector<8x1xf32> to vector<8x8xf32>
    %130 = arith.mulf %125, %129 : vector<8x8xf32>
    %131 = arith.truncf %130 : vector<8x8xf32> to vector<8x8xbf16>
    %cst_94 = arith.constant dense<0.000000e+00> : vector<8x8xf32>
    %132 = tpu.matmul %131, %119, %cst_94 {dimension_numbers = #tpu.dot_dimension_numbers<[1], [0], [0], [1], [0, 0, 1, 1], [], []>} : vector<8x8xbf16>, vector<8x8xbf16>, vector<8x8xf32> -> vector<8x8xf32>
    %133 = arith.truncf %132 : vector<8x8xf32> to vector<8x8xbf16>
    %c2_95 = arith.constant 2 : index
    %c0_96 = arith.constant 0 : index
    %c0_97 = arith.constant 0 : index
    %134 = vector.load %arg11[%c2_95, %c0_96, %c0_97] : memref<4x8x32xbf16, #tpu.memory_space<vmem>>, vector<1x8x32xbf16>
    %135 = vector.shape_cast %134 : vector<1x8x32xbf16> to vector<8x32xbf16>
    %cst_98 = arith.constant dense<0.000000e+00> : vector<8x32xf32>
    %136 = tpu.matmul %133, %135, %cst_98 {dimension_numbers = #tpu.dot_dimension_numbers<[1], [0], [0], [1], [0, 0, 1, 1], [], []>} : vector<8x8xbf16>, vector<8x32xbf16>, vector<8x32xf32> -> vector<8x32xf32>
    %137 = arith.addf %95, %136 : vector<8x32xf32>
    %c3 = arith.constant 3 : index
    %c0_99 = arith.constant 0 : index
    %c0_100 = arith.constant 0 : index
    %138 = vector.load %arg5[%c3, %c0_99, %c0_100] : memref<4x32x8xbf16, #tpu.memory_space<vmem>>, vector<1x32x8xbf16>
    %139 = vector.shape_cast %138 : vector<1x32x8xbf16> to vector<32x8xbf16>
    %cst_101 = arith.constant dense<0.000000e+00> : vector<8x8xf32>
    %140 = tpu.matmul %9, %139, %cst_101 {dimension_numbers = #tpu.dot_dimension_numbers<[1], [0], [0], [1], [0, 0, 1, 1], [], []>} : vector<8x32xbf16>, vector<32x8xbf16>, vector<8x8xf32> -> vector<8x8xf32>
    %c3_102 = arith.constant 3 : index
    %c0_103 = arith.constant 0 : index
    %c0_104 = arith.constant 0 : index
    %141 = vector.load %arg6[%c3_102, %c0_103, %c0_104] : memref<4x1x8xf32, #tpu.memory_space<vmem>>, vector<1x1x8xf32>
    %142 = vector.shape_cast %141 : vector<1x1x8xf32> to vector<1x8xf32>
    %143 = vector.broadcast %142 : vector<1x8xf32> to vector<8x8xf32>
    %144 = arith.addf %140, %143 : vector<8x8xf32>
    %145 = arith.truncf %144 : vector<8x8xf32> to vector<8x8xbf16>
    %c3_105 = arith.constant 3 : index
    %c0_106 = arith.constant 0 : index
    %c0_107 = arith.constant 0 : index
    %146 = vector.load %arg7[%c3_105, %c0_106, %c0_107] : memref<4x32x8xbf16, #tpu.memory_space<vmem>>, vector<1x32x8xbf16>
    %147 = vector.shape_cast %146 : vector<1x32x8xbf16> to vector<32x8xbf16>
    %cst_108 = arith.constant dense<0.000000e+00> : vector<8x8xf32>
    %148 = tpu.matmul %10, %147, %cst_108 {dimension_numbers = #tpu.dot_dimension_numbers<[1], [0], [0], [1], [0, 0, 1, 1], [], []>} : vector<8x32xbf16>, vector<32x8xbf16>, vector<8x8xf32> -> vector<8x8xf32>
    %c3_109 = arith.constant 3 : index
    %c0_110 = arith.constant 0 : index
    %c0_111 = arith.constant 0 : index
    %149 = vector.load %arg8[%c3_109, %c0_110, %c0_111] : memref<4x1x8xf32, #tpu.memory_space<vmem>>, vector<1x1x8xf32>
    %150 = vector.shape_cast %149 : vector<1x1x8xf32> to vector<1x8xf32>
    %151 = vector.broadcast %150 : vector<1x8xf32> to vector<8x8xf32>
    %152 = arith.addf %148, %151 : vector<8x8xf32>
    %153 = arith.truncf %152 : vector<8x8xf32> to vector<8x8xbf16>
    %c3_112 = arith.constant 3 : index
    %c0_113 = arith.constant 0 : index
    %c0_114 = arith.constant 0 : index
    %154 = vector.load %arg9[%c3_112, %c0_113, %c0_114] : memref<4x32x8xbf16, #tpu.memory_space<vmem>>, vector<1x32x8xbf16>
    %155 = vector.shape_cast %154 : vector<1x32x8xbf16> to vector<32x8xbf16>
    %cst_115 = arith.constant dense<0.000000e+00> : vector<8x8xf32>
    %156 = tpu.matmul %10, %155, %cst_115 {dimension_numbers = #tpu.dot_dimension_numbers<[1], [0], [0], [1], [0, 0, 1, 1], [], []>} : vector<8x32xbf16>, vector<32x8xbf16>, vector<8x8xf32> -> vector<8x8xf32>
    %c3_116 = arith.constant 3 : index
    %c0_117 = arith.constant 0 : index
    %c0_118 = arith.constant 0 : index
    %157 = vector.load %arg10[%c3_116, %c0_117, %c0_118] : memref<4x1x8xf32, #tpu.memory_space<vmem>>, vector<1x1x8xf32>
    %158 = vector.shape_cast %157 : vector<1x1x8xf32> to vector<1x8xf32>
    %159 = vector.broadcast %158 : vector<1x8xf32> to vector<8x8xf32>
    %160 = arith.addf %156, %159 : vector<8x8xf32>
    %161 = arith.truncf %160 : vector<8x8xf32> to vector<8x8xbf16>
    %cst_119 = arith.constant dense<0.000000e+00> : vector<8x8xf32>
    %162 = tpu.matmul %145, %153, %cst_119 {dimension_numbers = #tpu.dot_dimension_numbers<[1], [1], [0], [0], [0, 0, 1, 0], [], []>} : vector<8x8xbf16>, vector<8x8xbf16>, vector<8x8xf32> -> vector<8x8xf32>
    %cst_120 = arith.constant dense<0xFF800000> : vector<8xf32>
    %163 = vector.multi_reduction <maximumf>, %162, %cst_120 [1] : vector<8x8xf32> to vector<8xf32>
    %164 = vector.shape_cast %163 : vector<8xf32> to vector<8x1xf32>
    %165 = vector.broadcast %164 : vector<8x1xf32> to vector<8x8xf32>
    %166 = arith.subf %162, %165 : vector<8x8xf32>
    %167 = math.exp %166 : vector<8x8xf32>
    %cst_121 = arith.constant dense<0.000000e+00> : vector<8xf32>
    %168 = vector.multi_reduction <add>, %167, %cst_121 [1] : vector<8x8xf32> to vector<8xf32>
    %169 = vector.shape_cast %168 : vector<8xf32> to vector<8x1xf32>
    %170 = tpu.reciprocal %169 {approx = true} : vector<8x1xf32> -> vector<8x1xf32>
    %171 = vector.broadcast %170 : vector<8x1xf32> to vector<8x8xf32>
    %172 = arith.mulf %167, %171 : vector<8x8xf32>
    %173 = arith.truncf %172 : vector<8x8xf32> to vector<8x8xbf16>
    %cst_122 = arith.constant dense<0.000000e+00> : vector<8x8xf32>
    %174 = tpu.matmul %173, %161, %cst_122 {dimension_numbers = #tpu.dot_dimension_numbers<[1], [0], [0], [1], [0, 0, 1, 1], [], []>} : vector<8x8xbf16>, vector<8x8xbf16>, vector<8x8xf32> -> vector<8x8xf32>
    %175 = arith.truncf %174 : vector<8x8xf32> to vector<8x8xbf16>
    %c3_123 = arith.constant 3 : index
    %c0_124 = arith.constant 0 : index
    %c0_125 = arith.constant 0 : index
    %176 = vector.load %arg11[%c3_123, %c0_124, %c0_125] : memref<4x8x32xbf16, #tpu.memory_space<vmem>>, vector<1x8x32xbf16>
    %177 = vector.shape_cast %176 : vector<1x8x32xbf16> to vector<8x32xbf16>
    %cst_126 = arith.constant dense<0.000000e+00> : vector<8x32xf32>
    %178 = tpu.matmul %175, %177, %cst_126 {dimension_numbers = #tpu.dot_dimension_numbers<[1], [0], [0], [1], [0, 0, 1, 1], [], []>} : vector<8x8xbf16>, vector<8x32xbf16>, vector<8x32xf32> -> vector<8x32xf32>
    %179 = arith.addf %137, %178 : vector<8x32xf32>
    %180 = vector.broadcast %6 : vector<1x32xf32> to vector<8x32xf32>
    %181 = arith.addf %179, %180 : vector<8x32xf32>
    %182 = arith.addf %181, %1 : vector<8x32xf32>
    %cst_127 = arith.constant dense<0.000000e+00> : vector<8xf32>
    %183 = vector.multi_reduction <add>, %182, %cst_127 [1] : vector<8x32xf32> to vector<8xf32>
    %184 = vector.shape_cast %183 : vector<8xf32> to vector<8x1xf32>
    %cst_128 = arith.constant 3.200000e+01 : f32
    %185 = vector.broadcast %cst_128 : f32 to vector<8x1xf32>
    %186 = arith.divf %184, %185 : vector<8x1xf32>
    %187 = vector.broadcast %186 : vector<8x1xf32> to vector<8x32xf32>
    %188 = arith.subf %182, %187 : vector<8x32xf32>
    %189 = arith.mulf %188, %188 : vector<8x32xf32>
    %cst_129 = arith.constant dense<0.000000e+00> : vector<8xf32>
    %190 = vector.multi_reduction <add>, %189, %cst_129 [1] : vector<8x32xf32> to vector<8xf32>
    %191 = vector.shape_cast %190 : vector<8xf32> to vector<8x1xf32>
    %cst_130 = arith.constant 3.200000e+01 : f32
    %192 = vector.broadcast %cst_130 : f32 to vector<8x1xf32>
    %193 = arith.divf %191, %192 : vector<8x1xf32>
    %194 = vector.broadcast %186 : vector<8x1xf32> to vector<8x32xf32>
    %195 = arith.subf %182, %194 : vector<8x32xf32>
    %cst_131 = arith.constant 9.99999974E-6 : f32
    %196 = vector.broadcast %cst_131 : f32 to vector<8x1xf32>
    %197 = arith.addf %193, %196 : vector<8x1xf32>
    %198 = math.rsqrt %197 : vector<8x1xf32>
    %199 = vector.broadcast %198 : vector<8x1xf32> to vector<8x32xf32>
    %200 = arith.mulf %195, %199 : vector<8x32xf32>
    %201 = vector.broadcast %7 : vector<1x32xf32> to vector<8x32xf32>
    %202 = arith.mulf %200, %201 : vector<8x32xf32>
    %203 = vector.broadcast %8 : vector<1x32xf32> to vector<8x32xf32>
    %204 = arith.addf %202, %203 : vector<8x32xf32>
    %205 = vector.shape_cast %46 : vector<8x8xf32> to vector<1x8x8xf32>
    %206 = vector.shape_cast %88 : vector<8x8xf32> to vector<1x8x8xf32>
    %207 = vector.shape_cast %130 : vector<8x8xf32> to vector<1x8x8xf32>
    %208 = vector.shape_cast %172 : vector<8x8xf32> to vector<1x8x8xf32>
    %209 = tpu.concatenate %205, %206, %207, %208 in 0 : vector<1x8x8xf32>, vector<1x8x8xf32>, vector<1x8x8xf32>, vector<1x8x8xf32> -> vector<4x8x8xf32>
    %c0_132 = arith.constant 0 : index
    %c0_133 = arith.constant 0 : index
    %210 = vector.load %arg22[%c0_132, %c0_133] : memref<1x32xf32, #tpu.memory_space<vmem>>, vector<1x32xf32>
    %c0_134 = arith.constant 0 : index
    %c0_135 = arith.constant 0 : index
    %211 = vector.load %arg23[%c0_134, %c0_135] : memref<1x32xf32, #tpu.memory_space<vmem>>, vector<1x32xf32>
    %c0_136 = arith.constant 0 : index
    %c0_137 = arith.constant 0 : index
    %212 = vector.load %arg24[%c0_136, %c0_137] : memref<1x32xf32, #tpu.memory_space<vmem>>, vector<1x32xf32>
    %213 = arith.truncf %204 : vector<8x32xf32> to vector<8x32xbf16>
    %214 = arith.truncf %5 : vector<16x32xf32> to vector<16x32xbf16>
    %cst_138 = arith.constant 0.000000e+00 : f32
    %215 = vector.broadcast %cst_138 : f32 to vector<8x32xf32>
    %c0_139 = arith.constant 0 : index
    %c0_140 = arith.constant 0 : index
    %c0_141 = arith.constant 0 : index
    %216 = vector.load %arg15[%c0_139, %c0_140, %c0_141] : memref<4x32x8xbf16, #tpu.memory_space<vmem>>, vector<1x32x8xbf16>
    %217 = vector.shape_cast %216 : vector<1x32x8xbf16> to vector<32x8xbf16>
    %cst_142 = arith.constant dense<0.000000e+00> : vector<8x8xf32>
    %218 = tpu.matmul %213, %217, %cst_142 {dimension_numbers = #tpu.dot_dimension_numbers<[1], [0], [0], [1], [0, 0, 1, 1], [], []>} : vector<8x32xbf16>, vector<32x8xbf16>, vector<8x8xf32> -> vector<8x8xf32>
    %c0_143 = arith.constant 0 : index
    %c0_144 = arith.constant 0 : index
    %c0_145 = arith.constant 0 : index
    %219 = vector.load %arg16[%c0_143, %c0_144, %c0_145] : memref<4x1x8xf32, #tpu.memory_space<vmem>>, vector<1x1x8xf32>
    %220 = vector.shape_cast %219 : vector<1x1x8xf32> to vector<1x8xf32>
    %221 = vector.broadcast %220 : vector<1x8xf32> to vector<8x8xf32>
    %222 = arith.addf %218, %221 : vector<8x8xf32>
    %223 = arith.truncf %222 : vector<8x8xf32> to vector<8x8xbf16>
    %c0_146 = arith.constant 0 : index
    %c0_147 = arith.constant 0 : index
    %c0_148 = arith.constant 0 : index
    %224 = vector.load %arg17[%c0_146, %c0_147, %c0_148] : memref<4x32x8xbf16, #tpu.memory_space<vmem>>, vector<1x32x8xbf16>
    %225 = vector.shape_cast %224 : vector<1x32x8xbf16> to vector<32x8xbf16>
    %cst_149 = arith.constant dense<0.000000e+00> : vector<16x8xf32>
    %226 = tpu.matmul %214, %225, %cst_149 {dimension_numbers = #tpu.dot_dimension_numbers<[1], [0], [0], [1], [0, 0, 1, 1], [], []>} : vector<16x32xbf16>, vector<32x8xbf16>, vector<16x8xf32> -> vector<16x8xf32>
    %c0_150 = arith.constant 0 : index
    %c0_151 = arith.constant 0 : index
    %c0_152 = arith.constant 0 : index
    %227 = vector.load %arg18[%c0_150, %c0_151, %c0_152] : memref<4x1x8xf32, #tpu.memory_space<vmem>>, vector<1x1x8xf32>
    %228 = vector.shape_cast %227 : vector<1x1x8xf32> to vector<1x8xf32>
    %229 = vector.broadcast %228 : vector<1x8xf32> to vector<16x8xf32>
    %230 = arith.addf %226, %229 : vector<16x8xf32>
    %231 = arith.truncf %230 : vector<16x8xf32> to vector<16x8xbf16>
    %c0_153 = arith.constant 0 : index
    %c0_154 = arith.constant 0 : index
    %c0_155 = arith.constant 0 : index
    %232 = vector.load %arg19[%c0_153, %c0_154, %c0_155] : memref<4x32x8xbf16, #tpu.memory_space<vmem>>, vector<1x32x8xbf16>
    %233 = vector.shape_cast %232 : vector<1x32x8xbf16> to vector<32x8xbf16>
    %cst_156 = arith.constant dense<0.000000e+00> : vector<16x8xf32>
    %234 = tpu.matmul %214, %233, %cst_156 {dimension_numbers = #tpu.dot_dimension_numbers<[1], [0], [0], [1], [0, 0, 1, 1], [], []>} : vector<16x32xbf16>, vector<32x8xbf16>, vector<16x8xf32> -> vector<16x8xf32>
    %c0_157 = arith.constant 0 : index
    %c0_158 = arith.constant 0 : index
    %c0_159 = arith.constant 0 : index
    %235 = vector.load %arg20[%c0_157, %c0_158, %c0_159] : memref<4x1x8xf32, #tpu.memory_space<vmem>>, vector<1x1x8xf32>
    %236 = vector.shape_cast %235 : vector<1x1x8xf32> to vector<1x8xf32>
    %237 = vector.broadcast %236 : vector<1x8xf32> to vector<16x8xf32>
    %238 = arith.addf %234, %237 : vector<16x8xf32>
    %239 = arith.truncf %238 : vector<16x8xf32> to vector<16x8xbf16>
    %cst_160 = arith.constant dense<0.000000e+00> : vector<8x16xf32>
    %240 = tpu.matmul %223, %231, %cst_160 {dimension_numbers = #tpu.dot_dimension_numbers<[1], [1], [0], [0], [0, 0, 1, 0], [], []>} : vector<8x8xbf16>, vector<16x8xbf16>, vector<8x16xf32> -> vector<8x16xf32>
    %cst_161 = arith.constant dense<0xFF800000> : vector<8xf32>
    %241 = vector.multi_reduction <maximumf>, %240, %cst_161 [1] : vector<8x16xf32> to vector<8xf32>
    %242 = vector.shape_cast %241 : vector<8xf32> to vector<8x1xf32>
    %243 = vector.broadcast %242 : vector<8x1xf32> to vector<8x16xf32>
    %244 = arith.subf %240, %243 : vector<8x16xf32>
    %245 = math.exp %244 : vector<8x16xf32>
    %cst_162 = arith.constant dense<0.000000e+00> : vector<8xf32>
    %246 = vector.multi_reduction <add>, %245, %cst_162 [1] : vector<8x16xf32> to vector<8xf32>
    %247 = vector.shape_cast %246 : vector<8xf32> to vector<8x1xf32>
    %248 = tpu.reciprocal %247 {approx = true} : vector<8x1xf32> -> vector<8x1xf32>
    %249 = vector.broadcast %248 : vector<8x1xf32> to vector<8x16xf32>
    %250 = arith.mulf %245, %249 : vector<8x16xf32>
    %251 = arith.truncf %250 : vector<8x16xf32> to vector<8x16xbf16>
    %cst_163 = arith.constant dense<0.000000e+00> : vector<8x8xf32>
    %252 = tpu.matmul %251, %239, %cst_163 {dimension_numbers = #tpu.dot_dimension_numbers<[1], [0], [0], [1], [0, 0, 1, 1], [], []>} : vector<8x16xbf16>, vector<16x8xbf16>, vector<8x8xf32> -> vector<8x8xf32>
    %253 = arith.truncf %252 : vector<8x8xf32> to vector<8x8xbf16>
    %c0_164 = arith.constant 0 : index
    %c0_165 = arith.constant 0 : index
    %c0_166 = arith.constant 0 : index
    %254 = vector.load %arg21[%c0_164, %c0_165, %c0_166] : memref<4x8x32xbf16, #tpu.memory_space<vmem>>, vector<1x8x32xbf16>
    %255 = vector.shape_cast %254 : vector<1x8x32xbf16> to vector<8x32xbf16>
    %cst_167 = arith.constant dense<0.000000e+00> : vector<8x32xf32>
    %256 = tpu.matmul %253, %255, %cst_167 {dimension_numbers = #tpu.dot_dimension_numbers<[1], [0], [0], [1], [0, 0, 1, 1], [], []>} : vector<8x8xbf16>, vector<8x32xbf16>, vector<8x32xf32> -> vector<8x32xf32>
    %257 = arith.addf %215, %256 : vector<8x32xf32>
    %c1_168 = arith.constant 1 : index
    %c0_169 = arith.constant 0 : index
    %c0_170 = arith.constant 0 : index
    %258 = vector.load %arg15[%c1_168, %c0_169, %c0_170] : memref<4x32x8xbf16, #tpu.memory_space<vmem>>, vector<1x32x8xbf16>
    %259 = vector.shape_cast %258 : vector<1x32x8xbf16> to vector<32x8xbf16>
    %cst_171 = arith.constant dense<0.000000e+00> : vector<8x8xf32>
    %260 = tpu.matmul %213, %259, %cst_171 {dimension_numbers = #tpu.dot_dimension_numbers<[1], [0], [0], [1], [0, 0, 1, 1], [], []>} : vector<8x32xbf16>, vector<32x8xbf16>, vector<8x8xf32> -> vector<8x8xf32>
    %c1_172 = arith.constant 1 : index
    %c0_173 = arith.constant 0 : index
    %c0_174 = arith.constant 0 : index
    %261 = vector.load %arg16[%c1_172, %c0_173, %c0_174] : memref<4x1x8xf32, #tpu.memory_space<vmem>>, vector<1x1x8xf32>
    %262 = vector.shape_cast %261 : vector<1x1x8xf32> to vector<1x8xf32>
    %263 = vector.broadcast %262 : vector<1x8xf32> to vector<8x8xf32>
    %264 = arith.addf %260, %263 : vector<8x8xf32>
    %265 = arith.truncf %264 : vector<8x8xf32> to vector<8x8xbf16>
    %c1_175 = arith.constant 1 : index
    %c0_176 = arith.constant 0 : index
    %c0_177 = arith.constant 0 : index
    %266 = vector.load %arg17[%c1_175, %c0_176, %c0_177] : memref<4x32x8xbf16, #tpu.memory_space<vmem>>, vector<1x32x8xbf16>
    %267 = vector.shape_cast %266 : vector<1x32x8xbf16> to vector<32x8xbf16>
    %cst_178 = arith.constant dense<0.000000e+00> : vector<16x8xf32>
    %268 = tpu.matmul %214, %267, %cst_178 {dimension_numbers = #tpu.dot_dimension_numbers<[1], [0], [0], [1], [0, 0, 1, 1], [], []>} : vector<16x32xbf16>, vector<32x8xbf16>, vector<16x8xf32> -> vector<16x8xf32>
    %c1_179 = arith.constant 1 : index
    %c0_180 = arith.constant 0 : index
    %c0_181 = arith.constant 0 : index
    %269 = vector.load %arg18[%c1_179, %c0_180, %c0_181] : memref<4x1x8xf32, #tpu.memory_space<vmem>>, vector<1x1x8xf32>
    %270 = vector.shape_cast %269 : vector<1x1x8xf32> to vector<1x8xf32>
    %271 = vector.broadcast %270 : vector<1x8xf32> to vector<16x8xf32>
    %272 = arith.addf %268, %271 : vector<16x8xf32>
    %273 = arith.truncf %272 : vector<16x8xf32> to vector<16x8xbf16>
    %c1_182 = arith.constant 1 : index
    %c0_183 = arith.constant 0 : index
    %c0_184 = arith.constant 0 : index
    %274 = vector.load %arg19[%c1_182, %c0_183, %c0_184] : memref<4x32x8xbf16, #tpu.memory_space<vmem>>, vector<1x32x8xbf16>
    %275 = vector.shape_cast %274 : vector<1x32x8xbf16> to vector<32x8xbf16>
    %cst_185 = arith.constant dense<0.000000e+00> : vector<16x8xf32>
    %276 = tpu.matmul %214, %275, %cst_185 {dimension_numbers = #tpu.dot_dimension_numbers<[1], [0], [0], [1], [0, 0, 1, 1], [], []>} : vector<16x32xbf16>, vector<32x8xbf16>, vector<16x8xf32> -> vector<16x8xf32>
    %c1_186 = arith.constant 1 : index
    %c0_187 = arith.constant 0 : index
    %c0_188 = arith.constant 0 : index
    %277 = vector.load %arg20[%c1_186, %c0_187, %c0_188] : memref<4x1x8xf32, #tpu.memory_space<vmem>>, vector<1x1x8xf32>
    %278 = vector.shape_cast %277 : vector<1x1x8xf32> to vector<1x8xf32>
    %279 = vector.broadcast %278 : vector<1x8xf32> to vector<16x8xf32>
    %280 = arith.addf %276, %279 : vector<16x8xf32>
    %281 = arith.truncf %280 : vector<16x8xf32> to vector<16x8xbf16>
    %cst_189 = arith.constant dense<0.000000e+00> : vector<8x16xf32>
    %282 = tpu.matmul %265, %273, %cst_189 {dimension_numbers = #tpu.dot_dimension_numbers<[1], [1], [0], [0], [0, 0, 1, 0], [], []>} : vector<8x8xbf16>, vector<16x8xbf16>, vector<8x16xf32> -> vector<8x16xf32>
    %cst_190 = arith.constant dense<0xFF800000> : vector<8xf32>
    %283 = vector.multi_reduction <maximumf>, %282, %cst_190 [1] : vector<8x16xf32> to vector<8xf32>
    %284 = vector.shape_cast %283 : vector<8xf32> to vector<8x1xf32>
    %285 = vector.broadcast %284 : vector<8x1xf32> to vector<8x16xf32>
    %286 = arith.subf %282, %285 : vector<8x16xf32>
    %287 = math.exp %286 : vector<8x16xf32>
    %cst_191 = arith.constant dense<0.000000e+00> : vector<8xf32>
    %288 = vector.multi_reduction <add>, %287, %cst_191 [1] : vector<8x16xf32> to vector<8xf32>
    %289 = vector.shape_cast %288 : vector<8xf32> to vector<8x1xf32>
    %290 = tpu.reciprocal %289 {approx = true} : vector<8x1xf32> -> vector<8x1xf32>
    %291 = vector.broadcast %290 : vector<8x1xf32> to vector<8x16xf32>
    %292 = arith.mulf %287, %291 : vector<8x16xf32>
    %293 = arith.truncf %292 : vector<8x16xf32> to vector<8x16xbf16>
    %cst_192 = arith.constant dense<0.000000e+00> : vector<8x8xf32>
    %294 = tpu.matmul %293, %281, %cst_192 {dimension_numbers = #tpu.dot_dimension_numbers<[1], [0], [0], [1], [0, 0, 1, 1], [], []>} : vector<8x16xbf16>, vector<16x8xbf16>, vector<8x8xf32> -> vector<8x8xf32>
    %295 = arith.truncf %294 : vector<8x8xf32> to vector<8x8xbf16>
    %c1_193 = arith.constant 1 : index
    %c0_194 = arith.constant 0 : index
    %c0_195 = arith.constant 0 : index
    %296 = vector.load %arg21[%c1_193, %c0_194, %c0_195] : memref<4x8x32xbf16, #tpu.memory_space<vmem>>, vector<1x8x32xbf16>
    %297 = vector.shape_cast %296 : vector<1x8x32xbf16> to vector<8x32xbf16>
    %cst_196 = arith.constant dense<0.000000e+00> : vector<8x32xf32>
    %298 = tpu.matmul %295, %297, %cst_196 {dimension_numbers = #tpu.dot_dimension_numbers<[1], [0], [0], [1], [0, 0, 1, 1], [], []>} : vector<8x8xbf16>, vector<8x32xbf16>, vector<8x32xf32> -> vector<8x32xf32>
    %299 = arith.addf %257, %298 : vector<8x32xf32>
    %c2_197 = arith.constant 2 : index
    %c0_198 = arith.constant 0 : index
    %c0_199 = arith.constant 0 : index
    %300 = vector.load %arg15[%c2_197, %c0_198, %c0_199] : memref<4x32x8xbf16, #tpu.memory_space<vmem>>, vector<1x32x8xbf16>
    %301 = vector.shape_cast %300 : vector<1x32x8xbf16> to vector<32x8xbf16>
    %cst_200 = arith.constant dense<0.000000e+00> : vector<8x8xf32>
    %302 = tpu.matmul %213, %301, %cst_200 {dimension_numbers = #tpu.dot_dimension_numbers<[1], [0], [0], [1], [0, 0, 1, 1], [], []>} : vector<8x32xbf16>, vector<32x8xbf16>, vector<8x8xf32> -> vector<8x8xf32>
    %c2_201 = arith.constant 2 : index
    %c0_202 = arith.constant 0 : index
    %c0_203 = arith.constant 0 : index
    %303 = vector.load %arg16[%c2_201, %c0_202, %c0_203] : memref<4x1x8xf32, #tpu.memory_space<vmem>>, vector<1x1x8xf32>
    %304 = vector.shape_cast %303 : vector<1x1x8xf32> to vector<1x8xf32>
    %305 = vector.broadcast %304 : vector<1x8xf32> to vector<8x8xf32>
    %306 = arith.addf %302, %305 : vector<8x8xf32>
    %307 = arith.truncf %306 : vector<8x8xf32> to vector<8x8xbf16>
    %c2_204 = arith.constant 2 : index
    %c0_205 = arith.constant 0 : index
    %c0_206 = arith.constant 0 : index
    %308 = vector.load %arg17[%c2_204, %c0_205, %c0_206] : memref<4x32x8xbf16, #tpu.memory_space<vmem>>, vector<1x32x8xbf16>
    %309 = vector.shape_cast %308 : vector<1x32x8xbf16> to vector<32x8xbf16>
    %cst_207 = arith.constant dense<0.000000e+00> : vector<16x8xf32>
    %310 = tpu.matmul %214, %309, %cst_207 {dimension_numbers = #tpu.dot_dimension_numbers<[1], [0], [0], [1], [0, 0, 1, 1], [], []>} : vector<16x32xbf16>, vector<32x8xbf16>, vector<16x8xf32> -> vector<16x8xf32>
    %c2_208 = arith.constant 2 : index
    %c0_209 = arith.constant 0 : index
    %c0_210 = arith.constant 0 : index
    %311 = vector.load %arg18[%c2_208, %c0_209, %c0_210] : memref<4x1x8xf32, #tpu.memory_space<vmem>>, vector<1x1x8xf32>
    %312 = vector.shape_cast %311 : vector<1x1x8xf32> to vector<1x8xf32>
    %313 = vector.broadcast %312 : vector<1x8xf32> to vector<16x8xf32>
    %314 = arith.addf %310, %313 : vector<16x8xf32>
    %315 = arith.truncf %314 : vector<16x8xf32> to vector<16x8xbf16>
    %c2_211 = arith.constant 2 : index
    %c0_212 = arith.constant 0 : index
    %c0_213 = arith.constant 0 : index
    %316 = vector.load %arg19[%c2_211, %c0_212, %c0_213] : memref<4x32x8xbf16, #tpu.memory_space<vmem>>, vector<1x32x8xbf16>
    %317 = vector.shape_cast %316 : vector<1x32x8xbf16> to vector<32x8xbf16>
    %cst_214 = arith.constant dense<0.000000e+00> : vector<16x8xf32>
    %318 = tpu.matmul %214, %317, %cst_214 {dimension_numbers = #tpu.dot_dimension_numbers<[1], [0], [0], [1], [0, 0, 1, 1], [], []>} : vector<16x32xbf16>, vector<32x8xbf16>, vector<16x8xf32> -> vector<16x8xf32>
    %c2_215 = arith.constant 2 : index
    %c0_216 = arith.constant 0 : index
    %c0_217 = arith.constant 0 : index
    %319 = vector.load %arg20[%c2_215, %c0_216, %c0_217] : memref<4x1x8xf32, #tpu.memory_space<vmem>>, vector<1x1x8xf32>
    %320 = vector.shape_cast %319 : vector<1x1x8xf32> to vector<1x8xf32>
    %321 = vector.broadcast %320 : vector<1x8xf32> to vector<16x8xf32>
    %322 = arith.addf %318, %321 : vector<16x8xf32>
    %323 = arith.truncf %322 : vector<16x8xf32> to vector<16x8xbf16>
    %cst_218 = arith.constant dense<0.000000e+00> : vector<8x16xf32>
    %324 = tpu.matmul %307, %315, %cst_218 {dimension_numbers = #tpu.dot_dimension_numbers<[1], [1], [0], [0], [0, 0, 1, 0], [], []>} : vector<8x8xbf16>, vector<16x8xbf16>, vector<8x16xf32> -> vector<8x16xf32>
    %cst_219 = arith.constant dense<0xFF800000> : vector<8xf32>
    %325 = vector.multi_reduction <maximumf>, %324, %cst_219 [1] : vector<8x16xf32> to vector<8xf32>
    %326 = vector.shape_cast %325 : vector<8xf32> to vector<8x1xf32>
    %327 = vector.broadcast %326 : vector<8x1xf32> to vector<8x16xf32>
    %328 = arith.subf %324, %327 : vector<8x16xf32>
    %329 = math.exp %328 : vector<8x16xf32>
    %cst_220 = arith.constant dense<0.000000e+00> : vector<8xf32>
    %330 = vector.multi_reduction <add>, %329, %cst_220 [1] : vector<8x16xf32> to vector<8xf32>
    %331 = vector.shape_cast %330 : vector<8xf32> to vector<8x1xf32>
    %332 = tpu.reciprocal %331 {approx = true} : vector<8x1xf32> -> vector<8x1xf32>
    %333 = vector.broadcast %332 : vector<8x1xf32> to vector<8x16xf32>
    %334 = arith.mulf %329, %333 : vector<8x16xf32>
    %335 = arith.truncf %334 : vector<8x16xf32> to vector<8x16xbf16>
    %cst_221 = arith.constant dense<0.000000e+00> : vector<8x8xf32>
    %336 = tpu.matmul %335, %323, %cst_221 {dimension_numbers = #tpu.dot_dimension_numbers<[1], [0], [0], [1], [0, 0, 1, 1], [], []>} : vector<8x16xbf16>, vector<16x8xbf16>, vector<8x8xf32> -> vector<8x8xf32>
    %337 = arith.truncf %336 : vector<8x8xf32> to vector<8x8xbf16>
    %c2_222 = arith.constant 2 : index
    %c0_223 = arith.constant 0 : index
    %c0_224 = arith.constant 0 : index
    %338 = vector.load %arg21[%c2_222, %c0_223, %c0_224] : memref<4x8x32xbf16, #tpu.memory_space<vmem>>, vector<1x8x32xbf16>
    %339 = vector.shape_cast %338 : vector<1x8x32xbf16> to vector<8x32xbf16>
    %cst_225 = arith.constant dense<0.000000e+00> : vector<8x32xf32>
    %340 = tpu.matmul %337, %339, %cst_225 {dimension_numbers = #tpu.dot_dimension_numbers<[1], [0], [0], [1], [0, 0, 1, 1], [], []>} : vector<8x8xbf16>, vector<8x32xbf16>, vector<8x32xf32> -> vector<8x32xf32>
    %341 = arith.addf %299, %340 : vector<8x32xf32>
    %c3_226 = arith.constant 3 : index
    %c0_227 = arith.constant 0 : index
    %c0_228 = arith.constant 0 : index
    %342 = vector.load %arg15[%c3_226, %c0_227, %c0_228] : memref<4x32x8xbf16, #tpu.memory_space<vmem>>, vector<1x32x8xbf16>
    %343 = vector.shape_cast %342 : vector<1x32x8xbf16> to vector<32x8xbf16>
    %cst_229 = arith.constant dense<0.000000e+00> : vector<8x8xf32>
    %344 = tpu.matmul %213, %343, %cst_229 {dimension_numbers = #tpu.dot_dimension_numbers<[1], [0], [0], [1], [0, 0, 1, 1], [], []>} : vector<8x32xbf16>, vector<32x8xbf16>, vector<8x8xf32> -> vector<8x8xf32>
    %c3_230 = arith.constant 3 : index
    %c0_231 = arith.constant 0 : index
    %c0_232 = arith.constant 0 : index
    %345 = vector.load %arg16[%c3_230, %c0_231, %c0_232] : memref<4x1x8xf32, #tpu.memory_space<vmem>>, vector<1x1x8xf32>
    %346 = vector.shape_cast %345 : vector<1x1x8xf32> to vector<1x8xf32>
    %347 = vector.broadcast %346 : vector<1x8xf32> to vector<8x8xf32>
    %348 = arith.addf %344, %347 : vector<8x8xf32>
    %349 = arith.truncf %348 : vector<8x8xf32> to vector<8x8xbf16>
    %c3_233 = arith.constant 3 : index
    %c0_234 = arith.constant 0 : index
    %c0_235 = arith.constant 0 : index
    %350 = vector.load %arg17[%c3_233, %c0_234, %c0_235] : memref<4x32x8xbf16, #tpu.memory_space<vmem>>, vector<1x32x8xbf16>
    %351 = vector.shape_cast %350 : vector<1x32x8xbf16> to vector<32x8xbf16>
    %cst_236 = arith.constant dense<0.000000e+00> : vector<16x8xf32>
    %352 = tpu.matmul %214, %351, %cst_236 {dimension_numbers = #tpu.dot_dimension_numbers<[1], [0], [0], [1], [0, 0, 1, 1], [], []>} : vector<16x32xbf16>, vector<32x8xbf16>, vector<16x8xf32> -> vector<16x8xf32>
    %c3_237 = arith.constant 3 : index
    %c0_238 = arith.constant 0 : index
    %c0_239 = arith.constant 0 : index
    %353 = vector.load %arg18[%c3_237, %c0_238, %c0_239] : memref<4x1x8xf32, #tpu.memory_space<vmem>>, vector<1x1x8xf32>
    %354 = vector.shape_cast %353 : vector<1x1x8xf32> to vector<1x8xf32>
    %355 = vector.broadcast %354 : vector<1x8xf32> to vector<16x8xf32>
    %356 = arith.addf %352, %355 : vector<16x8xf32>
    %357 = arith.truncf %356 : vector<16x8xf32> to vector<16x8xbf16>
    %c3_240 = arith.constant 3 : index
    %c0_241 = arith.constant 0 : index
    %c0_242 = arith.constant 0 : index
    %358 = vector.load %arg19[%c3_240, %c0_241, %c0_242] : memref<4x32x8xbf16, #tpu.memory_space<vmem>>, vector<1x32x8xbf16>
    %359 = vector.shape_cast %358 : vector<1x32x8xbf16> to vector<32x8xbf16>
    %cst_243 = arith.constant dense<0.000000e+00> : vector<16x8xf32>
    %360 = tpu.matmul %214, %359, %cst_243 {dimension_numbers = #tpu.dot_dimension_numbers<[1], [0], [0], [1], [0, 0, 1, 1], [], []>} : vector<16x32xbf16>, vector<32x8xbf16>, vector<16x8xf32> -> vector<16x8xf32>
    %c3_244 = arith.constant 3 : index
    %c0_245 = arith.constant 0 : index
    %c0_246 = arith.constant 0 : index
    %361 = vector.load %arg20[%c3_244, %c0_245, %c0_246] : memref<4x1x8xf32, #tpu.memory_space<vmem>>, vector<1x1x8xf32>
    %362 = vector.shape_cast %361 : vector<1x1x8xf32> to vector<1x8xf32>
    %363 = vector.broadcast %362 : vector<1x8xf32> to vector<16x8xf32>
    %364 = arith.addf %360, %363 : vector<16x8xf32>
    %365 = arith.truncf %364 : vector<16x8xf32> to vector<16x8xbf16>
    %cst_247 = arith.constant dense<0.000000e+00> : vector<8x16xf32>
    %366 = tpu.matmul %349, %357, %cst_247 {dimension_numbers = #tpu.dot_dimension_numbers<[1], [1], [0], [0], [0, 0, 1, 0], [], []>} : vector<8x8xbf16>, vector<16x8xbf16>, vector<8x16xf32> -> vector<8x16xf32>
    %cst_248 = arith.constant dense<0xFF800000> : vector<8xf32>
    %367 = vector.multi_reduction <maximumf>, %366, %cst_248 [1] : vector<8x16xf32> to vector<8xf32>
    %368 = vector.shape_cast %367 : vector<8xf32> to vector<8x1xf32>
    %369 = vector.broadcast %368 : vector<8x1xf32> to vector<8x16xf32>
    %370 = arith.subf %366, %369 : vector<8x16xf32>
    %371 = math.exp %370 : vector<8x16xf32>
    %cst_249 = arith.constant dense<0.000000e+00> : vector<8xf32>
    %372 = vector.multi_reduction <add>, %371, %cst_249 [1] : vector<8x16xf32> to vector<8xf32>
    %373 = vector.shape_cast %372 : vector<8xf32> to vector<8x1xf32>
    %374 = tpu.reciprocal %373 {approx = true} : vector<8x1xf32> -> vector<8x1xf32>
    %375 = vector.broadcast %374 : vector<8x1xf32> to vector<8x16xf32>
    %376 = arith.mulf %371, %375 : vector<8x16xf32>
    %377 = arith.truncf %376 : vector<8x16xf32> to vector<8x16xbf16>
    %cst_250 = arith.constant dense<0.000000e+00> : vector<8x8xf32>
    %378 = tpu.matmul %377, %365, %cst_250 {dimension_numbers = #tpu.dot_dimension_numbers<[1], [0], [0], [1], [0, 0, 1, 1], [], []>} : vector<8x16xbf16>, vector<16x8xbf16>, vector<8x8xf32> -> vector<8x8xf32>
    %379 = arith.truncf %378 : vector<8x8xf32> to vector<8x8xbf16>
    %c3_251 = arith.constant 3 : index
    %c0_252 = arith.constant 0 : index
    %c0_253 = arith.constant 0 : index
    %380 = vector.load %arg21[%c3_251, %c0_252, %c0_253] : memref<4x8x32xbf16, #tpu.memory_space<vmem>>, vector<1x8x32xbf16>
    %381 = vector.shape_cast %380 : vector<1x8x32xbf16> to vector<8x32xbf16>
    %cst_254 = arith.constant dense<0.000000e+00> : vector<8x32xf32>
    %382 = tpu.matmul %379, %381, %cst_254 {dimension_numbers = #tpu.dot_dimension_numbers<[1], [0], [0], [1], [0, 0, 1, 1], [], []>} : vector<8x8xbf16>, vector<8x32xbf16>, vector<8x32xf32> -> vector<8x32xf32>
    %383 = arith.addf %341, %382 : vector<8x32xf32>
    %384 = vector.broadcast %210 : vector<1x32xf32> to vector<8x32xf32>
    %385 = arith.addf %383, %384 : vector<8x32xf32>
    %386 = arith.addf %385, %204 : vector<8x32xf32>
    %cst_255 = arith.constant dense<0.000000e+00> : vector<8xf32>
    %387 = vector.multi_reduction <add>, %386, %cst_255 [1] : vector<8x32xf32> to vector<8xf32>
    %388 = vector.shape_cast %387 : vector<8xf32> to vector<8x1xf32>
    %cst_256 = arith.constant 3.200000e+01 : f32
    %389 = vector.broadcast %cst_256 : f32 to vector<8x1xf32>
    %390 = arith.divf %388, %389 : vector<8x1xf32>
    %391 = vector.broadcast %390 : vector<8x1xf32> to vector<8x32xf32>
    %392 = arith.subf %386, %391 : vector<8x32xf32>
    %393 = arith.mulf %392, %392 : vector<8x32xf32>
    %cst_257 = arith.constant dense<0.000000e+00> : vector<8xf32>
    %394 = vector.multi_reduction <add>, %393, %cst_257 [1] : vector<8x32xf32> to vector<8xf32>
    %395 = vector.shape_cast %394 : vector<8xf32> to vector<8x1xf32>
    %cst_258 = arith.constant 3.200000e+01 : f32
    %396 = vector.broadcast %cst_258 : f32 to vector<8x1xf32>
    %397 = arith.divf %395, %396 : vector<8x1xf32>
    %398 = vector.broadcast %390 : vector<8x1xf32> to vector<8x32xf32>
    %399 = arith.subf %386, %398 : vector<8x32xf32>
    %cst_259 = arith.constant 9.99999974E-6 : f32
    %400 = vector.broadcast %cst_259 : f32 to vector<8x1xf32>
    %401 = arith.addf %397, %400 : vector<8x1xf32>
    %402 = math.rsqrt %401 : vector<8x1xf32>
    %403 = vector.broadcast %402 : vector<8x1xf32> to vector<8x32xf32>
    %404 = arith.mulf %399, %403 : vector<8x32xf32>
    %405 = vector.broadcast %211 : vector<1x32xf32> to vector<8x32xf32>
    %406 = arith.mulf %404, %405 : vector<8x32xf32>
    %407 = vector.broadcast %212 : vector<1x32xf32> to vector<8x32xf32>
    %408 = arith.addf %406, %407 : vector<8x32xf32>
    %409 = vector.shape_cast %250 : vector<8x16xf32> to vector<1x8x16xf32>
    %410 = vector.shape_cast %292 : vector<8x16xf32> to vector<1x8x16xf32>
    %411 = vector.shape_cast %334 : vector<8x16xf32> to vector<1x8x16xf32>
    %412 = vector.shape_cast %376 : vector<8x16xf32> to vector<1x8x16xf32>
    %413 = tpu.concatenate %409, %410, %411, %412 in 0 : vector<1x8x16xf32>, vector<1x8x16xf32>, vector<1x8x16xf32>, vector<1x8x16xf32> -> vector<4x8x16xf32>
    %414 = arith.truncf %408 : vector<8x32xf32> to vector<8x32xbf16>
    %c0_260 = arith.constant 0 : index
    %c0_261 = arith.constant 0 : index
    %415 = vector.load %arg25[%c0_260, %c0_261] : memref<32x64xbf16, #tpu.memory_space<vmem>>, vector<32x64xbf16>
    %cst_262 = arith.constant dense<0.000000e+00> : vector<8x64xf32>
    %416 = tpu.matmul %414, %415, %cst_262 {dimension_numbers = #tpu.dot_dimension_numbers<[1], [0], [0], [1], [0, 0, 1, 1], [], []>} : vector<8x32xbf16>, vector<32x64xbf16>, vector<8x64xf32> -> vector<8x64xf32>
    %c0_263 = arith.constant 0 : index
    %c0_264 = arith.constant 0 : index
    %417 = vector.load %arg26[%c0_263, %c0_264] : memref<1x64xf32, #tpu.memory_space<vmem>>, vector<1x64xf32>
    %418 = vector.broadcast %417 : vector<1x64xf32> to vector<8x64xf32>
    %419 = arith.addf %416, %418 : vector<8x64xf32>
    %cst_265 = arith.constant 0.000000e+00 : f32
    %420 = vector.broadcast %cst_265 : f32 to vector<8x64xf32>
    %421 = arith.maximumf %419, %420 : vector<8x64xf32>
    %422 = arith.truncf %421 : vector<8x64xf32> to vector<8x64xbf16>
    %c0_266 = arith.constant 0 : index
    %c0_267 = arith.constant 0 : index
    %423 = vector.load %arg27[%c0_266, %c0_267] : memref<64x32xbf16, #tpu.memory_space<vmem>>, vector<64x32xbf16>
    %cst_268 = arith.constant dense<0.000000e+00> : vector<8x32xf32>
    %424 = tpu.matmul %422, %423, %cst_268 {dimension_numbers = #tpu.dot_dimension_numbers<[1], [0], [0], [1], [0, 0, 1, 1], [], []>} : vector<8x64xbf16>, vector<64x32xbf16>, vector<8x32xf32> -> vector<8x32xf32>
    %c0_269 = arith.constant 0 : index
    %c0_270 = arith.constant 0 : index
    %425 = vector.load %arg28[%c0_269, %c0_270] : memref<1x32xf32, #tpu.memory_space<vmem>>, vector<1x32xf32>
    %426 = vector.broadcast %425 : vector<1x32xf32> to vector<8x32xf32>
    %427 = arith.addf %424, %426 : vector<8x32xf32>
    %428 = arith.addf %427, %408 : vector<8x32xf32>
    %c0_271 = arith.constant 0 : index
    %c0_272 = arith.constant 0 : index
    %429 = vector.load %arg29[%c0_271, %c0_272] : memref<1x32xf32, #tpu.memory_space<vmem>>, vector<1x32xf32>
    %c0_273 = arith.constant 0 : index
    %c0_274 = arith.constant 0 : index
    %430 = vector.load %arg30[%c0_273, %c0_274] : memref<1x32xf32, #tpu.memory_space<vmem>>, vector<1x32xf32>
    %cst_275 = arith.constant dense<0.000000e+00> : vector<8xf32>
    %431 = vector.multi_reduction <add>, %428, %cst_275 [1] : vector<8x32xf32> to vector<8xf32>
    %432 = vector.shape_cast %431 : vector<8xf32> to vector<8x1xf32>
    %cst_276 = arith.constant 3.200000e+01 : f32
    %433 = vector.broadcast %cst_276 : f32 to vector<8x1xf32>
    %434 = arith.divf %432, %433 : vector<8x1xf32>
    %435 = vector.broadcast %434 : vector<8x1xf32> to vector<8x32xf32>
    %436 = arith.subf %428, %435 : vector<8x32xf32>
    %437 = arith.mulf %436, %436 : vector<8x32xf32>
    %cst_277 = arith.constant dense<0.000000e+00> : vector<8xf32>
    %438 = vector.multi_reduction <add>, %437, %cst_277 [1] : vector<8x32xf32> to vector<8xf32>
    %439 = vector.shape_cast %438 : vector<8xf32> to vector<8x1xf32>
    %cst_278 = arith.constant 3.200000e+01 : f32
    %440 = vector.broadcast %cst_278 : f32 to vector<8x1xf32>
    %441 = arith.divf %439, %440 : vector<8x1xf32>
    %442 = vector.broadcast %434 : vector<8x1xf32> to vector<8x32xf32>
    %443 = arith.subf %428, %442 : vector<8x32xf32>
    %cst_279 = arith.constant 9.99999974E-6 : f32
    %444 = vector.broadcast %cst_279 : f32 to vector<8x1xf32>
    %445 = arith.addf %441, %444 : vector<8x1xf32>
    %446 = math.rsqrt %445 : vector<8x1xf32>
    %447 = vector.broadcast %446 : vector<8x1xf32> to vector<8x32xf32>
    %448 = arith.mulf %443, %447 : vector<8x32xf32>
    %449 = vector.broadcast %429 : vector<1x32xf32> to vector<8x32xf32>
    %450 = arith.mulf %448, %449 : vector<8x32xf32>
    %451 = vector.broadcast %430 : vector<1x32xf32> to vector<8x32xf32>
    %452 = arith.addf %450, %451 : vector<8x32xf32>
    %c0_280 = arith.constant 0 : index
    %c0_281 = arith.constant 0 : index
    %c0_282 = arith.constant 0 : index
    %453 = vector.load %arg31[%c0_280, %c0_281, %c0_282] : memref<1x8x32xf32, #tpu.memory_space<vmem>>, vector<1x8x32xf32>
    %454 = vector.shape_cast %453 : vector<1x8x32xf32> to vector<8x32xf32>
    %455 = vector.shape_cast %452 : vector<8x32xf32> to vector<1x8x32xf32>
    tpu.vector_store %arg31[%c0_280, %c0_281, %c0_282], %455 {strides = array<i32>} : memref<1x8x32xf32, #tpu.memory_space<vmem>>, vector<1x8x32xf32>,
    %c0_283 = arith.constant 0 : index
    %c0_284 = arith.constant 0 : index
    %c0_285 = arith.constant 0 : index
    %c0_286 = arith.constant 0 : index
    %456 = vector.load %arg32[%c0_283, %c0_284, %c0_285, %c0_286] : memref<1x4x8x8xf32, #tpu.memory_space<vmem>>, vector<1x4x8x8xf32>
    %457 = vector.shape_cast %456 : vector<1x4x8x8xf32> to vector<4x8x8xf32>
    %458 = vector.shape_cast %209 : vector<4x8x8xf32> to vector<1x4x8x8xf32>
    tpu.vector_store %arg32[%c0_283, %c0_284, %c0_285, %c0_286], %458 {strides = array<i32>} : memref<1x4x8x8xf32, #tpu.memory_space<vmem>>, vector<1x4x8x8xf32>,
    %c0_287 = arith.constant 0 : index
    %c0_288 = arith.constant 0 : index
    %c0_289 = arith.constant 0 : index
    %c0_290 = arith.constant 0 : index
    %459 = vector.load %arg33[%c0_287, %c0_288, %c0_289, %c0_290] : memref<1x4x8x16xf32, #tpu.memory_space<vmem>>, vector<1x4x8x16xf32>
    %460 = vector.shape_cast %459 : vector<1x4x8x16xf32> to vector<4x8x16xf32>
    %461 = vector.shape_cast %413 : vector<4x8x16xf32> to vector<1x4x8x16xf32>
    tpu.vector_store %arg33[%c0_287, %c0_288, %c0_289, %c0_290], %461 {strides = array<i32>} : memref<1x4x8x16xf32, #tpu.memory_space<vmem>>, vector<1x4x8x16xf32>,
    return
  }
  func.func @transform_0(%arg0: i32, %arg1: i32) -> (i32, i32, i32) {
    %c0_i32 = arith.constant 0 : i32
    %c0_i32_0 = arith.constant 0 : i32
    return %arg0, %arg1, %c0_i32 : i32, i32, i32
  }
  func.func @transform_1(%arg0: i32, %arg1: i32) -> (i32, i32, i32) {
    %c0_i32 = arith.constant 0 : i32
    %c0_i32_0 = arith.constant 0 : i32
    %c0_i32_1 = arith.constant 0 : i32
    return %arg0, %c0_i32, %c0_i32_0 : i32, i32, i32
  }
  func.func @transform_2(%arg0: i32, %arg1: i32) -> (i32, i32, i32) {
    %c0_i32 = arith.constant 0 : i32
    %c0_i32_0 = arith.constant 0 : i32
    %c0_i32_1 = arith.constant 0 : i32
    return %arg0, %c0_i32, %c0_i32_0 : i32, i32, i32
  }
  func.func @transform_3(%arg0: i32, %arg1: i32) -> (i32, i32, i32) {
    %c0_i32 = arith.constant 0 : i32
    %c0_i32_0 = arith.constant 0 : i32
    %c0_i32_1 = arith.constant 0 : i32
    %c0_i32_2 = arith.constant 0 : i32
    return %c0_i32, %c0_i32_0, %c0_i32_1 : i32, i32, i32
  }
  func.func @transform_4(%arg0: i32, %arg1: i32) -> (i32, i32, i32) {
    %c0_i32 = arith.constant 0 : i32
    %c0_i32_0 = arith.constant 0 : i32
    %c0_i32_1 = arith.constant 0 : i32
    %c0_i32_2 = arith.constant 0 : i32
    return %c0_i32, %c0_i32_0, %c0_i32_1 : i32, i32, i32
  }
  func.func @transform_5(%arg0: i32, %arg1: i32) -> (i32, i32, i32) {
    %c0_i32 = arith.constant 0 : i32
    %c0_i32_0 = arith.constant 0 : i32
    %c0_i32_1 = arith.constant 0 : i32
    %c0_i32_2 = arith.constant 0 : i32
    return %c0_i32, %c0_i32_0, %c0_i32_1 : i32, i32, i32
  }
  func.func @transform_6(%arg0: i32, %arg1: i32) -> (i32, i32, i32) {
    %c0_i32 = arith.constant 0 : i32
    %c0_i32_0 = arith.constant 0 : i32
    %c0_i32_1 = arith.constant 0 : i32
    %c0_i32_2 = arith.constant 0 : i32
    return %c0_i32, %c0_i32_0, %c0_i32_1 : i32, i32, i32
  }
  func.func @transform_7(%arg0: i32, %arg1: i32) -> (i32, i32, i32) {
    %c0_i32 = arith.constant 0 : i32
    %c0_i32_0 = arith.constant 0 : i32
    %c0_i32_1 = arith.constant 0 : i32
    %c0_i32_2 = arith.constant 0 : i32
    return %c0_i32, %c0_i32_0, %c0_i32_1 : i32, i32, i32
  }
  func.func @transform_8(%arg0: i32, %arg1: i32) -> (i32, i32, i32) {
    %c0_i32 = arith.constant 0 : i32
    %c0_i32_0 = arith.constant 0 : i32
    %c0_i32_1 = arith.constant 0 : i32
    %c0_i32_2 = arith.constant 0 : i32
    return %c0_i32, %c0_i32_0, %c0_i32_1 : i32, i32, i32
  }
  func.func @transform_9(%arg0: i32, %arg1: i32) -> (i32, i32, i32) {
    %c0_i32 = arith.constant 0 : i32
    %c0_i32_0 = arith.constant 0 : i32
    %c0_i32_1 = arith.constant 0 : i32
    %c0_i32_2 = arith.constant 0 : i32
    return %c0_i32, %c0_i32_0, %c0_i32_1 : i32, i32, i32
  }
  func.func @transform_10(%arg0: i32, %arg1: i32) -> (i32, i32) {
    %c0_i32 = arith.constant 0 : i32
    %c0_i32_0 = arith.constant 0 : i32
    %c0_i32_1 = arith.constant 0 : i32
    return %c0_i32, %c0_i32_0 : i32, i32
  }
  func.func @transform_11(%arg0: i32, %arg1: i32) -> (i32, i32) {
    %c0_i32 = arith.constant 0 : i32
    %c0_i32_0 = arith.constant 0 : i32
    %c0_i32_1 = arith.constant 0 : i32
    return %c0_i32, %c0_i32_0 : i32, i32
  }
  func.func @transform_12(%arg0: i32, %arg1: i32) -> (i32, i32) {
    %c0_i32 = arith.constant 0 : i32
    %c0_i32_0 = arith.constant 0 : i32
    %c0_i32_1 = arith.constant 0 : i32
    return %c0_i32, %c0_i32_0 : i32, i32
  }
  func.func @transform_13(%arg0: i32, %arg1: i32) -> (i32, i32, i32) {
    %c0_i32 = arith.constant 0 : i32
    %c0_i32_0 = arith.constant 0 : i32
    %c0_i32_1 = arith.constant 0 : i32
    %c0_i32_2 = arith.constant 0 : i32
    return %c0_i32, %c0_i32_0, %c0_i32_1 : i32, i32, i32
  }
  func.func @transform_14(%arg0: i32, %arg1: i32) -> (i32, i32, i32) {
    %c0_i32 = arith.constant 0 : i32
    %c0_i32_0 = arith.constant 0 : i32
    %c0_i32_1 = arith.constant 0 : i32
    %c0_i32_2 = arith.constant 0 : i32
    return %c0_i32, %c0_i32_0, %c0_i32_1 : i32, i32, i32
  }
  func.func @transform_15(%arg0: i32, %arg1: i32) -> (i32, i32, i32) {
    %c0_i32 = arith.constant 0 : i32
    %c0_i32_0 = arith.constant 0 : i32
    %c0_i32_1 = arith.constant 0 : i32
    %c0_i32_2 = arith.constant 0 : i32
    return %c0_i32, %c0_i32_0, %c0_i32_1 : i32, i32, i32
  }
  func.func @transform_16(%arg0: i32, %arg1: i32) -> (i32, i32, i32) {
    %c0_i32 = arith.constant 0 : i32
    %c0_i32_0 = arith.constant 0 : i32
    %c0_i32_1 = arith.constant 0 : i32
    %c0_i32_2 = arith.constant 0 : i32
    return %c0_i32, %c0_i32_0, %c0_i32_1 : i32, i32, i32
  }
  func.func @transform_17(%arg0: i32, %arg1: i32) -> (i32, i32, i32) {
    %c0_i32 = arith.constant 0 : i32
    %c0_i32_0 = arith.constant 0 : i32
    %c0_i32_1 = arith.constant 0 : i32
    %c0_i32_2 = arith.constant 0 : i32
    return %c0_i32, %c0_i32_0, %c0_i32_1 : i32, i32, i32
  }
  func.func @transform_18(%arg0: i32, %arg1: i32) -> (i32, i32, i32) {
    %c0_i32 = arith.constant 0 : i32
    %c0_i32_0 = arith.constant 0 : i32
    %c0_i32_1 = arith.constant 0 : i32
    %c0_i32_2 = arith.constant 0 : i32
    return %c0_i32, %c0_i32_0, %c0_i32_1 : i32, i32, i32
  }
  func.func @transform_19(%arg0: i32, %arg1: i32) -> (i32, i32, i32) {
    %c0_i32 = arith.constant 0 : i32
    %c0_i32_0 = arith.constant 0 : i32
    %c0_i32_1 = arith.constant 0 : i32
    %c0_i32_2 = arith.constant 0 : i32
    return %c0_i32, %c0_i32_0, %c0_i32_1 : i32, i32, i32
  }
  func.func @transform_20(%arg0: i32, %arg1: i32) -> (i32, i32) {
    %c0_i32 = arith.constant 0 : i32
    %c0_i32_0 = arith.constant 0 : i32
    %c0_i32_1 = arith.constant 0 : i32
    return %c0_i32, %c0_i32_0 : i32, i32
  }
  func.func @transform_21(%arg0: i32, %arg1: i32) -> (i32, i32) {
    %c0_i32 = arith.constant 0 : i32
    %c0_i32_0 = arith.constant 0 : i32
    %c0_i32_1 = arith.constant 0 : i32
    return %c0_i32, %c0_i32_0 : i32, i32
  }
  func.func @transform_22(%arg0: i32, %arg1: i32) -> (i32, i32) {
    %c0_i32 = arith.constant 0 : i32
    %c0_i32_0 = arith.constant 0 : i32
    %c0_i32_1 = arith.constant 0 : i32
    return %c0_i32, %c0_i32_0 : i32, i32
  }
  func.func @transform_23(%arg0: i32, %arg1: i32) -> (i32, i32) {
    %c0_i32 = arith.constant 0 : i32
    %c0_i32_0 = arith.constant 0 : i32
    %c0_i32_1 = arith.constant 0 : i32
    return %c0_i32, %c0_i32_0 : i32, i32
  }
  func.func @transform_24(%arg0: i32, %arg1: i32) -> (i32, i32) {
    %c0_i32 = arith.constant 0 : i32
    %c0_i32_0 = arith.constant 0 : i32
    %c0_i32_1 = arith.constant 0 : i32
    return %c0_i32, %c0_i32_0 : i32, i32
  }
  func.func @transform_25(%arg0: i32, %arg1: i32) -> (i32, i32) {
    %c0_i32 = arith.constant 0 : i32
    %c0_i32_0 = arith.constant 0 : i32
    %c0_i32_1 = arith.constant 0 : i32
    return %c0_i32, %c0_i32_0 : i32, i32
  }
  func.func @transform_26(%arg0: i32, %arg1: i32) -> (i32, i32) {
    %c0_i32 = arith.constant 0 : i32
    %c0_i32_0 = arith.constant 0 : i32
    %c0_i32_1 = arith.constant 0 : i32
    return %c0_i32, %c0_i32_0 : i32, i32
  }
  func.func @transform_27(%arg0: i32, %arg1: i32) -> (i32, i32) {
    %c0_i32 = arith.constant 0 : i32
    %c0_i32_0 = arith.constant 0 : i32
    %c0_i32_1 = arith.constant 0 : i32
    return %c0_i32, %c0_i32_0 : i32, i32
  }
  func.func @transform_28(%arg0: i32, %arg1: i32) -> (i32, i32) {
    %c0_i32 = arith.constant 0 : i32
    %c0_i32_0 = arith.constant 0 : i32
    %c0_i32_1 = arith.constant 0 : i32
    return %c0_i32, %c0_i32_0 : i32, i32
  }
  func.func @transform_29(%arg0: i32, %arg1: i32) -> (i32, i32, i32) {
    %c0_i32 = arith.constant 0 : i32
    %c0_i32_0 = arith.constant 0 : i32
    return %arg0, %arg1, %c0_i32 : i32, i32, i32
  }
  func.func @transform_30(%arg0: i32, %arg1: i32) -> (i32, i32, i32, i32) {
    %c0_i32 = arith.constant 0 : i32
    %c0_i32_0 = arith.constant 0 : i32
    %c0_i32_1 = arith.constant 0 : i32
    return %arg0, %c0_i32, %arg1, %c0_i32_0 : i32, i32, i32, i32
  }
  func.func @transform_31(%arg0: i32, %arg1: i32) -> (i32, i32, i32, i32) {
    %c0_i32 = arith.constant 0 : i32
    %c0_i32_0 = arith.constant 0 : i32
    %c0_i32_1 = arith.constant 0 : i32
    return %arg0, %c0_i32, %arg1, %c0_i32_0 : i32, i32, i32, i32
  }
}

</mosaic_0001>

<bundles_post_ra>
// kernel: tpu_custom_call.1
= control target key start
LH: loop header
LB: loop body
LE: loop exit
PB: predicated region body
PF: predicated region fallthrough
CT: control target
= control target key end

     0   :  { %s5450_s6 = smov 1   ;;  %s5451_s10 = smov 2   ;;  %s6297_s0 = inlined_call_operand.smem [shape: u32[32], index: -1, kind: input, shape index: {}] }
   0x1   :  { %s5496_s5 = sld [smem:[%s6297_s0]]   ;;  %s5452_s14 = smov 3  }
   0x2   :  { %s5501_s9 = sld [smem:[%s6297_s0 + %s5450_s6]]   ;;  %s5453_s18 = smov 4  }
   0x3   :  { %s5506_s13 = sld [smem:[%s6297_s0 + %s5451_s10]]   ;;  %s5454_s22 = smov 5  }
   0x4   :  { %s5511_s17 = sld [smem:[%s6297_s0 + %s5452_s14]]   ;;  %s5455_s26 = smov 6  }
   0x5   :  { %s5516_s21 = sld [smem:[%s6297_s0 + %s5453_s18]]   ;;  %s5456_s30 = smov 7  }
   0x6   :  { %s5521_s25 = sld [smem:[%s6297_s0 + %s5454_s22]]   ;;  %s5457_s4 = smov 8  }
   0x7   :  { %6323 = sst [smem:[#allocation9_spill]] %s5496_s5  ;;  %s5458_s10 = smov 9  }
   0x8   :  { %6324 = sst [smem:[#allocation10_spill]] %s5501_s9  ;;  %s5459_s15 = smov 10  }
   0x9   :  { %6325 = sst [smem:[#allocation11_spill]] %s5506_s13  ;;  %s5460_s20 = smov 11  }
   0xa   :  { %6326 = sst [smem:[#allocation12_spill]] %s5511_s17  ;;  %s5462_s1 = smov 13  }
   0xb   :  { %s5526_s29 = sld [smem:[%s6297_s0 + %s5455_s26]]   ;;  %s5461_s26 = smov 12  }
   0xc   :  { %s5531_s3 = sld [smem:[%s6297_s0 + %s5456_s30]]   ;;  %s5463_s7 = smov 14  }
   0xd   :  { %s5536_s8 = sld [smem:[%s6297_s0 + %s5457_s4]]   ;;  %s5465_s22 = smov 16  }
   0xe   :  { %s5541_s14 = sld [smem:[%s6297_s0 + %s5458_s10]]   ;;  %s5466_s28 = smov 17  }
   0xf   :  { %s5546_s19 = sld [smem:[%s6297_s0 + %s5459_s15]]   ;;  %s5464_s15 = smov 15  }
  0x10   :  { %s5551_s24 = sld [smem:[%s6297_s0 + %s5460_s20]]  }
  0x11   :  { %s5556_s30 = sld [smem:[%s6297_s0 + %s5461_s26]]  }
  0x12   :  { %6327 = sst [smem:[#allocation13_spill]] %s5531_s3 }
  0x13   :  { %6328 = sst [smem:[#allocation14_spill]] %s5536_s8 }
  0x14   :  { %6329 = sst [smem:[#allocation15_spill]] %s5541_s14 }
  0x15   :  { %6330 = sst [smem:[#allocation16_spill]] %s5546_s19 }
  0x16   :  { %s5561_s6 = sld [smem:[%s6297_s0 + %s5462_s1]]  }
  0x17   :  { %6331 = sst [smem:[#allocation17_spill]] %s5556_s30 }
  0x18   :  { %s5566_s12 = sld [smem:[%s6297_s0 + %s5463_s7]]   ;;  %s5467_s7 = smov 18  }
  0x19   :  { %s5571_s20 = sld [smem:[%s6297_s0 + %s5464_s15]]   ;;  %s5468_s15 = smov 19  }
  0x1a   :  { %s5576_s27 = sld [smem:[%s6297_s0 + %s5465_s22]]   ;;  %s5469_s22 = smov 20  }
  0x1b   :  { %s5581_s4 = sld [smem:[%s6297_s0 + %s5466_s28]]   ;;  %s5470_s28 = smov 21  }
  0x1c   :  { %6332 = sst [smem:[#allocation18_spill]] %s5561_s6 }
  0x1d   :  { %s5591_s30 = sld [smem:[%s6297_s0 + %s5468_s15]]   ;;  %s5472_s15 = smov 23  }
  0x1e   :  { %6333 = sst [smem:[#allocation19_spill]] %s5566_s12 }
  0x1f   :  { %6334 = sst [smem:[#allocation20_spill]] %s5571_s20 }
  0x20   :  { %6335 = sst [smem:[#allocation21_spill]] %s5576_s27 }
  0x21   :  { %6336 = sst [smem:[#allocation22_spill]] %s5581_s4 }
  0x22   :  { %s5586_s12 = sld [smem:[%s6297_s0 + %s5467_s7]]   ;;  %s5471_s7 = smov 22  }
  0x23   :  { %6338 = sst [smem:[#allocation24_spill]] %s5591_s30 }
  0x24   :  { %s5596_s27 = sld [smem:[%s6297_s0 + %s5469_s22]]   ;;  %s5473_s22 = smov 24  }
  0x25   :  { %s5601_s4 = sld [smem:[%s6297_s0 + %s5470_s28]]   ;;  %s5474_s28 = smov 25  }
  0x26   :  { %s5611_s30 = sld [smem:[%s6297_s0 + %s5472_s15]]   ;;  %s5476_s15 = smov 27  }
  0x28   :  { %6337 = sst [smem:[#allocation23_spill]] %s5586_s12 }
  0x29   :  { %s5606_s12 = sld [smem:[%s6297_s0 + %s5471_s7]]   ;;  %s5475_s7 = smov 26  }
  0x2a   :  { %6339 = sst [smem:[#allocation25_spill]] %s5596_s27 }
  0x2b   :  { %6340 = sst [smem:[#allocation26_spill]] %s5601_s4 }
  0x2c   :  { %6342 = sst [smem:[#allocation28_spill]] %s5611_s30 }
  0x2d   :  { %s5616_s27 = sld [smem:[%s6297_s0 + %s5473_s22]]   ;;  %s5477_s22 = smov 28  }
  0x2e   :  { %s5621_s4 = sld [smem:[%s6297_s0 + %s5474_s28]]   ;;  %s5478_s28 = smov 29  }
  0x2f   :  { %6341 = sst [smem:[#allocation27_spill]] %s5606_s12 }
  0x30   :  { %s5626_s12 = sld [smem:[%s6297_s0 + %s5475_s7]]   ;;  %s5479_s7 = smov 30  }
  0x31   :  { %s5631_s30 = sld [smem:[%s6297_s0 + %s5476_s15]]   ;;  %s5480_s15 = smov 31  }
  0x33   :  { %6343 = sst [smem:[#allocation29_spill]] %s5616_s27 }
  0x34   :  { %6344 = sst [smem:[#allocation30_spill]] %s5621_s4 }
  0x35   :  { %s5636_s27 = sld [smem:[%s6297_s0 + %s5477_s22]]  }
  0x36   :  { %6345 = sst [smem:[#allocation31_spill]] %s5626_s12 }
  0x37   :  { %6346 = sst [smem:[#allocation32_spill]] %s5631_s30 }
  0x38   :  { %s5641_s4 = sld [smem:[%s6297_s0 + %s5478_s28]]  }
  0x39   :  { %s5646_s12 = sld [smem:[%s6297_s0 + %s5479_s7]]  }
  0x3a   :  { %s5651_s30 = sld [smem:[%s6297_s0 + %s5480_s15]]  }
  0x3e   :  { %6347 = sst [smem:[#allocation33_spill]] %s5641_s4 }
  0x3f   :  { %6348 = sst [smem:[#allocation34_spill]] %s5646_s12 }
  0x40   :  { %69 = vsyncpa [#allocation3], 0 }
  0x41   :  { %71 = vsyncpa [#allocation3 + $0x1], 0 }
  0x42   :  { %72 = vsyncpa [#allocation5], 0 }
  0x43   :  { %74 = vsyncpa [#allocation5 + $0x1], 0  ;;  %s5653_s22 = smov 0   ;;  %s5655_s23 = smov 0  }
  0x44   :  { %s5657_s26 = smov 0   ;;  %s5659_s28 = smov 0  }
  0x45   :  { %s5661_s1 = smov 0   ;;  %s5663_s2 = smov 0  }
  0x46 LB: > { %s6349_s20 = sld [smem:[#allocation20_spill]]  ;;  %s6350_s12 = sld [smem:[#allocation34_spill]]  ;;  %s5428_s22 = sphi %s5653_s22, %s6380_s22   ;;  %s5448_s2 = sphi %s5663_s2, %s80_s2   ;;  %s5444_s1 = sphi %s5661_s1, %s6384_s1   ;;  %s5440_s28 = sphi %s5659_s28, %s6383_s28   ;;  %s5436_s26 = sphi %s5657_s26, %s6382_s26   ;;  %s5432_s23 = sphi %s5655_s23, %s6381_s23  }
  0x47   : > { %s6351_s17 = sld [smem:[#allocation12_spill]]  ;;  %s6352_s14 = sld [smem:[#allocation15_spill]] }
  0x48   : > { %s6353_s6 = sld [smem:[#allocation18_spill]]  ;;  %s6354_s8 = sld [smem:[#allocation14_spill]] }
  0x49   : > { %s6355_s3 = sld [smem:[#allocation13_spill]]  ;;  %s6307_s0 = sadd.s32 4294967295, %s5448_s2  }
  0x4a   : > { %s6306_s7 = sadd.s32 4294967294, %s5448_s2   ;;  %s92_s10 = sadd.s32 1, %s5444_s1 }
  0x4b   : > { %s727_s11 = sadd.s32 1, %s5436_s26  ;;  %p94_p0 = scmp.ge.s32.totalorder %s92_s10, 2 }
  0x4c   : > { %p737_p1 = scmp.ne.s32.totalorder %s5436_s26, %s5432_s23  ;;  %p738_p2 = scmp.eq.s32.totalorder %s6307_s0, 1 }
  0x4d   : > { %p743_p3 = scmp.ne.s32.totalorder %s5432_s23, %s5428_s22  ;;  %s6386_s10 = smov (%p94_p0, %s92_s10), 0 }
  0x4e   : > { %p5695_p4 = por %p738_p2, %p737_p1  ;;  %p744_p5 = scmp.eq.s32.totalorder %s6306_s7, 1 }
  0x4f   : > { %s722_s16 = ssub.s32 %s5444_s1, %s6386_s10  ;;  %p4379_p6 = scmp.ge.s32.totalorder %s5448_s2, 1 }
  0x50   : > { %p725_p7 = scmp.eq.s32.totalorder %s722_s16, 0  ;;  %p5704_p8 = por %p744_p5, %p743_p3 }
  0x51   : > { %p921_p9 = scmp.lt.s32.totalorder %s5448_s2, 3 }
  0x52   : > { %s5710_s4 = scalar_select %p725_p7, %s5436_s26, %s727_s11  }
  0x53   : > { %p922_p10 = pnand %p4379_p6, %p921_p9 }
  0x54   : > { %v5218_v0 = vld [vmem:[%s5521_s25] sm:$0xff] (!%p922_p10)   ;;  %v5481_v1 = vmov (!%p922_p10), 0.0   ;;  %s6358_s9 = sld [smem:[#allocation10_spill]] (!%p922_p10)  ;;  %s6359_s5 = sld [smem:[#allocation9_spill]] (!%p922_p10)  ;;  %v5219_v2 = vld [vmem:[%s5521_s25 + $0x8] sm:$0xff] (!%p922_p10)   ;;  %vm5482_vm0 = vmmov (!%p922_p10), 0  }
  0x55   : > { %925 = sbr.rel (%p922_p10) target bundleno = 9254 (0x2426), region = 136  ;;  %4770 = vmatprep.subr.bf16.mxu1 (!%p922_p10), %v5481_v1  ;;  %4762 = vmatprep.subr.bf16.mxu0 (!%p922_p10), %v5481_v1  ;;  %v5220_v3 = vld [vmem:[%s6351_s17] sm:$0xff] (!%p922_p10)   ;;  %p1022_p11 = scmp.lt.s32.totalorder (!%p922_p10), %s5440_s28, 1  ;;  %v5221_v4 = vld [vmem:[%s6351_s17 + $0x8] sm:$0xff] (!%p922_p10)   ;;  %vm1071_vm1 = vcmask (!%p922_p10), 261120   ;;  %vm1247_vm2 = vcmask (!%p922_p10), 64512  }
  0x56   : > { %4771 = vmatpush3.bf16.msra.mxu1 (!%p922_p10), %v5218_v0  ;;  %4774 = vmatprep.mubr.msk.bf16.mxu1 (!%p922_p10), %vm5482_vm0, %v5481_v1  ;;  %v4391_v9 = vld [vmem:[%s5526_s29] ss:$0 sm:$0xff] (!%p922_p10)  ;;  %v5223_v25 = vld [vmem:[%s6355_s3 + $0x8] sm:$0xff] (!%p922_p10)   ;;  %vm1309_vm3 = vcmask (!%p922_p10), 1043456   ;;  %v5226_v44 = vld [vmem:[%s6351_s17 + $0x10] sm:$0xff] (!%p922_p10)   ;;  %s6360_s19 = sld [smem:[#allocation16_spill]] (!%p922_p10) }
  0x57   : > { %4772 = vmatprep.subr.bf16.mxu1 (!%p922_p10), %v5481_v1  ;;  %4766 = vmatprep.mubr.msk.bf16.mxu0 (!%p922_p10), %vm5482_vm0, %v5481_v1  ;;  %v4387_v16 = vld [vmem:[%s5516_s21] ss:$0 sm:$0xff] (!%p922_p10)  ;;  %v5227_v45 = vld [vmem:[%s6351_s17 + $0x18] sm:$0xff] (!%p922_p10)   ;;  %v5224_v49 = vld [vmem:[%s5521_s25 + $0x10] sm:$0xff] (!%p922_p10)   ;;  %s6361_s13 = sld [smem:[#allocation11_spill]] (!%p922_p10)  ;;  %vm2743_vm4 = vcmask (!%p922_p10), 130048  }
  0x58   : > { %4763 = vmatpush3.bf16.msra.mxu0 (!%p922_p10), %v5220_v3  ;;  %v5222_v24 = vld [vmem:[%s6355_s3] sm:$0xff] (!%p922_p10)   ;;  %v5225_v51 = vld [vmem:[%s5521_s25 + $0x18] sm:$0xff] (!%p922_p10)   ;;  %vm4042_vm5 = vcmask (!%p922_p10), 523264  }
  0x59   : > { %4764 = vmatprep.subr.bf16.mxu0 (!%p922_p10), %v5481_v1  ;;  %v4395_v39 = vld [vmem:[%s6354_s8] ss:$0 sm:$0xff] (!%p922_p10)  ;;  %v4415_v60 = vld [vmem:[%s5526_s29 + $0x1] ss:$0 sm:$0xff] (!%p922_p10) }
  0x5a   : > { %4773 = vmatpush3.bf16.msra.mxu1 (!%p922_p10), %v5219_v2  ;;  %v4406_v2 = vld [vmem:[%s5516_s21 + $0x1] ss:$0 sm:$0xff] (!%p922_p10) }
  0x5b   : > { %4786 = vmatprep.subr.bf16.mxu1 (!%p922_p10), %v5481_v1 }
  0x5c   : > { %s5724_s11 = scalar_select %p1022_p11, %s5440_s28, 1  ;;  %4765 = vmatpush3.bf16.msra.mxu0 %v5221_v4 }
  0x5d   : > { %4778 = vmatprep.subr.bf16.mxu0 %v5481_v1 }
  0x5e   : > { %s4383_s16 = sshll.u32 %s5724_s11, 3 }
  0x5f   : > { %s1032_s7 = scalar_lea.vmem %s6358_s9, %s4383_s16  ;;  %s1028_s0 = scalar_lea.vmem %s6359_s5, %s4383_s16 }
  0x60   : > { %v1040_v5 = vld [vmem:[%s1032_s7] sm:$0xff]  ;;  %s6362_s5 = sld [smem:[#allocation17_spill]] }
  0x61   : > { %v5732_v6 = vld [vmem:[%s1028_s0] sm:$0xff]  ;;  %v5734_v7 = vpack.c.bf16 %v1040_v5, %v1040_v5  ;;  %s5778_s0 = sand.u32 1, %s5432_s23  }
  0x62   : > { %v5738_v8 = vpack.c.bf16 %v5732_v6, %v5732_v6  ;;  %s6308_s7 = sshll.u32 %s5778_s0, 5 }
  0x63   : > { %4775 = vmatmul.mubr.msk.bf16.vlgmr.msra.gmra.mrb[0].mxu1 %vm1071_vm1, %v5734_v7  ;;  %s5784_s16 = scalar_lea.vmem [#allocation4], %s6308_s7  ;;  %s4631_s7 = sshll.u32 %s5724_s11, 4 }
  0x64   : > { %4767 = vmatmul.mubr.msk.bf16.vlgmr.msra.gmra.mrb[0].mxu0 %vm1071_vm1, %v5738_v8  ;;  %4788 = vmatprep.mubr.msk.bf16.mxu1 %vm5482_vm0, %v5481_v1  ;;  %s6363_s11 = sld [smem:[#allocation21_spill]] }
  0x65   : > { %4782 = vmatprep.mubr.msk.bf16.mxu0 %vm5482_vm0, %v5481_v1  ;;  %4779 = vmatpush3.bf16.msra.mxu0 %v5222_v24 }
  0x66   : > { %4780 = vmatprep.subr.bf16.mxu0 %v5481_v1 }
  0x69   : > { %4781 = vmatpush3.bf16.msra.mxu0 %v5223_v25 }
  0x6a   : > { %4792 = vmatprep.subr.bf16.mxu0 %v5481_v1 }
  0x6c   : > { %4783 = vmatmul.mubr.msk.bf16.vlgmr.msra.gmra.mrb[4].mxu0 %vm1071_vm1, %v5734_v7 }
  0x6d   : > { %4794 = vmatprep.mubr.msk.bf16.mxu0 %vm5482_vm0, %v5481_v1 }
 0x136   : > { %v1176_v10 = vpop.f32.mrb[0].mxu1 }
 0x137   : > { %v1109_v11 = vpop.f32.mrb[0].mxu0  ;;  %v1177_v12 = vadd.f32 %v4391_v9, %v1176_v10  ;;  %v4776_v13 = vpop.f32.mrb[1].mxu1 }
 0x138   : > { %v4768_v14 = vpop.f32.mrb[1].mxu0  ;;  %v1179_v15 = vpop.f32.mrb[2].mxu1  ;;  %v1110_v22 = vadd.f32 %v4387_v16, %v1109_v11  ;;  %v5228_v11 = vld [vmem:[%s6355_s3 + $0x10] sm:$0xff]  }
 0x139   : > { %v1112_v17 = vpop.f32.mrb[2].mxu0  ;;  %v1182_v18 = vpack.c.bf16 %v1177_v12, %v1177_v12  ;;  %v4777_v19 = vpop.f32.mrb[3].mxu1  ;;  %v5229_v12 = vld [vmem:[%s6355_s3 + $0x18] sm:$0xff]  }
 0x13a   : > { %v4769_v20 = vpop.f32.mrb[3].mxu0  ;;  %v1115_v23 = vpack.c.bf16 %v1110_v22, %v1110_v22 }
 0x13b   : > { %v1252_v21 = vsel %vm1247_vm2, %v1182_v18, 0  ;;  %v4424_v18 = vld [vmem:[%s6354_s8 + $0x1] ss:$0 sm:$0xff] }
 0x13c   : > { %4787 = vmatpush3.bf16.xpose.msra.mxu1 %v1252_v21 }
 0x13d   : > { %4798 = vmatprep.subr.bf16.mxu1 %v5481_v1 }
 0x13f   : > { %v1240_v36 = vpop.f32.mrb[4].mxu0 }
 0x140   : > { %v4784_v37 = vpop.f32.mrb[5].mxu0  ;;  %v1241_v41 = vadd.f32 %v4395_v39, %v1240_v36  ;;  %v5230_v39 = vld [vmem:[%s5521_s25 + $0x20] sm:$0xff]  }
 0x141   : > { %v1243_v38 = vpop.f32.mrb[6].mxu0 }
 0x142   : > { %v4785_v40 = vpop.f32.mrb[7].mxu0  ;;  %v1246_v42 = vpack.c.bf16 %v1241_v41, %v1241_v41  ;;  %v5231_v41 = vld [vmem:[%s5521_s25 + $0x28] sm:$0xff]  }
 0x143   : > { %4789 = vmatmul.mubr.msk.bf16.vlgmr.msra.gmra.mrb[4].mxu1 %vm1247_vm2, %v1115_v23 }
 0x144   : > { %4802 = vmatprep.mubr.msk.bf16.mxu1 %vm5482_vm0, %v5481_v1  ;;  %v1311_v43 = vsel %vm1309_vm3, %v1246_v42, 0  ;;  %4799 = vmatpush3.bf16.msra.mxu1 %v5226_v44 }
 0x145   : > { %4793 = vmatpush3.bf16.msra.mxu0 %v1311_v43  ;;  %4800 = vmatprep.subr.bf16.mxu1 %v5481_v1  ;;  %v5232_v43 = vld [vmem:[%s6351_s17 + $0x20] sm:$0xff]  }
 0x146   : > { %4806 = vmatprep.subr.bf16.mxu0 %v5481_v1 }
 0x148   : > { %4801 = vmatpush3.bf16.msra.mxu1 %v5227_v45 }
 0x149   : > { %4814 = vmatprep.subr.bf16.mxu1 %v5481_v1 }
 0x14b   : > { %4803 = vmatmul.mubr.msk.bf16.vlgmr.msra.gmra.mrb[8].mxu1 %vm1071_vm1, %v5738_v8 }
 0x14c   : > { %4818 = vmatprep.mubr.msk.bf16.mxu1 %vm5482_vm0, %v5481_v1  ;;  %4815 = vmatpush3.bf16.msra.mxu1 %v5228_v11 }
 0x14d   : > { %4816 = vmatprep.subr.bf16.mxu1 %v5481_v1 }
 0x150   : > { %4817 = vmatpush3.bf16.msra.mxu1 %v5229_v12 }
 0x151   : > { %4828 = vmatprep.subr.bf16.mxu1 %v5481_v1 }
 0x153   : > { %4819 = vmatmul.mubr.msk.bf16.vlgmr.msra.gmra.mrb[12].mxu1 %vm1071_vm1, %v5734_v7 }
 0x154   : > { %4830 = vmatprep.mubr.msk.bf16.mxu1 %vm5482_vm0, %v5481_v1 }
 0x216   : > { %v1288_v26 = vpop.f32.mrb[4].mxu1 }
 0x217   : > { %v4790_v27 = vpop.f32.mrb[5].mxu1  ;;  %v1294_v28 = vsel %vm1247_vm2, %v1288_v26, -inf }
 0x218   : > { %1295 = vmax.xlane.f32.xlu0 %v1294_v28  ;;  %v1291_v29 = vpop.f32.mrb[6].mxu1 }
 0x219   : > { %v4791_v30 = vpop.f32.mrb[7].mxu1 }
 0x21e   : > { %v1414_v52 = vpop.f32.mrb[8].mxu1 }
 0x21f   : > { %v4804_v53 = vpop.f32.mrb[9].mxu1  ;;  %v1415_v9 = vadd.f32 %v4406_v2, %v1414_v52 }
 0x220   : > { %v1417_v54 = vpop.f32.mrb[10].mxu1  ;;  %v4447_v53 = vld [vmem:[%s5526_s29 + $0x2] ss:$0 sm:$0xff] }
 0x221   : > { %v4805_v55 = vpop.f32.mrb[11].mxu1  ;;  %v1420_v10 = vpack.c.bf16 %v1415_v9, %v1415_v9 }
 0x226   : > { %v1546_v19 = vpop.f32.mrb[12].mxu1 }
 0x227   : > { %v1547_v20 = vadd.f32 %v4424_v18, %v1546_v19  ;;  %v4820_v21 = vpop.f32.mrb[13].mxu1 }
 0x228   : > { %v1549_v22 = vpop.f32.mrb[14].mxu1 }
 0x229   : > { %v1552_v23 = vpack.c.bf16 %v1547_v20, %v1547_v20  ;;  %v4821_v24 = vpop.f32.mrb[15].mxu1 }
 0x22b   : > { %v1615_v25 = vsel %vm1309_vm3, %v1552_v23, 0 }
 0x22c   : > { %4829 = vmatpush3.bf16.msra.mxu1 %v1615_v25 }
 0x22d   : > { %4840 = vmatprep.subr.bf16.mxu1 %v5481_v1 }
 0x2a5   : > { %v1296_v31 = vpop.xlane.xlu0 %1295 }
 0x2a6   : > { %v1297_v32 = vsub.f32 %v1288_v26, %v1296_v31  ;;  %v4430_v31 = vld [vmem:[%s6352_s14 + $0x4] sm:$0xf] }
 0x2a8   : > { %v1298_v33 = vmul.f32 1.442695, %v1297_v32  ;;  %v1664_v32 = vsel %vm1309_vm3, %v4430_v31, 0 }
 0x2aa   : > { %5272 = vpow2.f32 %v1298_v33 }
 0x2b4   : > { %v5273_v34 = vpop.eup %5272 }
 0x2b5   : > { %v1300_v35 = vsel %vm1247_vm2, %v5273_v34, 0.0 }
 0x2b6   : > { %1301 = vadd.xlane.f32.xlu0 %v1300_v35  ;;  %v1354_v35 = vld [vmem:[%s6352_s14] sm:$0xf] }
 0x2b7   : > { %v1710_v38 = vsel %vm1309_vm3, %v1354_v35, 0 }
 0x343   : > { %v1302_v46 = vpop.xlane.xlu0 %1301 }
 0x344   : > { %5274 = vrcp.f32 %v1302_v46 }
 0x34e   : > { %v5275_v47 = vpop.eup %5274 }
 0x34f   : > { %v1304_v48 = vmul.f32 %v5275_v47, %v5273_v34 }
 0x351   : > { %4117 = vst.msk [vmem:[%s5784_s16] sm:$0xff] %vm1247_vm2, %v1304_v48  ;;  %v1305_v50 = vpack.c.bf16 %v1304_v48, %v1304_v48  ;;  %v5233_v48 = vld [vmem:[%s6351_s17 + $0x28] sm:$0xff]  }
 0x353   : > { %4795 = vmatmul.mubr.msk.bf16.vlgmr.msra.gmra.mrb[8].mxu0 %vm1247_vm2, %v1305_v50 }
 0x354   : > { %4807 = vmatpush3.bf16.msra.mxu0 %v5224_v49  ;;  %4810 = vmatprep.mubr.msk.bf16.mxu0 %vm5482_vm0, %v5481_v1 }
 0x355   : > { %4808 = vmatprep.subr.bf16.mxu0 %v5481_v1 }
 0x358   : > { %4809 = vmatpush3.bf16.msra.mxu0 %v5225_v51 }
 0x359   : > { %4822 = vmatprep.subr.bf16.mxu0 %v5481_v1 }
 0x35b   : > { %4811 = vmatmul.mubr.msk.bf16.vlgmr.msra.gmra.mrb[12].mxu0 %vm1071_vm1, %v5734_v7 }
 0x35c   : > { %4824 = vmatprep.mubr.msk.bf16.mxu0 %vm5482_vm0, %v5481_v1 }
 0x426   : > { %v5798_v56 = vpop.f32.mrb[8].mxu0 }
 0x427   : > { %v4796_v57 = vpop.f32.mrb[9].mxu0  ;;  %v1353_v40 = vpack.c.bf16 %v5798_v56, %v5798_v56 }
 0x428   : > { %v1350_v58 = vpop.f32.mrb[10].mxu0 }
 0x429   : > { %v4797_v59 = vpop.f32.mrb[11].mxu0 }
 0x42e   : > { %v1480_v61 = vpop.f32.mrb[12].mxu0 }
 0x42f   : > { %v1481_v62 = vadd.f32 %v4415_v60, %v1480_v61  ;;  %v4812_v63 = vpop.f32.mrb[13].mxu0 }
 0x430   : > { %v1483_v0 = vpop.f32.mrb[14].mxu0 }
 0x431   : > { %v1486_v3 = vpack.c.bf16 %v1481_v62, %v1481_v62  ;;  %v4813_v4 = vpop.f32.mrb[15].mxu0 }
 0x433   : > { %v1557_v5 = vsel %vm1247_vm2, %v1486_v3, 0  ;;  %v4438_v3 = vld [vmem:[%s5516_s21 + $0x2] ss:$0 sm:$0xff] }
 0x434   : > { %4823 = vmatpush3.bf16.xpose.msra.mxu0 %v1557_v5 }
 0x435   : > { %4834 = vmatprep.subr.bf16.mxu0 %v5481_v1 }
 0x43b   : > { %4825 = vmatmul.mubr.msk.bf16.vlgmr.msra.gmra.mrb[16].mxu0 %vm1247_vm2, %v1420_v10 }
 0x43c   : > { %4836 = vmatprep.mubr.msk.bf16.mxu0 %vm5482_vm0, %v5481_v1  ;;  %4835 = vmatpush3.bf16.msra.mxu0 %v1664_v32 }
 0x43d   : > { %4846 = vmatprep.subr.bf16.mxu0 %v5481_v1 }
 0x50e   : > { %v1593_v13 = vpop.f32.mrb[16].mxu0 }
 0x50f   : > { %v4826_v14 = vpop.f32.mrb[17].mxu0  ;;  %v1599_v15 = vsel %vm1247_vm2, %v1593_v13, -inf }
 0x510   : > { %1600 = vmax.xlane.f32.xlu1 %v1599_v15  ;;  %v1596_v16 = vpop.f32.mrb[18].mxu0  ;;  %v5235_v14 = vld [vmem:[%s6355_s3 + $0x28] sm:$0xff]  }
 0x511   : > { %v4827_v17 = vpop.f32.mrb[19].mxu0 }
 0x59d   : > { %v1601_v26 = vpop.xlane.xlu1 %1600 }
 0x59e   : > { %v1602_v27 = vsub.f32 %v1593_v13, %v1601_v26  ;;  %v5234_v13 = vld [vmem:[%s6355_s3 + $0x20] sm:$0xff]  }
 0x5a0   : > { %v1603_v28 = vmul.f32 1.442695, %v1602_v27 }
 0x5a2   : > { %5276 = vpow2.f32 %v1603_v28  ;;  %v4456_v28 = vld [vmem:[%s6354_s8 + $0x2] ss:$0 sm:$0xff] }
 0x5ac   : > { %v5277_v29 = vpop.eup %5276 }
 0x5ad   : > { %v1605_v30 = vsel %vm1247_vm2, %v5277_v29, 0.0 }
 0x5ae   : > { %1606 = vadd.xlane.f32.xlu1 %v1605_v30 }
 0x63b   : > { %v1607_v33 = vpop.xlane.xlu1 %1606 }
 0x63c   : > { %5278 = vrcp.f32 %v1607_v33  ;;  %v4462_v33 = vld [vmem:[%s6352_s14 + $0x8] sm:$0xf] }
 0x646   : > { %v5279_v34 = vpop.eup %5278 }
 0x647   : > { %v1609_v36 = vmul.f32 %v5279_v34, %v5277_v29  ;;  %v2061_v34 = vsel %vm1309_vm3, %v4462_v33, 0 }
 0x649   : > { %4118 = vst.msk [vmem:[%s5784_s16 + $0x8] sm:$0xff] %vm1247_vm2, %v1609_v36  ;;  %v1610_v37 = vpack.c.bf16 %v1609_v36, %v1609_v36 }
 0x64b   : > { %4831 = vmatmul.mubr.msk.bf16.vlgmr.msra.gmra.mrb[16].mxu1 %vm1247_vm2, %v1610_v37 }
 0x64c   : > { %4841 = vmatpush3.bf16.msra.mxu1 %v1710_v38  ;;  %4842 = vmatprep.mubr.msk.bf16.mxu1 %vm5482_vm0, %v5481_v1 }
 0x64d   : > { %4854 = vmatprep.subr.bf16.mxu1 %v5481_v1 }
 0x653   : > { %4843 = vmatmul.mubr.msk.bf16.vlgmr.msra.gmra.mrb[20].mxu1 %vm1247_vm2, %v1353_v40  ;;  %v5239_v40 = vld [vmem:[%s6351_s17 + $0x38] sm:$0xff]  }
 0x654   : > { %4855 = vmatpush3.bf16.msra.mxu1 %v5230_v39  ;;  %4858 = vmatprep.mubr.msk.bf16.mxu1 %vm5482_vm0, %v5481_v1  ;;  %v5238_v39 = vld [vmem:[%s6351_s17 + $0x30] sm:$0xff]  }
 0x655   : > { %4856 = vmatprep.subr.bf16.mxu1 %v5481_v1 }
 0x658   : > { %4857 = vmatpush3.bf16.msra.mxu1 %v5231_v41 }
 0x659   : > { %4870 = vmatprep.subr.bf16.mxu1 %v5481_v1 }
 0x65b   : > { %4859 = vmatmul.mubr.msk.bf16.vlgmr.msra.gmra.mrb[24].mxu1 %vm1071_vm1, %v5734_v7 }
 0x65c   : > { %4872 = vmatprep.mubr.msk.bf16.mxu1 %vm5482_vm0, %v5481_v1 }
 0x71e   : > { %v1651_v42 = vpop.f32.mrb[16].mxu1 }
 0x71f   : > { %v1657_v44 = vpack.c.bf16 %v1651_v42, %v1651_v42  ;;  %v4832_v45 = vpop.f32.mrb[17].mxu1  ;;  %v5236_v42 = vld [vmem:[%s5521_s25 + $0x30] sm:$0xff]  }
 0x720   : > { %v1654_v46 = vpop.f32.mrb[18].mxu1 }
 0x721   : > { %v4833_v47 = vpop.f32.mrb[19].mxu1  ;;  %4837 = vmatmul.mubr.msk.bf16.vlgmr.msra.gmra.mrb[20].mxu0 %vm1247_vm2, %v1657_v44 }
 0x722   : > { %4847 = vmatpush3.bf16.msra.mxu0 %v5232_v43  ;;  %4850 = vmatprep.mubr.msk.bf16.mxu0 %vm5482_vm0, %v5481_v1  ;;  %v5237_v47 = vld [vmem:[%s5521_s25 + $0x38] sm:$0xff]  }
 0x723   : > { %4848 = vmatprep.subr.bf16.mxu0 %v5481_v1 }
 0x726   : > { %v1746_v49 = vpop.f32.mrb[20].mxu1  ;;  %4849 = vmatpush3.bf16.msra.mxu0 %v5233_v48 }
 0x727   : > { %v4844_v50 = vpop.f32.mrb[21].mxu1  ;;  %4862 = vmatprep.subr.bf16.mxu0 %v5481_v1 }
 0x728   : > { %v1749_v51 = vpop.f32.mrb[22].mxu1 }
 0x729   : > { %v4845_v52 = vpop.f32.mrb[23].mxu1  ;;  %4851 = vmatmul.mubr.msk.bf16.vlgmr.msra.gmra.mrb[24].mxu0 %vm1071_vm1, %v5738_v8 }
 0x72a   : > { %4866 = vmatprep.mubr.msk.bf16.mxu0 %vm5482_vm0, %v5481_v1  ;;  %4863 = vmatpush3.bf16.msra.mxu0 %v5234_v13 }
 0x72b   : > { %4864 = vmatprep.subr.bf16.mxu0 %v5481_v1 }
 0x72e   : > { %v1877_v54 = vpop.f32.mrb[24].mxu1  ;;  %4865 = vmatpush3.bf16.msra.mxu0 %v5235_v14 }
 0x72f   : > { %v1878_v55 = vadd.f32 %v4447_v53, %v1877_v54  ;;  %v4860_v56 = vpop.f32.mrb[25].mxu1  ;;  %4876 = vmatprep.subr.bf16.mxu0 %v5481_v1 }
 0x730   : > { %v1880_v57 = vpop.f32.mrb[26].mxu1  ;;  %v4478_v56 = vld [vmem:[%s5526_s29 + $0x3] ss:$0 sm:$0xff] }
 0x731   : > { %v1883_v58 = vpack.c.bf16 %v1878_v55, %v1878_v55  ;;  %v4861_v59 = vpop.f32.mrb[27].mxu1  ;;  %4867 = vmatmul.mubr.msk.bf16.vlgmr.msra.gmra.mrb[28].mxu0 %vm1071_vm1, %v5734_v7 }
 0x732   : > { %4878 = vmatprep.mubr.msk.bf16.mxu0 %vm5482_vm0, %v5481_v1 }
 0x733   : > { %v1954_v60 = vsel %vm1247_vm2, %v1883_v58, 0 }
 0x734   : > { %4871 = vmatpush3.bf16.xpose.msra.mxu1 %v1954_v60 }
 0x735   : > { %4882 = vmatprep.subr.bf16.mxu1 %v5481_v1 }
 0x7f4   : > { %v1700_v61 = vpop.f32.mrb[20].mxu0 }
 0x7f5   : > { %v5858_v62 = vadd.f32 %v1746_v49, %v1700_v61  ;;  %v4838_v63 = vpop.f32.mrb[21].mxu0  ;;  %v4469_v61 = vld [vmem:[%s5516_s21 + $0x3] ss:$0 sm:$0xff] }
 0x7f6   : > { %v1703_v0 = vpop.f32.mrb[22].mxu0 }
 0x7f7   : > { %v4839_v2 = vpop.f32.mrb[23].mxu0 }
 0x7fc   : > { %v1811_v4 = vpop.f32.mrb[24].mxu0 }
 0x7fd   : > { %v1812_v5 = vadd.f32 %v4438_v3, %v1811_v4  ;;  %v4852_v9 = vpop.f32.mrb[25].mxu0  ;;  %v5240_v4 = vld [vmem:[%s6355_s3 + $0x30] sm:$0xff]  }
 0x7fe   : > { %v1814_v10 = vpop.f32.mrb[26].mxu0 }
 0x7ff   : > { %v1817_v11 = vpack.c.bf16 %v1812_v5, %v1812_v5  ;;  %v4853_v12 = vpop.f32.mrb[27].mxu0  ;;  %v5241_v5 = vld [vmem:[%s6355_s3 + $0x38] sm:$0xff]   ;;  %s1037_s3 = scalar_lea.vmem %s6361_s13, %s4631_s7  ;;  %s6366_s7 = sld [smem:[#allocation23_spill]] }
 0x801   : > { %4873 = vmatmul.mubr.msk.bf16.vlgmr.msra.gmra.mrb[28].mxu1 %vm1247_vm2, %v1817_v11 }
 0x802   : > { %4884 = vmatprep.mubr.msk.bf16.mxu1 %vm5482_vm0, %v5481_v1  ;;  %4883 = vmatpush3.bf16.msra.mxu1 %v2061_v34 }
 0x803   : > { %4896 = vmatprep.subr.bf16.mxu1 %v5481_v1 }
 0x804   : > { %v1943_v25 = vpop.f32.mrb[28].mxu0 }
 0x805   : > { %v4868_v26 = vpop.f32.mrb[29].mxu0  ;;  %v1944_v30 = vadd.f32 %v4456_v28, %v1943_v25 }
 0x806   : > { %v1946_v27 = vpop.f32.mrb[30].mxu0  ;;  %v4493_v26 = vld [vmem:[%s6352_s14 + $0xc] sm:$0xf]  ;;  %s5483_s14 = smov [#allocation4]  }
 0x807   : > { %v4869_v29 = vpop.f32.mrb[31].mxu0  ;;  %v1949_v31 = vpack.c.bf16 %v1944_v30, %v1944_v30  ;;  %v2413_v27 = vsel %vm1309_vm3, %v4493_v26, 0 }
 0x809   : > { %v2012_v32 = vsel %vm1309_vm3, %v1949_v31, 0 }
 0x80a   : > { %4877 = vmatpush3.bf16.msra.mxu0 %v2012_v32 }
 0x80b   : > { %4888 = vmatprep.subr.bf16.mxu0 %v5481_v1 }
 0x8d4   : > { %v1990_v15 = vpop.f32.mrb[28].mxu1 }
 0x8d5   : > { %v4874_v16 = vpop.f32.mrb[29].mxu1  ;;  %v1996_v17 = vsel %vm1247_vm2, %v1990_v15, -inf }
 0x8d6   : > { %1997 = vmax.xlane.f32.xlu0 %v1996_v17  ;;  %v1993_v18 = vpop.f32.mrb[30].mxu1 }
 0x8d7   : > { %v4875_v19 = vpop.f32.mrb[31].mxu1 }
 0x963   : > { %v1998_v20 = vpop.xlane.xlu0 %1997 }
 0x964   : > { %v1999_v21 = vsub.f32 %v1990_v15, %v1998_v20 }
 0x966   : > { %v2000_v22 = vmul.f32 1.442695, %v1999_v21  ;;  %v4487_v21 = vld [vmem:[%s6354_s8 + $0x3] ss:$0 sm:$0xff]  ;;  %s6367_s8 = sshll.u32 %s5778_s0, 5 }
 0x967   : > { %s6001_s9 = scalar_lea.vmem [#allocation6], %s6367_s8  ;;  %s6368_s8 = sld [smem:[#allocation24_spill]] }
 0x968   : > { %5280 = vpow2.f32 %v2000_v22 }
 0x972   : > { %v5281_v23 = vpop.eup %5280 }
 0x973   : > { %v2002_v24 = vsel %vm1247_vm2, %v5281_v23, 0.0 }
 0x974   : > { %2003 = vadd.xlane.f32.xlu1 %v2002_v24 }
 0xa01   : > { %v2004_v35 = vpop.xlane.xlu1 %2003 }
 0xa02   : > { %5282 = vrcp.f32 %v2004_v35 }
 0xa0c   : > { %v5283_v36 = vpop.eup %5282 }
 0xa0d   : > { %v2006_v37 = vmul.f32 %v5283_v36, %v5281_v23 }
 0xa0f   : > { %4119 = vst.msk [vmem:[%s5784_s16 + $0x10] sm:$0xff] %vm1247_vm2, %v2006_v37  ;;  %v2007_v38 = vpack.c.bf16 %v2006_v37, %v2006_v37  ;;  %v4495_v37 = vld [vmem:[%s6360_s19] ss:$0 sm:$0xff] }
 0xa11   : > { %4879 = vmatmul.mubr.msk.bf16.vlgmr.msra.gmra.mrb[32].mxu0 %vm1247_vm2, %v2007_v38 }
 0xa12   : > { %4892 = vmatprep.mubr.msk.bf16.mxu0 %vm5482_vm0, %v5481_v1  ;;  %4889 = vmatpush3.bf16.msra.mxu0 %v5238_v39 }
 0xa13   : > { %4890 = vmatprep.subr.bf16.mxu0 %v5481_v1 }
 0xa16   : > { %4891 = vmatpush3.bf16.msra.mxu0 %v5239_v40 }
 0xa17   : > { %4904 = vmatprep.subr.bf16.mxu0 %v5481_v1 }
 0xa19   : > { %4893 = vmatmul.mubr.msk.bf16.vlgmr.msra.gmra.mrb[36].mxu0 %vm1071_vm1, %v5738_v8 }
 0xa1a   : > { %4908 = vmatprep.mubr.msk.bf16.mxu0 %vm5482_vm0, %v5481_v1  ;;  %4905 = vmatpush3.bf16.msra.mxu0 %v5240_v4 }
 0xa1b   : > { %4906 = vmatprep.subr.bf16.mxu0 %v5481_v1 }
 0xa1e   : > { %4907 = vmatpush3.bf16.msra.mxu0 %v5241_v5 }
 0xa1f   : > { %4918 = vmatprep.subr.bf16.mxu0 %v5481_v1 }
 0xa21   : > { %4909 = vmatmul.mubr.msk.bf16.vlgmr.msra.gmra.mrb[40].mxu0 %vm1071_vm1, %v5734_v7 }
 0xa22   : > { %4920 = vmatprep.mubr.msk.bf16.mxu0 %vm5482_vm0, %v5481_v1 }
 0xae4   : > { %v2048_v41 = vpop.f32.mrb[32].mxu0 }
 0xae5   : > { %v2054_v43 = vpack.c.bf16 %v2048_v41, %v2048_v41  ;;  %v4880_v44 = vpop.f32.mrb[33].mxu0 }
 0xae6   : > { %v2051_v45 = vpop.f32.mrb[34].mxu0 }
 0xae7   : > { %v4881_v46 = vpop.f32.mrb[35].mxu0  ;;  %4885 = vmatmul.mubr.msk.bf16.vlgmr.msra.gmra.mrb[32].mxu1 %vm1247_vm2, %v2054_v43 }
 0xae8   : > { %4897 = vmatpush3.bf16.msra.mxu1 %v5236_v42  ;;  %4900 = vmatprep.mubr.msk.bf16.mxu1 %vm5482_vm0, %v5481_v1 }
 0xae9   : > { %4898 = vmatprep.subr.bf16.mxu1 %v5481_v1 }
 0xaec   : > { %4899 = vmatpush3.bf16.msra.mxu1 %v5237_v47  ;;  %v2163_v8 = vpop.f32.mrb[36].mxu0 }
 0xaed   : > { %4912 = vmatprep.subr.bf16.mxu1 %v5481_v1  ;;  %v4894_v48 = vpop.f32.mrb[37].mxu0  ;;  %v2164_v3 = vadd.f32 %v4469_v61, %v2163_v8 }
 0xaee   : > { %v2166_v49 = vpop.f32.mrb[38].mxu0 }
 0xaef   : > { %4901 = vmatmul.mubr.msk.bf16.vlgmr.msra.gmra.mrb[36].mxu1 %vm1071_vm1, %v5734_v7  ;;  %v4895_v50 = vpop.f32.mrb[39].mxu0 }
 0xaf0   : > { %4914 = vmatprep.mubr.msk.bf16.mxu1 %vm5482_vm0, %v5481_v1  ;;  %v5242_v50 = vld [vmem:[%s6349_s20] sm:$0xff]  }
 0xaf4   : > { %v2295_v7 = vpop.f32.mrb[40].mxu0 }
 0xaf5   : > { %v4910_v19 = vpop.f32.mrb[41].mxu0  ;;  %v2296_v23 = vadd.f32 %v4487_v21, %v2295_v7 }
 0xaf6   : > { %v2298_v20 = vpop.f32.mrb[42].mxu0  ;;  %v5246_v19 = vld [vmem:[%s6353_s6 + $0x10] sm:$0xff]  }
 0xaf7   : > { %v4911_v22 = vpop.f32.mrb[43].mxu0  ;;  %v2301_v24 = vpack.c.bf16 %v2296_v23, %v2296_v23 }
 0xaf8   : > { %v5247_v22 = vld [vmem:[%s6353_s6 + $0x18] sm:$0xff]  }
 0xaf9   : > { %v2364_v25 = vsel %vm1309_vm3, %v2301_v24, 0 }
 0xafa   : > { %4919 = vmatpush3.bf16.msra.mxu0 %v2364_v25 }
 0xafb   : > { %4930 = vmatprep.subr.bf16.mxu0 %v5481_v1 }
 0xbba   : > { %v2097_v51 = vpop.f32.mrb[32].mxu1 }
 0xbbb   : > { %v5905_v52 = vadd.f32 %v2097_v51, %v5858_v62  ;;  %v4886_v53 = vpop.f32.mrb[33].mxu1  ;;  %v2169_v62 = vpack.c.bf16 %v2164_v3, %v2164_v3  ;;  %v5243_v51 = vld [vmem:[%s6349_s20 + $0x8] sm:$0xff]  }
 0xbbc   : > { %v2100_v54 = vpop.f32.mrb[34].mxu1 }
 0xbbd   : > { %v4887_v55 = vpop.f32.mrb[35].mxu1  ;;  %v5244_v54 = vld [vmem:[%s6353_s6] sm:$0xff]  }
 0xbbe   : > { %v5245_v55 = vld [vmem:[%s6353_s6 + $0x8] sm:$0xff]  }
 0xbc2   : > { %v2229_v57 = vpop.f32.mrb[36].mxu1 }
 0xbc3   : > { %v2230_v58 = vadd.f32 %v4478_v56, %v2229_v57  ;;  %v4902_v59 = vpop.f32.mrb[37].mxu1 }
 0xbc4   : > { %v2232_v60 = vpop.f32.mrb[38].mxu1 }
 0xbc5   : > { %v2235_v63 = vpack.c.bf16 %v2230_v58, %v2230_v58  ;;  %v4903_v0 = vpop.f32.mrb[39].mxu1  ;;  %v4496_v60 = vld [vmem:[%s5551_s24] ss:$0 sm:$0xff] }
 0xbc7   : > { %v2306_v2 = vsel %vm1247_vm2, %v2235_v63, 0  ;;  %v4497_v63 = vld [vmem:[%s6362_s5] ss:$0 sm:$0xff]  ;;  %s6365_s5 = sld [smem:[#allocation22_spill]] }
 0xbc8   : > { %4913 = vmatpush3.bf16.xpose.msra.mxu1 %v2306_v2 }
 0xbc9   : > { %4924 = vmatprep.subr.bf16.mxu1 %v5481_v1 }
 0xbcd   : > { %v5248_v23 = vld [vmem:[%s6365_s5] sm:$0xff]   ;;  %v5249_v24 = vld [vmem:[%s6365_s5 + $0x8] sm:$0xff]  }
 0xbcf   : > { %4915 = vmatmul.mubr.msk.bf16.vlgmr.msra.gmra.mrb[40].mxu1 %vm1247_vm2, %v2169_v62  ;;  %v4502_v62 = vld [vmem:[%s6363_s11] ss:$0 sm:$0xff] }
 0xbd0   : > { %4926 = vmatprep.mubr.msk.bf16.mxu1 %vm5482_vm0, %v5481_v1  ;;  %4925 = vmatpush3.bf16.msra.mxu1 %v2413_v27 }
 0xbd1   : > { %4938 = vmatprep.subr.bf16.mxu1 %v5481_v1 }
 0xca2   : > { %v2342_v9 = vpop.f32.mrb[40].mxu1 }
 0xca3   : > { %v4916_v10 = vpop.f32.mrb[41].mxu1  ;;  %v2348_v11 = vsel %vm1247_vm2, %v2342_v9, -inf }
 0xca4   : > { %2349 = vmax.xlane.f32.xlu0 %v2348_v11  ;;  %v2345_v12 = vpop.f32.mrb[42].mxu1 }
 0xca5   : > { %v4917_v13 = vpop.f32.mrb[43].mxu1 }
 0xd31   : > { %v2350_v14 = vpop.xlane.xlu0 %2349 }
 0xd32   : > { %v2351_v15 = vsub.f32 %v2342_v9, %v2350_v14 }
 0xd34   : > { %v2352_v16 = vmul.f32 1.442695, %v2351_v15 }
 0xd36   : > { %5284 = vpow2.f32 %v2352_v16 }
 0xd40   : > { %v5285_v17 = vpop.eup %5284 }
 0xd41   : > { %v2354_v18 = vsel %vm1247_vm2, %v5285_v17, 0.0 }
 0xd42   : > { %2355 = vadd.xlane.f32.xlu1 %v2354_v18 }
 0xdcf   : > { %v2356_v28 = vpop.xlane.xlu1 %2355 }
 0xdd0   : > { %5286 = vrcp.f32 %v2356_v28 }
 0xdda   : > { %v5287_v29 = vpop.eup %5286 }
 0xddb   : > { %v2358_v30 = vmul.f32 %v5287_v29, %v5285_v17 }
 0xddd   : > { %4120 = vst.msk [vmem:[%s5784_s16 + $0x18] sm:$0xff] %vm1247_vm2, %v2358_v30  ;;  %v2359_v31 = vpack.c.bf16 %v2358_v30, %v2358_v30 }
 0xddf   : > { %4921 = vmatmul.mubr.msk.bf16.vlgmr.msra.gmra.mrb[44].mxu0 %vm1247_vm2, %v2359_v31 }
 0xde0   : > { %4934 = vmatprep.mubr.msk.bf16.mxu0 %vm5482_vm0, %v5481_v1  ;;  %4931 = vmatpush3.bf16.msra.mxu0 %v5244_v54 }
 0xde1   : > { %4932 = vmatprep.subr.bf16.mxu0 %v5481_v1 }
 0xde4   : > { %4933 = vmatpush3.bf16.msra.mxu0 %v5245_v55 }
 0xde5   : > { %4946 = vmatprep.subr.bf16.mxu0 %v5481_v1 }
 0xeb2   : > { %v2400_v32 = vpop.f32.mrb[44].mxu0 }
 0xeb3   : > { %v2406_v33 = vpack.c.bf16 %v2400_v32, %v2400_v32  ;;  %v4922_v34 = vpop.f32.mrb[45].mxu0 }
 0xeb4   : > { %v2403_v35 = vpop.f32.mrb[46].mxu0 }
 0xeb5   : > { %v4923_v36 = vpop.f32.mrb[47].mxu0  ;;  %4927 = vmatmul.mubr.msk.bf16.vlgmr.msra.gmra.mrb[44].mxu1 %vm1247_vm2, %v2406_v33 }
 0xeb6   : > { %4942 = vmatprep.mubr.msk.bf16.mxu1 %vm5482_vm0, %v5481_v1  ;;  %4939 = vmatpush3.bf16.msra.mxu1 %v5242_v50 }
 0xeb7   : > { %4940 = vmatprep.subr.bf16.mxu1 %v5481_v1 }
 0xeba   : > { %4941 = vmatpush3.bf16.msra.mxu1 %v5243_v51  ;;  %v5251_v51 = vld [vmem:[%s6349_s20 + $0x18] sm:$0xff]  }
 0xebb   : > { %4954 = vmatprep.subr.bf16.mxu1 %v5481_v1 }
 0xf88   : > { %v2449_v38 = vpop.f32.mrb[44].mxu1 }
 0xf89   : > { %v2455_v39 = vadd.f32 %v2449_v38, %v5905_v52  ;;  %v4928_v40 = vpop.f32.mrb[45].mxu1  ;;  %v1042_v52 = vld [vmem:[%s1037_s3 + $0x8] sm:$0xff] }
 0xf8a   : > { %v2452_v41 = vpop.f32.mrb[46].mxu1 }
 0xf8b   : > { %v2462_v42 = vadd.f32 %v4495_v37, %v2455_v39  ;;  %v4929_v43 = vpop.f32.mrb[47].mxu1  ;;  %v4506_v41 = vld [vmem:[%s6366_s7] ss:$0 sm:$0xff] }
 0xf8d   : > { %v2463_v44 = vadd.f32 %v2462_v42, %v5732_v6  ;;  %v1041_v6 = vld [vmem:[%s1037_s3] sm:$0xff]  ;;  %s6364_s3 = sld [smem:[#allocation19_spill]] }
 0xf8e   : > { %v5948_v53 = vpack.c.bf16 %v1042_v52, %v1041_v6 }
 0xf8f   : > { %v2464_v45 = vsel %vm1071_vm1, %v2463_v44, 0.0 }
 0xf90   : > { %2465 = vadd.xlane.f32.xlu0 %v2464_v45  ;;  %4943 = vmatmul.mubr.msk.bf16.vlgmr.msra.gmra.mrb[48].mxu1 %vm1071_vm1, %v5948_v53 }
 0xf91   : > { %4956 = vmatprep.mubr.msk.bf16.mxu1 %vm5482_vm0, %v5481_v1 }
 0xf93   : > { %v4498_v15 = vld [vmem:[%s6364_s3] ss:$0 sm:$0xff] }
0x101d   : > { %v2466_v46 = vpop.xlane.xlu0 %2465 }
0x101e   : > { %v2468_v47 = vmul.f32 0.03125, %v2466_v46 }
0x1020   : > { %v2469_v8 = vsub.f32 %v2463_v44, %v2468_v47 }
0x1022   : > { %v2470_v48 = vmul.f32 %v2469_v8, %v2469_v8 }
0x1024   : > { %v2471_v49 = vsel %vm1071_vm1, %v2470_v48, 0.0 }
0x1025   : > { %2472 = vadd.xlane.f32.xlu1 %v2471_v49  ;;  %v5250_v49 = vld [vmem:[%s6349_s20 + $0x10] sm:$0xff]  }
0x1063   : > { %v2624_v4 = vpop.f32.mrb[48].mxu1 }
0x1064   : > { %v2625_v5 = vadd.f32 %v4502_v62, %v2624_v4  ;;  %v4944_v9 = vpop.f32.mrb[49].mxu1 }
0x1065   : > { %v2627_v10 = vpop.f32.mrb[50].mxu1 }
0x1066   : > { %v2628_v11 = vadd.f32 %v4502_v62, %v2627_v10  ;;  %v4945_v12 = vpop.f32.mrb[51].mxu1  ;;  %v4517_v62 = vld [vmem:[%s6364_s3 + $0x1] ss:$0 sm:$0xff]  ;;  %v5252_v10 = vld [vmem:[%s6365_s5 + $0x10] sm:$0xff]  }
0x1068   : > { %v2631_v13 = vpack.c.bf16 %v2628_v11, %v2625_v5  ;;  %v5253_v11 = vld [vmem:[%s6365_s5 + $0x18] sm:$0xff]  }
0x106a   : > { %v2701_v14 = vsel %vm1247_vm2, %v2631_v13, 0 }
0x106b   : > { %4955 = vmatpush3.bf16.xpose.msra.mxu1 %v2701_v14 }
0x106c   : > { %4966 = vmatprep.subr.bf16.mxu1 %v5481_v1 }
0x10b2   : > { %v2473_v56 = vpop.xlane.xlu1 %2472 }
0x10b3   : > { %v2474_v57 = vmul.f32 0.03125, %v2473_v56  ;;  %v4526_v56 = vld [vmem:[%s6363_s11 + $0x1] ss:$0 sm:$0xff] }
0x10b5   : > { %v2475_v58 = vadd.f32 1e-05, %v2474_v57 }
0x10b7   : > { %5288 = vrsqrt.f32 %v2475_v58 }
0x10c1   : > { %v5289_v59 = vpop.eup %5288 }
0x10c2   : > { %v2477_v61 = vmul.f32 %v5289_v59, %v2469_v8 }
0x10c4   : > { %v2484_v0 = vmul.f32 %v4496_v60, %v2477_v61 }
0x10c6   : > { %v5961_v2 = vadd.f32 %v4497_v63, %v2484_v0 }
0x10c8   : > { %v5965_v3 = vpack.c.bf16 %v5961_v2, %v5961_v2 }
0x10ca   : > { %4935 = vmatmul.mubr.msk.bf16.vlgmr.msra.gmra.mrb[48].mxu0 %vm1071_vm1, %v5965_v3 }
0x10cb   : > { %4950 = vmatprep.mubr.msk.bf16.mxu0 %vm5482_vm0, %v5481_v1  ;;  %4947 = vmatpush3.bf16.msra.mxu0 %v5248_v23  ;;  %v4535_v23 = vld [vmem:[%s6366_s7 + $0x1] ss:$0 sm:$0xff] }
0x10cc   : > { %4948 = vmatprep.subr.bf16.mxu0 %v5481_v1 }
0x10cf   : > { %4949 = vmatpush3.bf16.msra.mxu0 %v5249_v24 }
0x10d0   : > { %4960 = vmatprep.subr.bf16.mxu0 %v5481_v1 }
0x10d2   : > { %4951 = vmatmul.mubr.msk.bf16.vlgmr.msra.gmra.mrb[52].mxu0 %vm1071_vm1, %v5948_v53 }
0x10d3   : > { %4962 = vmatprep.mubr.msk.bf16.mxu0 %vm5482_vm0, %v5481_v1 }
0x119d   : > { %v2557_v16 = vpop.f32.mrb[48].mxu0 }
0x119e   : > { %v2558_v17 = vadd.f32 %v4498_v15, %v2557_v16  ;;  %v4936_v18 = vpop.f32.mrb[49].mxu0 }
0x119f   : > { %v2560_v7 = vpop.f32.mrb[50].mxu0 }
0x11a0   : > { %v2563_v20 = vpack.c.bf16 %v2558_v17, %v2558_v17  ;;  %v4937_v21 = vpop.f32.mrb[51].mxu0 }
0x11a2   : > { %4957 = vmatmul.mubr.msk.bf16.vlgmr.msra.gmra.mrb[52].mxu1 %vm1247_vm2, %v2563_v20 }
0x11a3   : > { %4967 = vmatpush3.bf16.msra.mxu1 %v5246_v19  ;;  %4970 = vmatprep.mubr.msk.bf16.mxu1 %vm5482_vm0, %v5481_v1 }
0x11a4   : > { %4968 = vmatprep.subr.bf16.mxu1 %v5481_v1 }
0x11a5   : > { %v2689_v34 = vpop.f32.mrb[52].mxu0 }
0x11a6   : > { %v4952_v35 = vpop.f32.mrb[53].mxu0  ;;  %v2690_v42 = vadd.f32 %v4506_v41, %v2689_v34 }
0x11a7   : > { %4969 = vmatpush3.bf16.msra.mxu1 %v5247_v22  ;;  %v2692_v43 = vpop.f32.mrb[54].mxu0 }
0x11a8   : > { %4982 = vmatprep.subr.bf16.mxu1 %v5481_v1  ;;  %v4953_v44 = vpop.f32.mrb[55].mxu0  ;;  %v2693_v45 = vadd.f32 %v4506_v41, %v2692_v43  ;;  %v5256_v41 = vld [vmem:[%s6353_s6 + $0x20] sm:$0xff]  }
0x11aa   : > { %4971 = vmatmul.mubr.msk.bf16.vlgmr.msra.gmra.mrb[56].mxu1 %vm1071_vm1, %v5965_v3  ;;  %v2696_v46 = vpack.c.bf16 %v2693_v45, %v2690_v42 }
0x11ab   : > { %4986 = vmatprep.mubr.msk.bf16.mxu1 %vm5482_vm0, %v5481_v1  ;;  %4983 = vmatpush3.bf16.msra.mxu1 %v5252_v10 }
0x11ac   : > { %4961 = vmatpush3.bf16.msra.mxu0 %v2696_v46  ;;  %4984 = vmatprep.subr.bf16.mxu1 %v5481_v1  ;;  %v5257_v46 = vld [vmem:[%s6353_s6 + $0x28] sm:$0xff]  }
0x11ad   : > { %4974 = vmatprep.subr.bf16.mxu0 %v5481_v1 }
0x11af   : > { %4985 = vmatpush3.bf16.msra.mxu1 %v5253_v11 }
0x11b0   : > { %4996 = vmatprep.subr.bf16.mxu1 %v5481_v1 }
0x11b2   : > { %4987 = vmatmul.mubr.msk.bf16.vlgmr.msra.gmra.mrb[60].mxu1 %vm1071_vm1, %v5948_v53 }
0x11b3   : > { %4998 = vmatprep.mubr.msk.bf16.mxu1 %vm5482_vm0, %v5481_v1 }
0x1275   : > { %v2737_v25 = vpop.f32.mrb[52].mxu1 }
0x1276   : > { %v4958_v26 = vpop.f32.mrb[53].mxu1  ;;  %v2744_v27 = vsel %vm2743_vm4, %v2737_v25, -inf }
0x1277   : > { %2745 = vmax.xlane.f32.xlu0 %v2744_v27  ;;  %v2740_v28 = vpop.f32.mrb[54].mxu1 }
0x1278   : > { %v4959_v29 = vpop.f32.mrb[55].mxu1 }
0x1279   : > { %v4541_v29 = vld [vmem:[%s6368_s8 + $0x4] sm:$0xf] }
0x127d   : > { %v2860_v30 = vpop.f32.mrb[56].mxu1 }
0x127e   : > { %v4972_v31 = vpop.f32.mrb[57].mxu1  ;;  %v2861_v5 = vadd.f32 %v4517_v62, %v2860_v30  ;;  %v3109_v30 = vsel %vm1309_vm3, %v4541_v29, 0  ;;  %v4549_v62 = vld [vmem:[%s6364_s3 + $0x2] ss:$0 sm:$0xff] }
0x127f   : > { %v2863_v32 = vpop.f32.mrb[58].mxu1 }
0x1280   : > { %v4973_v33 = vpop.f32.mrb[59].mxu1  ;;  %v2866_v9 = vpack.c.bf16 %v2861_v5, %v2861_v5 }
0x1281   : > { %v2800_v33 = vld [vmem:[%s6368_s8] sm:$0xf] }
0x1285   : > { %v2993_v17 = vpop.f32.mrb[60].mxu1 }
0x1286   : > { %v4988_v18 = vpop.f32.mrb[61].mxu1  ;;  %v2994_v24 = vadd.f32 %v4535_v23, %v2993_v17 }
0x1304   : > { %v2746_v36 = vpop.xlane.xlu0 %2745 }
0x1305   : > { %v2747_v37 = vsub.f32 %v2737_v25, %v2746_v36  ;;  %v2996_v25 = vpop.f32.mrb[62].mxu1  ;;  %v3155_v36 = vsel %vm1309_vm3, %v2800_v33, 0 }
0x1306   : > { %v4989_v26 = vpop.f32.mrb[63].mxu1  ;;  %v2997_v27 = vadd.f32 %v4535_v23, %v2996_v25 }
0x1307   : > { %v2748_v38 = vmul.f32 1.442695, %v2747_v37  ;;  %v5254_v37 = vld [vmem:[%s6349_s20 + $0x20] sm:$0xff]  }
0x1308   : > { %v3000_v28 = vpack.c.bf16 %v2997_v27, %v2994_v24  ;;  %v4567_v26 = vld [vmem:[%s6366_s7 + $0x2] ss:$0 sm:$0xff] }
0x1309   : > { %5290 = vpow2.f32 %v2748_v38 }
0x130a   : > { %4997 = vmatpush3.bf16.msra.mxu1 %v3000_v28 }
0x130b   : > { %5008 = vmatprep.subr.bf16.mxu1 %v5481_v1 }
0x1313   : > { %v5291_v39 = vpop.eup %5290 }
0x1314   : > { %v2750_v40 = vsel %vm2743_vm4, %v5291_v39, 0.0 }
0x1315   : > { %2751 = vadd.xlane.f32.xlu1 %v2750_v40 }
0x13a2   : > { %v2752_v47 = vpop.xlane.xlu1 %2751 }
0x13a3   : > { %5292 = vrcp.f32 %v2752_v47 }
0x13ad   : > { %v5293_v8 = vpop.eup %5292 }
0x13ae   : > { %v2754_v48 = vmul.f32 %v5293_v8, %v5291_v39  ;;  %v5255_v39 = vld [vmem:[%s6349_s20 + $0x28] sm:$0xff]  }
0x13b0   : > { %4121 = vst.msk [vmem:[%s6001_s9] sm:$0xff] %vm2743_vm4, %v2754_v48  ;;  %v2755_v50 = vpack.c.bf16 %v2754_v48, %v2754_v48 }
0x13b2   : > { %4963 = vmatmul.mubr.msk.bf16.vlgmr.msra.gmra.mrb[56].mxu0 %vm2743_vm4, %v2755_v50  ;;  %v4558_v50 = vld [vmem:[%s6363_s11 + $0x2] ss:$0 sm:$0xff] }
0x13b3   : > { %4975 = vmatpush3.bf16.msra.mxu0 %v5250_v49  ;;  %4978 = vmatprep.mubr.msk.bf16.mxu0 %vm5482_vm0, %v5481_v1 }
0x13b4   : > { %4976 = vmatprep.subr.bf16.mxu0 %v5481_v1 }
0x13b7   : > { %4977 = vmatpush3.bf16.msra.mxu0 %v5251_v51 }
0x13b8   : > { %4990 = vmatprep.subr.bf16.mxu0 %v5481_v1 }
0x13ba   : > { %4979 = vmatmul.mubr.msk.bf16.vlgmr.msra.gmra.mrb[60].mxu0 %vm1071_vm1, %v5948_v53 }
0x13bb   : > { %4992 = vmatprep.mubr.msk.bf16.mxu0 %vm5482_vm0, %v5481_v1 }
0x1485   : > { %v6015_v6 = vpop.f32.mrb[56].mxu0 }
0x1486   : > { %v4964_v52 = vpop.f32.mrb[57].mxu0  ;;  %v2799_v38 = vpack.c.bf16 %v6015_v6, %v6015_v6 }
0x1487   : > { %v2796_v54 = vpop.f32.mrb[58].mxu0 }
0x1488   : > { %v4965_v55 = vpop.f32.mrb[59].mxu0 }
0x148d   : > { %v2926_v57 = vpop.f32.mrb[60].mxu0 }
0x148e   : > { %v4980_v58 = vpop.f32.mrb[61].mxu0  ;;  %v2927_v60 = vadd.f32 %v4526_v56, %v2926_v57 }
0x148f   : > { %v2929_v59 = vpop.f32.mrb[62].mxu0 }
0x1490   : > { %v2930_v61 = vadd.f32 %v4526_v56, %v2929_v59  ;;  %v4981_v63 = vpop.f32.mrb[63].mxu0 }
0x1492   : > { %v2933_v0 = vpack.c.bf16 %v2930_v61, %v2927_v60 }
0x1494   : > { %v3005_v4 = vsel %vm1247_vm2, %v2933_v0, 0 }
0x1495   : > { %4991 = vmatpush3.bf16.xpose.msra.mxu0 %v3005_v4 }
0x1496   : > { %5002 = vmatprep.subr.bf16.mxu0 %v5481_v1 }
0x149c   : > { %4993 = vmatmul.mubr.msk.bf16.vlgmr.msra.gmra.mrb[64].mxu0 %vm1247_vm2, %v2866_v9 }
0x149d   : > { %5004 = vmatprep.mubr.msk.bf16.mxu0 %vm5482_vm0, %v5481_v1  ;;  %5003 = vmatpush3.bf16.msra.mxu0 %v3109_v30 }
0x149e   : > { %5014 = vmatprep.subr.bf16.mxu0 %v5481_v1 }
0x156f   : > { %v3041_v12 = vpop.f32.mrb[64].mxu0 }
0x1570   : > { %v4994_v13 = vpop.f32.mrb[65].mxu0  ;;  %v3047_v14 = vsel %vm2743_vm4, %v3041_v12, -inf }
0x1571   : > { %3048 = vmax.xlane.f32.xlu0 %v3047_v14  ;;  %v3044_v15 = vpop.f32.mrb[66].mxu0  ;;  %v5258_v13 = vld [vmem:[%s6365_s5 + $0x20] sm:$0xff]   ;;  %v5259_v14 = vld [vmem:[%s6365_s5 + $0x28] sm:$0xff]  }
0x1572   : > { %v4995_v16 = vpop.f32.mrb[67].mxu0 }
0x15fe   : > { %v3049_v7 = vpop.xlane.xlu0 %3048 }
0x15ff   : > { %v3050_v19 = vsub.f32 %v3041_v12, %v3049_v7 }
0x1601   : > { %v3051_v20 = vmul.f32 1.442695, %v3050_v19 }
0x1603   : > { %5294 = vpow2.f32 %v3051_v20 }
0x160d   : > { %v5295_v21 = vpop.eup %5294 }
0x160e   : > { %v3053_v22 = vsel %vm2743_vm4, %v5295_v21, 0.0 }
0x160f   : > { %3054 = vadd.xlane.f32.xlu1 %v3053_v22 }
0x169c   : > { %v3055_v31 = vpop.xlane.xlu1 %3054 }
0x169d   : > { %5296 = vrcp.f32 %v3055_v31 }
0x16a7   : > { %v5297_v32 = vpop.eup %5296 }
0x16a8   : > { %v3057_v34 = vmul.f32 %v5297_v32, %v5295_v21  ;;  %v4573_v32 = vld [vmem:[%s6368_s8 + $0x8] sm:$0xf] }
0x16a9   : > { %v3505_v33 = vsel %vm1309_vm3, %v4573_v32, 0 }
0x16aa   : > { %4122 = vst.msk [vmem:[%s6001_s9 + $0x8] sm:$0xff] %vm2743_vm4, %v3057_v34  ;;  %v3058_v35 = vpack.c.bf16 %v3057_v34, %v3057_v34 }
0x16ac   : > { %4999 = vmatmul.mubr.msk.bf16.vlgmr.msra.gmra.mrb[64].mxu1 %vm2743_vm4, %v3058_v35 }
0x16ad   : > { %5009 = vmatpush3.bf16.msra.mxu1 %v3155_v36  ;;  %5010 = vmatprep.mubr.msk.bf16.mxu1 %vm5482_vm0, %v5481_v1 }
0x16ae   : > { %5022 = vmatprep.subr.bf16.mxu1 %v5481_v1 }
0x16b4   : > { %5011 = vmatmul.mubr.msk.bf16.vlgmr.msra.gmra.mrb[68].mxu1 %vm1247_vm2, %v2799_v38 }
0x16b5   : > { %5023 = vmatpush3.bf16.msra.mxu1 %v5254_v37  ;;  %5026 = vmatprep.mubr.msk.bf16.mxu1 %vm5482_vm0, %v5481_v1  ;;  %v5260_v37 = vld [vmem:[%s6353_s6 + $0x30] sm:$0xff]  }
0x16b6   : > { %5024 = vmatprep.subr.bf16.mxu1 %v5481_v1 }
0x16b9   : > { %5025 = vmatpush3.bf16.msra.mxu1 %v5255_v39  ;;  %v5261_v39 = vld [vmem:[%s6353_s6 + $0x38] sm:$0xff]   ;;  %s6371_s6 = sld [smem:[#allocation30_spill]] }
0x16ba   : > { %5038 = vmatprep.subr.bf16.mxu1 %v5481_v1 }
0x16bc   : > { %5027 = vmatmul.mubr.msk.bf16.vlgmr.msra.gmra.mrb[72].mxu1 %vm1071_vm1, %v5948_v53 }
0x16bd   : > { %5040 = vmatprep.mubr.msk.bf16.mxu1 %vm5482_vm0, %v5481_v1 }
0x177f   : > { %v3096_v40 = vpop.f32.mrb[64].mxu1 }
0x1780   : > { %v3102_v42 = vpack.c.bf16 %v3096_v40, %v3096_v40  ;;  %v5000_v43 = vpop.f32.mrb[65].mxu1 }
0x1781   : > { %v3099_v44 = vpop.f32.mrb[66].mxu1 }
0x1782   : > { %v5001_v45 = vpop.f32.mrb[67].mxu1  ;;  %5005 = vmatmul.mubr.msk.bf16.vlgmr.msra.gmra.mrb[68].mxu0 %vm1247_vm2, %v3102_v42 }
0x1783   : > { %5015 = vmatpush3.bf16.msra.mxu0 %v5256_v41  ;;  %5018 = vmatprep.mubr.msk.bf16.mxu0 %vm5482_vm0, %v5481_v1  ;;  %v5262_v41 = vld [vmem:[%s6349_s20 + $0x30] sm:$0xff]  }
0x1784   : > { %5016 = vmatprep.subr.bf16.mxu0 %v5481_v1 }
0x1787   : > { %v3191_v47 = vpop.f32.mrb[68].mxu1  ;;  %5017 = vmatpush3.bf16.msra.mxu0 %v5257_v46  ;;  %v5263_v46 = vld [vmem:[%s6349_s20 + $0x38] sm:$0xff]  }
0x1788   : > { %v5012_v8 = vpop.f32.mrb[69].mxu1  ;;  %5030 = vmatprep.subr.bf16.mxu0 %v5481_v1 }
0x1789   : > { %v3194_v48 = vpop.f32.mrb[70].mxu1 }
0x178a   : > { %v5013_v49 = vpop.f32.mrb[71].mxu1  ;;  %5019 = vmatmul.mubr.msk.bf16.vlgmr.msra.gmra.mrb[72].mxu0 %vm1071_vm1, %v5965_v3 }
0x178b   : > { %5034 = vmatprep.mubr.msk.bf16.mxu0 %vm5482_vm0, %v5481_v1  ;;  %5031 = vmatpush3.bf16.msra.mxu0 %v5258_v13 }
0x178c   : > { %5032 = vmatprep.subr.bf16.mxu0 %v5481_v1 }
0x178f   : > { %v3322_v51 = vpop.f32.mrb[72].mxu1  ;;  %5033 = vmatpush3.bf16.msra.mxu0 %v5259_v14 }
0x1790   : > { %v3323_v6 = vadd.f32 %v4558_v50, %v3322_v51  ;;  %v5028_v52 = vpop.f32.mrb[73].mxu1  ;;  %5044 = vmatprep.subr.bf16.mxu0 %v5481_v1 }
0x1791   : > { %v3325_v54 = vpop.f32.mrb[74].mxu1 }
0x1792   : > { %v3326_v55 = vadd.f32 %v4558_v50, %v3325_v54  ;;  %v5029_v56 = vpop.f32.mrb[75].mxu1  ;;  %5035 = vmatmul.mubr.msk.bf16.vlgmr.msra.gmra.mrb[76].mxu0 %vm1071_vm1, %v5948_v53  ;;  %v4589_v54 = vld [vmem:[%s6363_s11 + $0x3] ss:$0 sm:$0xff] }
0x1793   : > { %5046 = vmatprep.mubr.msk.bf16.mxu0 %vm5482_vm0, %v5481_v1 }
0x1794   : > { %v3329_v57 = vpack.c.bf16 %v3326_v55, %v3323_v6 }
0x1796   : > { %v3401_v58 = vsel %vm1247_vm2, %v3329_v57, 0 }
0x1797   : > { %5039 = vmatpush3.bf16.xpose.msra.mxu1 %v3401_v58 }
0x1798   : > { %5050 = vmatprep.subr.bf16.mxu1 %v5481_v1 }
0x1855   : > { %v3145_v59 = vpop.f32.mrb[68].mxu0 }
0x1856   : > { %v6074_v60 = vadd.f32 %v3191_v47, %v3145_v59  ;;  %v5006_v61 = vpop.f32.mrb[69].mxu0 }
0x1857   : > { %v3148_v63 = vpop.f32.mrb[70].mxu0 }
0x1858   : > { %v5007_v0 = vpop.f32.mrb[71].mxu0 }
0x1859   : > { %v4580_v0 = vld [vmem:[%s6364_s3 + $0x3] ss:$0 sm:$0xff]  ;;  %s6369_s3 = sld [smem:[#allocation25_spill]] }
0x185d   : > { %v3256_v4 = vpop.f32.mrb[72].mxu0 }
0x185e   : > { %v3257_v5 = vadd.f32 %v4549_v62, %v3256_v4  ;;  %v5020_v9 = vpop.f32.mrb[73].mxu0 }
0x185f   : > { %v3259_v10 = vpop.f32.mrb[74].mxu0  ;;  %v5265_v9 = vld [vmem:[%s6365_s5 + $0x38] sm:$0xff]  }
0x1860   : > { %v3262_v11 = vpack.c.bf16 %v3257_v5, %v3257_v5  ;;  %v5021_v12 = vpop.f32.mrb[75].mxu0  ;;  %v5264_v5 = vld [vmem:[%s6365_s5 + $0x30] sm:$0xff]   ;;  %s6370_s5 = sld [smem:[#allocation28_spill]] }
0x1862   : > { %5041 = vmatmul.mubr.msk.bf16.vlgmr.msra.gmra.mrb[76].mxu1 %vm1247_vm2, %v3262_v11 }
0x1863   : > { %5052 = vmatprep.mubr.msk.bf16.mxu1 %vm5482_vm0, %v5481_v1  ;;  %5051 = vmatpush3.bf16.msra.mxu1 %v3505_v33 }
0x1864   : > { %5064 = vmatprep.subr.bf16.mxu1 %v5481_v1 }
0x1865   : > { %v3389_v19 = vpop.f32.mrb[76].mxu0 }
0x1866   : > { %v5036_v20 = vpop.f32.mrb[77].mxu0  ;;  %v3390_v27 = vadd.f32 %v4567_v26, %v3389_v19 }
0x1867   : > { %v3392_v28 = vpop.f32.mrb[78].mxu0  ;;  %v4598_v20 = vld [vmem:[%s6366_s7 + $0x3] ss:$0 sm:$0xff]  ;;  %s6373_s7 = sld [smem:[#allocation27_spill]] }
0x1868   : > { %v5037_v29 = vpop.f32.mrb[79].mxu0  ;;  %v3393_v30 = vadd.f32 %v4567_v26, %v3392_v28  ;;  %v4604_v26 = vld [vmem:[%s6368_s8 + $0xc] sm:$0xf]  ;;  %s6374_s8 = sld [smem:[#allocation29_spill]] }
0x186a   : > { %v3396_v31 = vpack.c.bf16 %v3393_v30, %v3390_v27  ;;  %v3856_v27 = vsel %vm1309_vm3, %v4604_v26, 0 }
0x186c   : > { %5045 = vmatpush3.bf16.msra.mxu0 %v3396_v31 }
0x186d   : > { %5056 = vmatprep.subr.bf16.mxu0 %v5481_v1 }
0x1935   : > { %v3437_v15 = vpop.f32.mrb[76].mxu1 }
0x1936   : > { %v5042_v16 = vpop.f32.mrb[77].mxu1  ;;  %v3443_v17 = vsel %vm2743_vm4, %v3437_v15, -inf }
0x1937   : > { %3444 = vmax.xlane.f32.xlu0 %v3443_v17  ;;  %v3440_v18 = vpop.f32.mrb[78].mxu1 }
0x1938   : > { %v5043_v7 = vpop.f32.mrb[79].mxu1 }
0x19c4   : > { %v3445_v21 = vpop.xlane.xlu0 %3444 }
0x19c5   : > { %v3446_v22 = vsub.f32 %v3437_v15, %v3445_v21 }
0x19c7   : > { %v3447_v23 = vmul.f32 1.442695, %v3446_v22 }
0x19c9   : > { %5298 = vpow2.f32 %v3447_v23 }
0x19d3   : > { %v5299_v24 = vpop.eup %5298 }
0x19d4   : > { %v3449_v25 = vsel %vm2743_vm4, %v5299_v24, 0.0 }
0x19d5   : > { %3450 = vadd.xlane.f32.xlu1 %v3449_v25 }
0x1a62   : > { %v3451_v34 = vpop.xlane.xlu1 %3450 }
0x1a63   : > { %5300 = vrcp.f32 %v3451_v34 }
0x1a6d   : > { %v5301_v35 = vpop.eup %5300 }
0x1a6e   : > { %v3453_v36 = vmul.f32 %v5301_v35, %v5299_v24 }
0x1a70   : > { %4123 = vst.msk [vmem:[%s6001_s9 + $0x10] sm:$0xff] %vm2743_vm4, %v3453_v36  ;;  %v3454_v38 = vpack.c.bf16 %v3453_v36, %v3453_v36 }
0x1a72   : > { %5047 = vmatmul.mubr.msk.bf16.vlgmr.msra.gmra.mrb[80].mxu0 %vm2743_vm4, %v3454_v38 }
0x1a73   : > { %5057 = vmatpush3.bf16.msra.mxu0 %v5260_v37  ;;  %5060 = vmatprep.mubr.msk.bf16.mxu0 %vm5482_vm0, %v5481_v1  ;;  %v4606_v37 = vld [vmem:[%s6369_s3] ss:$0 sm:$0xff]  ;;  %s6372_s3 = sld [smem:[#allocation26_spill]] }
0x1a74   : > { %5058 = vmatprep.subr.bf16.mxu0 %v5481_v1 }
0x1a77   : > { %5059 = vmatpush3.bf16.msra.mxu0 %v5261_v39 }
0x1a78   : > { %5072 = vmatprep.subr.bf16.mxu0 %v5481_v1 }
0x1a7a   : > { %5061 = vmatmul.mubr.msk.bf16.vlgmr.msra.gmra.mrb[84].mxu0 %vm1071_vm1, %v5965_v3 }
0x1a7b   : > { %5076 = vmatprep.mubr.msk.bf16.mxu0 %vm5482_vm0, %v5481_v1  ;;  %5073 = vmatpush3.bf16.msra.mxu0 %v5264_v5 }
0x1a7c   : > { %5074 = vmatprep.subr.bf16.mxu0 %v5481_v1 }
0x1a7f   : > { %5075 = vmatpush3.bf16.msra.mxu0 %v5265_v9 }
0x1a80   : > { %5086 = vmatprep.subr.bf16.mxu0 %v5481_v1 }
0x1a82   : > { %5077 = vmatmul.mubr.msk.bf16.vlgmr.msra.gmra.mrb[88].mxu0 %vm1071_vm1, %v5948_v53 }
0x1a83   : > { %5088 = vmatprep.mubr.msk.bf16.mxu0 %vm5482_vm0, %v5481_v1 }
0x1b45   : > { %v3492_v40 = vpop.f32.mrb[80].mxu0 }
0x1b46   : > { %v3498_v42 = vpack.c.bf16 %v3492_v40, %v3492_v40  ;;  %v5048_v43 = vpop.f32.mrb[81].mxu0 }
0x1b47   : > { %v3495_v44 = vpop.f32.mrb[82].mxu0 }
0x1b48   : > { %v5049_v45 = vpop.f32.mrb[83].mxu0  ;;  %5053 = vmatmul.mubr.msk.bf16.vlgmr.msra.gmra.mrb[80].mxu1 %vm1247_vm2, %v3498_v42 }
0x1b49   : > { %5065 = vmatpush3.bf16.msra.mxu1 %v5262_v41  ;;  %5068 = vmatprep.mubr.msk.bf16.mxu1 %vm5482_vm0, %v5481_v1 }
0x1b4a   : > { %5066 = vmatprep.subr.bf16.mxu1 %v5481_v1 }
0x1b4d   : > { %v3607_v3 = vpop.f32.mrb[84].mxu0  ;;  %5067 = vmatpush3.bf16.msra.mxu1 %v5263_v46 }
0x1b4e   : > { %v5062_v47 = vpop.f32.mrb[85].mxu0  ;;  %5080 = vmatprep.subr.bf16.mxu1 %v5481_v1  ;;  %v3608_v4 = vadd.f32 %v4580_v0, %v3607_v3  ;;  %v5270_v0 = vld [vmem:[%s6371_s6 + $0x10] sm:$0xff]  }
0x1b4f   : > { %v3610_v8 = vpop.f32.mrb[86].mxu0 }
0x1b50   : > { %v5063_v48 = vpop.f32.mrb[87].mxu0  ;;  %5069 = vmatmul.mubr.msk.bf16.vlgmr.msra.gmra.mrb[84].mxu1 %vm1071_vm1, %v5948_v53 }
0x1b51   : > { %5082 = vmatprep.mubr.msk.bf16.mxu1 %vm5482_vm0, %v5481_v1 }
0x1b55   : > { %v3740_v15 = vpop.f32.mrb[88].mxu0 }
0x1b56   : > { %v5078_v16 = vpop.f32.mrb[89].mxu0  ;;  %v3741_v21 = vadd.f32 %v4598_v20, %v3740_v15 }
0x1b57   : > { %v3743_v22 = vpop.f32.mrb[90].mxu0 }
0x1b58   : > { %v5079_v23 = vpop.f32.mrb[91].mxu0  ;;  %v3744_v24 = vadd.f32 %v4598_v20, %v3743_v22 }
0x1b5a   : > { %v3747_v25 = vpack.c.bf16 %v3744_v24, %v3741_v21 }
0x1b5c   : > { %5087 = vmatpush3.bf16.msra.mxu0 %v3747_v25 }
0x1b5d   : > { %5098 = vmatprep.subr.bf16.mxu0 %v5481_v1 }
0x1c1b   : > { %v3541_v49 = vpop.f32.mrb[80].mxu1 }
0x1c1c   : > { %v6120_v50 = vadd.f32 %v3541_v49, %v6074_v60  ;;  %v5054_v51 = vpop.f32.mrb[81].mxu1  ;;  %v3613_v60 = vpack.c.bf16 %v3608_v4, %v3608_v4  ;;  %v5266_v49 = vld [vmem:[%s6370_s5] sm:$0xff]  }
0x1c1d   : > { %v3544_v6 = vpop.f32.mrb[82].mxu1  ;;  %v5269_v51 = vld [vmem:[%s6371_s6 + $0x8] sm:$0xff]   ;;  %v4609_v4 = vld [vmem:[%s6374_s8] ss:$0 sm:$0xff]  ;;  %s4632_s8 = sshll.u32 %s5440_s28, 9 }
0x1c1e   : > { %v5055_v52 = vpop.f32.mrb[83].mxu1 }
0x1c23   : > { %v3673_v55 = vpop.f32.mrb[84].mxu1 }
0x1c24   : > { %v5070_v56 = vpop.f32.mrb[85].mxu1  ;;  %v3674_v58 = vadd.f32 %v4589_v54, %v3673_v55 }
0x1c25   : > { %v3676_v57 = vpop.f32.mrb[86].mxu1  ;;  %v4607_v56 = vld [vmem:[%s6372_s3] ss:$0 sm:$0xff]  ;;  %s6186_s3 = scalar_lea.hbm %s6350_s12, %s4632_s8 }
0x1c26   : > { %v3677_v59 = vadd.f32 %v4589_v54, %v3676_v57  ;;  %v5071_v61 = vpop.f32.mrb[87].mxu1 }
0x1c28   : > { %v3680_v63 = vpack.c.bf16 %v3677_v59, %v3674_v58  ;;  %v4608_v58 = vld [vmem:[%s6373_s7] ss:$0 sm:$0xff] }
0x1c2a   : > { %v3752_v62 = vsel %vm1247_vm2, %v3680_v63, 0 }
0x1c2b   : > { %5081 = vmatpush3.bf16.xpose.msra.mxu1 %v3752_v62  ;;  %v5271_v62 = vld [vmem:[%s6371_s6 + $0x18] sm:$0xff]  }
0x1c2c   : > { %5092 = vmatprep.subr.bf16.mxu1 %v5481_v1 }
0x1c32   : > { %5083 = vmatmul.mubr.msk.bf16.vlgmr.msra.gmra.mrb[88].mxu1 %vm1247_vm2, %v3613_v60 }
0x1c33   : > { %5094 = vmatprep.mubr.msk.bf16.mxu1 %vm5482_vm0, %v5481_v1  ;;  %5093 = vmatpush3.bf16.msra.mxu1 %v3856_v27 }
0x1c34   : > { %5106 = vmatprep.subr.bf16.mxu1 %v5481_v1 }
0x1d05   : > { %v3788_v10 = vpop.f32.mrb[88].mxu1 }
0x1d06   : > { %v5084_v11 = vpop.f32.mrb[89].mxu1  ;;  %v3794_v12 = vsel %vm2743_vm4, %v3788_v10, -inf }
0x1d07   : > { %3795 = vmax.xlane.f32.xlu0 %v3794_v12  ;;  %v3791_v13 = vpop.f32.mrb[90].mxu1 }
0x1d08   : > { %v5085_v14 = vpop.f32.mrb[91].mxu1 }
0x1d94   : > { %v3796_v17 = vpop.xlane.xlu0 %3795 }
0x1d95   : > { %v3797_v18 = vsub.f32 %v3788_v10, %v3796_v17 }
0x1d97   : > { %v3798_v7 = vmul.f32 1.442695, %v3797_v18 }
0x1d99   : > { %5302 = vpow2.f32 %v3798_v7 }
0x1da3   : > { %v5303_v19 = vpop.eup %5302 }
0x1da4   : > { %v3800_v53 = vsel %vm2743_vm4, %v5303_v19, 0.0 }
0x1da5   : > { %3801 = vadd.xlane.f32.xlu1 %v3800_v53 }
0x1e32   : > { %v3802_v28 = vpop.xlane.xlu1 %3801 }
0x1e33   : > { %5304 = vrcp.f32 %v3802_v28 }
0x1e3d   : > { %v5305_v29 = vpop.eup %5304 }
0x1e3e   : > { %v3804_v30 = vmul.f32 %v5305_v29, %v5303_v19 }
0x1e40   : > { %4124 = vst.msk [vmem:[%s6001_s9 + $0x18] sm:$0xff] %vm2743_vm4, %v3804_v30  ;;  %v3805_v31 = vpack.c.bf16 %v3804_v30, %v3804_v30 }
0x1e42   : > { %5089 = vmatmul.mubr.msk.bf16.vlgmr.msra.gmra.mrb[92].mxu0 %vm2743_vm4, %v3805_v31 }
0x1e43   : > { %5102 = vmatprep.mubr.msk.bf16.mxu0 %vm5482_vm0, %v5481_v1  ;;  %5099 = vmatpush3.bf16.msra.mxu0 %v5266_v49 }
0x1e44   : > { %5100 = vmatprep.subr.bf16.mxu0 %v5481_v1 }
0x1f15   : > { %v3843_v32 = vpop.f32.mrb[92].mxu0 }
0x1f16   : > { %v3849_v33 = vpack.c.bf16 %v3843_v32, %v3843_v32  ;;  %v5090_v34 = vpop.f32.mrb[93].mxu0 }
0x1f17   : > { %v3846_v35 = vpop.f32.mrb[94].mxu0 }
0x1f18   : > { %v5091_v36 = vpop.f32.mrb[95].mxu0  ;;  %5095 = vmatmul.mubr.msk.bf16.vlgmr.msra.gmra.mrb[92].mxu1 %vm1247_vm2, %v3849_v33 }
0x1f19   : > { %5114 = vmatprep.mubr.msk.bf16.mxu1 %vm5482_vm0, %v5481_v1 }
0x1feb   : > { %v3892_v38 = vpop.f32.mrb[92].mxu1 }
0x1fec   : > { %v3898_v39 = vadd.f32 %v3892_v38, %v6120_v50  ;;  %v5096_v40 = vpop.f32.mrb[93].mxu1  ;;  %v5267_v50 = vld [vmem:[%s6370_s5 + $0x8] sm:$0xff]   ;;  %s6375_s5 = sld [smem:[#allocation31_spill]] }
0x1fed   : > { %v3895_v41 = vpop.f32.mrb[94].mxu1  ;;  %5101 = vmatpush3.bf16.msra.mxu0 %v5267_v50 }
0x1fee   : > { %v3905_v42 = vadd.f32 %v4606_v37, %v3898_v39  ;;  %v5097_v43 = vpop.f32.mrb[95].mxu1 }
0x1ff0   : > { %v3906_v44 = vadd.f32 %v3905_v42, %v5961_v2  ;;  %v5268_v2 = vld [vmem:[%s6371_s6] sm:$0xff]   ;;  %s4164_s6 = sshll.u32 %s5784_s16, 4  ;;  %s6189_s6 = int_to_ptr.vmem [resolvable:$true] %s4164_s6 }
0x1ff1   : > { %5107 = vmatpush3.bf16.msra.mxu1 %v5268_v2  ;;  %s5310_s13 = scalar_lea.vmem %s6189_s6, 512 }
0x1ff2   : > { %v3907_v45 = vsel %vm1071_vm1, %v3906_v44, 0.0  ;;  %5108 = vmatprep.subr.bf16.mxu1 %v5481_v1  ;;  %v4613_v14 = vld [vmem:[%s6375_s5] ss:$0 sm:$0xff]  ;;  %s6376_s5 = sadd.s32 4294967295, %s5448_s2   ;;  %p5311_p12 = scmp.ne.s32.totalorder %s6189_s6, %s5310_s13 }
0x1ff3   : > { %3908 = vadd.xlane.f32.xlu0 %v3907_v45  ;;  %s6180_s7 = sand.u32 1, %s6376_s5   ;;  %s5314_s5 = sshll.u32 %s5483_s14, 4  ;;  %s5315_s5 = int_to_ptr.vmem [resolvable:$false] %s5314_s5 }
0x1ff4   : > { %s4131_s11 = scalar_lea.sflag [#allocation5], %s6180_s7  ;;  %p5312_p13 = pnand %p5311_p12, %p5695_p4 }
0x1ff5   : > { %5109 = vmatpush3.bf16.msra.mxu1 %v5269_v51  ;;  %s5316_s17 = scalar_lea.vmem %s5315_s5, 1024  ;;  %p5317_p1 = scmp.lt.s32.totalorder %s6189_s6, %s5315_s5 }
0x1ff6   : > { %5110 = vmatprep.subr.bf16.mxu1 %v5481_v1  ;;  %p5313_p0 = pneg %p5312_p13  ;;  %p5318_p2 = scmp.lt.s32.totalorder %s5316_s17, %s5310_s13 }
0x1ff8   : > { %p5319_p3 = por %p5318_p2, %p5317_p1 }
0x1ff9   : > { %5111 = vmatpush3.bf16.msra.mxu1 %v5270_v0 }
0x1ffa   : > { %5112 = vmatprep.subr.bf16.mxu1 %v5481_v1  ;;  %p5320_p5 = pnand %p5319_p3, %p5313_p0 }
0x1ffd   : > { %5113 = vmatpush3.bf16.msra.mxu1 %v5271_v62 }
0x2080   : > { %v3909_v46 = vpop.xlane.xlu0 %3908 }
0x2081   : > { %v3910_v3 = vmul.f32 0.03125, %v3909_v46 }
0x2083   : > { %v3911_v47 = vsub.f32 %v3906_v44, %v3910_v3 }
0x2085   : > { %v3912_v8 = vmul.f32 %v3911_v47, %v3911_v47 }
0x2087   : > { %v3913_v48 = vsel %vm1071_vm1, %v3912_v8, 0.0 }
0x2088   : > { %3914 = vadd.xlane.f32.xlu1 %v3913_v48 }
0x2115   : > { %v3915_v6 = vpop.xlane.xlu1 %3914 }
0x2116   : > { %v3916_v52 = vmul.f32 0.03125, %v3915_v6 }
0x2118   : > { %v3917_v54 = vadd.f32 1e-05, %v3916_v52 }
0x211a   : > { %5306 = vrsqrt.f32 %v3917_v54 }
0x2124   : > { %v5307_v55 = vpop.eup %5306 }
0x2125   : > { %v3919_v57 = vmul.f32 %v5307_v55, %v3911_v47 }
0x2127   : > { %v3926_v59 = vmul.f32 %v4607_v56, %v3919_v57 }
0x2129   : > { %v3933_v61 = vadd.f32 %v4608_v58, %v3926_v59 }
0x212b   : > { %v3934_v63 = vpack.c.bf16 %v3933_v61, %v3933_v61 }
0x212d   : > { %5103 = vmatmul.mubr.msk.bf16.vlgmr.msra.gmra.mrb[96].mxu0 %vm1071_vm1, %v3934_v63 }
0x2200   : > { %v3995_v60 = vpop.f32.mrb[96].mxu0 }
0x2201   : > { %v3996_v5 = vadd.f32 %v4609_v4, %v3995_v60  ;;  %v5104_v9 = vpop.f32.mrb[97].mxu0 }
0x2202   : > { %v3998_v10 = vpop.f32.mrb[98].mxu0 }
0x2203   : > { %v4001_v11 = vmax.f32 %v3996_v5, 0.0  ;;  %v5105_v12 = vpop.f32.mrb[99].mxu0 }
0x2205   : > { %v4002_v13 = vpack.c.bf16 %v4001_v11, %v4001_v11 }
0x2207   : > { %5115 = vmatmul.mubr.msk.bf16.vlgmr.msra.gmra.mrb[96].mxu1 %vm4042_vm5, %v4002_v13 }
0x22da   : > { %v4080_v15 = vpop.f32.mrb[96].mxu1 }
0x22db   : > { %v4081_v16 = vadd.f32 %v4613_v14, %v4080_v15  ;;  %v5116_v1 = vpop.f32.mrb[97].mxu1 }
0x22dc   : > { %v4083_v17 = vpop.f32.mrb[98].mxu1 }
0x22dd   : > { %v5117_v18 = vpop.f32.mrb[99].mxu1  ;;  %v4086_v7 = vadd.f32 %v4081_v16, %v3933_v61 }
0x22df   : > { %v4089_v19 = vsel %vm1071_vm1, %v4086_v7, 0.0 }
0x22e0   : > { %4090 = vadd.xlane.f32.xlu0 %v4089_v19 }
0x236d   : > { %v4091_v53 = vpop.xlane.xlu0 %4090 }
0x236e   : > { %v4092_v20 = vmul.f32 0.03125, %v4091_v53 }
0x2370   : > { %v6173_v21 = vsub.f32 %v4086_v7, %v4092_v20 }
0x2372   : > { %v4094_v22 = vmul.f32 %v6173_v21, %v6173_v21 }
0x2374   : > { %v4095_v23 = vsel %vm1071_vm1, %v4094_v22, 0.0 }
0x2375   : > { %4096 = vadd.xlane.f32.xlu1 %v4095_v23 }
0x2376   : > { %5323 = shalt.err (!%p5320_p5)
}
0x2377   : > { %s5324_s16 = scalar_lea.hbm %s6186_s3, 512  ;;  %s5328_s14 = scalar_lea.hbm %s6350_s12, 1024 }
0x2378   : > { %p5325_p6 = scmp.ne.s32.totalorder %s6186_s3, %s5324_s16  ;;  %p5329_p10 = scmp.lt.u32.totalorder %s6186_s3, %s6350_s12 }
0x2379   : > { %p5330_p11 = scmp.lt.u32.totalorder %s5328_s14, %s5324_s16  ;;  %p5332_p13 = scmp.lt.u32.totalorder %s5324_s16, %s6186_s3 }
0x237a   : > { %p5326_p7 = pnand %p5325_p6, %p5695_p4 }
0x237b   : > { %p5331_p12 = por %p5330_p11, %p5329_p10 }
0x237c   : > { %p5327_p9 = pneg %p5326_p7 }
0x237d   : > { %p5333_p1 = por %p5332_p13, %p5331_p12 }
0x237f   : > { %p5334_p0 = pnand %p5333_p1, %p5327_p9 }
0x2381   : > { %5337 = shalt.err (!%p5334_p0)
}
0x2382   : > { %s5484_s13 = smov 128   ;;  %s5485_s17 = smov 8  }
0x2383   : > { %5119 = dma.vmem_to_hbm [thread:$0]  (%p5695_p4), %s6189_s6, 512, %s6186_s3, %s4131_s11, %s5484_s13, %s5484_s13, %s5485_s17  }
0x2384   : > { %s6217_s5 = scalar_lea.hbm %s5651_s30, %s4632_s8  ;;  %s4181_s16 = sshll.u32 %s6001_s9, 4  ;;  %s6220_s16 = int_to_ptr.vmem [resolvable:$true] %s4181_s16 }
0x2385   : > { %s5338_s14 = scalar_lea.vmem %s6220_s16, 512  ;;  %s5486_s12 = smov [#allocation6]  }
0x2386   : > { %p5339_p2 = scmp.ne.s32.totalorder %s6220_s16, %s5338_s14  ;;  %s5342_s19 = sshll.u32 %s5486_s12, 4  ;;  %s5343_s19 = int_to_ptr.vmem [resolvable:$false] %s5342_s19 }
0x2387   : > { %s5344_s20 = scalar_lea.vmem %s5343_s19, 1024  ;;  %p5345_p6 = scmp.lt.s32.totalorder %s6220_s16, %s5343_s19 }
0x2388   : > { %p5340_p3 = pnand %p5339_p2, %p5695_p4  ;;  %p5346_p7 = scmp.lt.s32.totalorder %s5344_s20, %s5338_s14 }
0x238a   : > { %p5341_p5 = pneg %p5340_p3  ;;  %p5347_p9 = por %p5346_p7, %p5345_p6 }
0x238c   : > { %p5348_p10 = pnand %p5347_p9, %p5341_p5 }
0x238e   : > { %5351 = shalt.err (!%p5348_p10)
}
0x238f   : > { %s5352_s9 = scalar_lea.hbm %s6217_s5, 512  ;;  %s5356_s6 = scalar_lea.hbm %s5651_s30, 1024 }
0x2390   : > { %p5353_p11 = scmp.ne.s32.totalorder %s6217_s5, %s5352_s9  ;;  %p5357_p1 = scmp.lt.u32.totalorder %s6217_s5, %s5651_s30 }
0x2391   : > { %p5358_p0 = scmp.lt.u32.totalorder %s5356_s6, %s5352_s9  ;;  %p5360_p3 = scmp.lt.u32.totalorder %s5352_s9, %s6217_s5 }
0x2392   : > { %p5354_p12 = pnand %p5353_p11, %p5695_p4 }
0x2393   : > { %p5359_p2 = por %p5358_p0, %p5357_p1 }
0x2394   : > { %p5355_p13 = pneg %p5354_p12 }
0x2395   : > { %p5361_p6 = por %p5360_p3, %p5359_p2 }
0x2397   : > { %p5362_p5 = pnand %p5361_p6, %p5355_p13 }
0x2399   : > { %5365 = shalt.err (!%p5362_p5)
}
0x239a   : > { %s6377_s19 = sld [smem:[#allocation32_spill]]  ;;  %s6378_s12 = sld [smem:[#allocation33_spill]]  ;;  %v4620_v30 = vld [vmem:[%s5636_s27] ss:$0 sm:$0xff] }
0x239b   : > { %5120 = dma.vmem_to_hbm [thread:$0]  (%p5695_p4), %s6220_s16, 512, %s6217_s5, %s4131_s11, %s5484_s13, %s5484_s13, %s5485_s17  }
0x239c   : > { %s4380_s20 = sshll.u32 %s5778_s0, 3  ;;  %s4624_s7 = sshll.u32 %s5440_s28, 7 }
0x239d   : > { %s1007_s8 = scalar_lea.vmem [#allocation2], %s4380_s20  ;;  %s4126_s11 = scalar_lea.sflag [#allocation3], %s5778_s0 }
0x239e   : > { %s4150_s3 = sshll.u32 %s1007_s8, 4  ;;  %s5487_s28 = smov [#allocation2]   ;;  %s6252_s3 = int_to_ptr.vmem [resolvable:$true] %s4150_s3 }
0x239f   : > { %s5366_s13 = scalar_lea.vmem %s6252_s3, 128  ;;  %s5370_s17 = sshll.u32 %s5487_s28, 4  ;;  %s5371_s17 = int_to_ptr.vmem [resolvable:$false] %s5370_s17 }
0x23a0   : > { %v4619_v28 = vld [vmem:[%s6377_s19] ss:$0 sm:$0xff]  ;;  %s6250_s14 = scalar_lea.hbm %s6378_s12, %s4624_s7  ;;  %p5367_p7 = scmp.ne.s32.totalorder %s6252_s3, %s5366_s13 }
0x23a1   : > { %s5372_s5 = scalar_lea.vmem %s5371_s17, 256  ;;  %p5373_p11 = scmp.lt.s32.totalorder %s6252_s3, %s5371_s17 }
0x23a2   : > { %p5368_p9 = pnand %p5367_p7, %p5695_p4  ;;  %p5374_p12 = scmp.lt.s32.totalorder %s5372_s5, %s5366_s13 }
0x23a4   : > { %p5369_p10 = pneg %p5368_p9  ;;  %p5375_p13 = por %p5374_p12, %p5373_p11 }
0x23a6   : > { %p5376_p1 = pnand %p5375_p13, %p5369_p10 }
0x2402   : > { %v4097_v24 = vpop.xlane.xlu1 %4096 }
0x2403   : > { %v4098_v25 = vmul.f32 0.03125, %v4097_v24 }
0x2405   : > { %v4099_v26 = vadd.f32 1e-05, %v4098_v25 }
0x2407   : > { %5308 = vrsqrt.f32 %v4099_v26 }
0x2411   : > { %v5309_v27 = vpop.eup %5308 }
0x2412   : > { %v4101_v29 = vmul.f32 %v5309_v27, %v6173_v21 }
0x2414   : > { %v4108_v31 = vmul.f32 %v4619_v28, %v4101_v29 }
0x2416   : > { %v4115_v32 = vadd.f32 %v4620_v30, %v4108_v31 }
0x2418   : > { %4116 = vst.msk [vmem:[%s1007_s8] sm:$0xff] %vm1071_vm1, %v4115_v32 }
0x2419   : > { %5379 = shalt.err (!%p5376_p1)
}
0x241a   : > { %s5380_s0 = scalar_lea.hbm %s6250_s14, 128  ;;  %s5384_s16 = scalar_lea.hbm %s6378_s12, 256 }
0x241b   : > { %p5381_p0 = scmp.ne.s32.totalorder %s6250_s14, %s5380_s0  ;;  %p5385_p6 = scmp.lt.u32.totalorder %s6250_s14, %s6378_s12 }
0x241c   : > { %p5386_p5 = scmp.lt.u32.totalorder %s5384_s16, %s5380_s0  ;;  %p5388_p9 = scmp.lt.u32.totalorder %s5380_s0, %s6250_s14 }
0x241d   : > { %p5382_p2 = pnand %p5381_p0, %p5695_p4 }
0x241e   : > { %p5387_p7 = por %p5386_p5, %p5385_p6 }
0x241f   : > { %p5383_p3 = pneg %p5382_p2 }
0x2420   : > { %p5389_p11 = por %p5388_p9, %p5387_p7 }
0x2422   : > { %p5390_p10 = pnand %p5389_p11, %p5383_p3 }
0x2424   : > { %5393 = shalt.err (!%p5390_p10)
}
0x2425   : > { %5118 = dma.vmem_to_hbm [thread:$0]  (%p5695_p4), %s6252_s3, 128, %s6250_s14, %s4126_s11  }
0x2426 PF: > { %p5134_p12 = scmp.ge.s32.totalorder %s5448_s2, 2  ;;  %s4196_s9 = sand.u32 1, %s5428_s22  }
0x2427   : > { %s4197_s6 = scalar_lea.sflag [#allocation3], %s4196_s9 }
0x2428   : > { %p5125_p13 = pnand %p5134_p12, %p5704_p8 }
0x242a   : > { %5419 = dma.done.wait (!%p5125_p13), %s4197_s6, 128  }
0x242b   : > { %5421 = vsyncadd (!%p5125_p13), %s4197_s6, 4294967168  ;;  %s6379_s19 = sadd.s32 4294967294, %s5448_s2  }
0x242c   : > { %s4205_s20 = sand.u32 1, %s6379_s19  }
0x242d   : > { %s4206_s7 = scalar_lea.sflag [#allocation5], %s4205_s20 }
0x242e   : > { %5423 = dma.done.wait (!%p5125_p13), %s4206_s7, 1024  }
0x242f   : > { %5425 = vsyncadd (!%p5125_p13), %s4206_s7, 4294966272  ;;  %s80_s2 = sadd.s32 1, %s5448_s2   ;;  %s6380_s22 = smov %s5432_s23 }
0x2430   : > { %p77_p4 = scmp.ge.s32.totalorder %s80_s2, 4   ;;  %s6381_s23 = smov %s5436_s26 }
0x2431   : > { %s6382_s26 = smov %s5710_s4  ;;  %s6383_s28 = smov %s5444_s1 }
0x2432   : > { %s6384_s1 = smov %s6386_s10  ;;  %79 = sbr.rel (!%p77_p4) target bundleno = 70 (0x46), region = 282 }
0x2439   :  { %4220 = vsyncpa [#allocation3], 1 }
0x243a   :  { %4222 = vsyncpa [#allocation3 + $0x1], 1 }
0x243b   :  { %4223 = vsyncpa [#allocation5], 1 }
0x243c   :  { %4225 = vsyncpa [#allocation5 + $0x1], 1 }

</bundles_post_ra>
